<compile_context>
chip_gen: v7x
topology: tpu7x:2x2x1
jax: 0.10.0
libtpu: 0.0.40
codegen_flags: <defaults>
</compile_context>

<pallas_src>
import math
import jax
import jax.numpy as jnp
from jax.experimental import pallas as pl
from jax.experimental.pallas import tpu as pltpu


def _sigmoid(x):
    return 1.0 / (1.0 + jnp.exp(-x))


def _make_gru_kernel(num_layers, hidden, t_blk, bt, emb):
    H = hidden

    def kernel(*refs):
        # ---- unpack refs: inputs, outputs, scratch ----
        n_in = 4 + 5 * num_layers
        x_ref = refs[0]                        # (T_BLK, BT, E)  bf16 embedded tokens
        h0_ref = refs[1]                       # (L, BT, H)      f32 initial hidden
        layer_refs = refs[2:2 + 5 * num_layers]
        wout_ref = refs[2 + 5 * num_layers]    # (H, V) bf16
        bout_ref = refs[3 + 5 * num_layers]    # (1, V) f32
        logits_ref = refs[n_in]                # (T_BLK, BT, V) f32
        hfin_ref = refs[n_in + 1]              # (L, BT, H) f32
        h_state = refs[n_in + 2]               # VMEM (L, BT, H) f32      (carried)
        xw0_sc = refs[n_in + 3]                # VMEM (T_BLK*BT, 3H) f32  (hoisted proj)
        top_sc = refs[n_in + 4]                # VMEM (T_BLK*BT, H) bf16  (top-layer outs)

        tb = pl.program_id(1)

        # Initialize the resident hidden state at the first time block of this tile.
        @pl.when(tb == 0)
        def _():
            h_state[...] = h0_ref[...]

        # Layer-0 input projection for the whole time block: one large-M MXU pass
        # instead of T_BLK small-M passes on the recurrent critical path.
        wall0 = layer_refs[0]
        x_flat = x_ref[...].reshape(t_blk * bt, emb)           # (T_BLK*BT, E) bf16
        xw0_sc[...] = jnp.dot(x_flat, wall0[...],
                              preferred_element_type=jnp.float32)

        for t in range(t_blk):                 # static unroll over the time block
            row = pl.ds(t * bt, bt)
            x = None                           # layer-0 input already projected
            for j in range(num_layers):        # static unroll over stacked layers
                wall, urz, brz, uh, buh = layer_refs[5 * j:5 * j + 5]
                h_prev = h_state[j]            # (BT, H) f32
                h_bf = h_prev.astype(jnp.bfloat16)

                if j == 0:
                    xw = xw0_sc[row, :]        # precomputed (BT, 3H) f32
                else:
                    # x-side gates [r|z|h~] in one MXU pass -> (BT, 3H) f32
                    xw = jnp.dot(x, wall[...], preferred_element_type=jnp.float32)

                # h-side r,z gates in one MXU pass -> (BT, 2H) f32
                hu = jnp.dot(h_bf, urz[...],
                             preferred_element_type=jnp.float32) + brz[...]

                r = _sigmoid(xw[:, 0:H] + hu[:, 0:H])
                z = _sigmoid(xw[:, H:2 * H] + hu[:, H:2 * H])

                # Cho variant (matches models.py GRU_Layer): r applied BEFORE Uh.
                rh = (r * h_prev).astype(jnp.bfloat16)
                h_tilde = jnp.tanh(
                    xw[:, 2 * H:3 * H]
                    + jnp.dot(rh, uh[...], preferred_element_type=jnp.float32)
                    + buh[...])

                h_new = h_prev + z * (h_tilde - h_prev)
                h_state[j] = h_new
                x = h_new.astype(jnp.bfloat16)     # dropout = identity (eval mode)

            top_sc[row, :] = x                     # top-layer output at timestep t

        # Vocab projection once per time block at M = T_BLK*BT (MXU-efficient),
        # single lane-dense (V = multiple of 128) writeback.
        logits = (jnp.dot(top_sc[...], wout_ref[...],
                          preferred_element_type=jnp.float32) + bout_ref[...])
        logits_ref[...] = logits.reshape(t_blk, bt, logits.shape[-1])

        # Flush the carried hidden state once per batch tile.
        @pl.when(tb == pl.num_programs(1) - 1)
        def _():
            hfin_ref[...] = h_state[...]

    return kernel


def gru_forward(ids, h0, params, *, batch_tile=None, time_block=None):
    """ids: (S, B) int32 tokens; h0: (L, B, H) f32.
    Returns (logits (S, B, V) f32, h_final (L, B, H) f32)."""
    S, B = ids.shape
    L, _, H = h0.shape
    V = params["wout"].shape[1]
    E = params["emb"].shape[1]
    BT = batch_tile or B        # whole batch by default (>=16 for bf16 min tile)
    TB = time_block or S        # whole sequence per grid step by default
    assert B % BT == 0 and S % TB == 0
    nbt, ntb = B // BT, S // TB

    # Embedding lookup (gather) + dropout(identity) in the wrapper; bf16 halves DMA.
    x_emb = jnp.take(params["emb"], ids, axis=0).astype(jnp.bfloat16)   # (S, B, E)

    kernel = _make_gru_kernel(L, H, TB, BT, E)

    def const(shape):
        return pl.BlockSpec(shape, lambda bt, tb, _n=len(shape): (0,) * _n)

    in_specs = [
        pl.BlockSpec((TB, BT, E), lambda bt, tb: (tb, bt, 0)),   # x_emb
        pl.BlockSpec((L, BT, H), lambda bt, tb: (0, bt, 0)),     # h0
    ]
    inputs = [x_emb, h0]
    for lp in params["layers"]:
        din = lp["wall"].shape[0]
        in_specs += [const((din, 3 * H)), const((H, 2 * H)), const((1, 2 * H)),
                     const((H, H)), const((1, H))]
        inputs += [lp["wall"], lp["urz"], lp["brz"], lp["uh"], lp["buh"]]
    in_specs += [const((H, V)), const((1, V))]
    inputs += [params["wout"], params["bout"]]

    out_shape = (jax.ShapeDtypeStruct((S, B, V), jnp.float32),
                 jax.ShapeDtypeStruct((L, B, H), jnp.float32))
    out_specs = (pl.BlockSpec((TB, BT, V), lambda bt, tb: (tb, bt, 0)),
                 pl.BlockSpec((L, BT, H), lambda bt, tb: (0, bt, 0)))

    logits, h_final = pl.pallas_call(
        kernel,
        out_shape=out_shape,
        grid=(nbt, ntb),
        in_specs=in_specs,
        out_specs=out_specs,
        scratch_shapes=[pltpu.VMEM((L, BT, H), jnp.float32),
                        pltpu.VMEM((TB * BT, 3 * H), jnp.float32),
                        pltpu.VMEM((TB * BT, H), jnp.bfloat16)],
        compiler_params=pltpu.CompilerParams(
            dimension_semantics=("parallel", "arbitrary")),
    )(*inputs)
    return logits, h_final


def init_gru_params(key, vocab, emb, hidden, num_layers):
    """Synthetic init matching the PyTorch module's distributions.
    Weights stored already transposed to (in, out); matmul weights cast to bf16."""
    keys = jax.random.split(key, 2 + num_layers)
    dl = 1.0 / math.sqrt(hidden)

    def u(k, shape, lim):
        return jax.random.uniform(k, shape, jnp.float32, -lim, lim)

    emb_table = u(keys[0], (vocab, emb), 0.1)
    layers = []
    for j in range(num_layers):
        din = emb if j == 0 else hidden
        ks = jax.random.split(keys[2 + j], 9)
        wr, wz, wh = u(ks[0], (din, hidden), dl), u(ks[1], (din, hidden), dl), u(ks[2], (din, hidden), dl)
        ur, uz, uh = u(ks[3], (hidden, hidden), dl), u(ks[4], (hidden, hidden), dl), u(ks[5], (hidden, hidden), dl)
        br, bz, bh = u(ks[6], (1, hidden), dl), u(ks[7], (1, hidden), dl), u(ks[8], (1, hidden), dl)
        layers.append(dict(
            wall=jnp.concatenate([wr, wz, wh], axis=1).astype(jnp.bfloat16),  # (Din, 3H)
            urz=jnp.concatenate([ur, uz], axis=1).astype(jnp.bfloat16),       # (H, 2H)
            brz=jnp.concatenate([br, bz], axis=1),                            # (1, 2H) f32
            uh=uh.astype(jnp.bfloat16),                                       # (H, H)
            buh=bh,                                                           # (1, H) f32
        ))
    wout = u(keys[1], (hidden, vocab), 0.1).astype(jnp.bfloat16)
    bout = jnp.zeros((1, vocab), jnp.float32)
    return dict(emb=emb_table, layers=layers, wout=wout, bout=bout)


def gru_reference(ids, h0, params):
    """Pure-JAX reference with identical bf16 casts (matches the PyTorch module's
    forward semantics; dropout = identity)."""
    x_seq = jnp.take(params["emb"], ids, axis=0).astype(jnp.bfloat16)
    S, B, _ = x_seq.shape
    L, _, H = h0.shape
    h = h0
    logits = []
    for t in range(S):
        x = x_seq[t]
        new_h = []
        for j, lp in enumerate(params["layers"]):
            h_prev = h[j]
            xw = jnp.dot(x, lp["wall"], preferred_element_type=jnp.float32)
            hu = jnp.dot(h_prev.astype(jnp.bfloat16), lp["urz"],
                         preferred_element_type=jnp.float32) + lp["brz"]
            r = _sigmoid(xw[:, :H] + hu[:, :H])
            z = _sigmoid(xw[:, H:2 * H] + hu[:, H:2 * H])
            h_tilde = jnp.tanh(
                xw[:, 2 * H:]
                + jnp.dot((r * h_prev).astype(jnp.bfloat16), lp["uh"],
                          preferred_element_type=jnp.float32) + lp["buh"])
            h_new = (1.0 - z) * h_prev + z * h_tilde
            new_h.append(h_new)
            x = h_new.astype(jnp.bfloat16)
        h = jnp.stack(new_h)
        logits.append(jnp.dot(x, params["wout"],
                              preferred_element_type=jnp.float32) + params["bout"])
    return jnp.stack(logits), h


if __name__ == "__main__":
    SEQ, BATCH, EMB, HID, VOCAB, LAYERS = 8, 16, 128, 128, 256, 2

    key = jax.random.PRNGKey(0)
    k_ids, k_par = jax.random.split(key)

    ids = jax.random.randint(k_ids, (SEQ, BATCH), 0, VOCAB, dtype=jnp.int32)
    h0 = jnp.zeros((LAYERS, BATCH, HID), jnp.float32)       # GRU.init_hidden()
    params = init_gru_params(k_par, VOCAB, EMB, HID, LAYERS)

    # batch_tile = full batch (bf16 min tile); time_block = 4 -> grid (1, 2),
    # exercising the carried-hidden-state path across the "arbitrary" time axis.
    logits, h_final = gru_forward(ids, h0, params, batch_tile=16, time_block=4)
    jax.block_until_ready((logits, h_final))

    assert logits.shape == (SEQ, BATCH, VOCAB) and logits.dtype == jnp.float32
    assert h_final.shape == (LAYERS, BATCH, HID)
    assert bool(jnp.all(jnp.isfinite(logits))) and bool(jnp.all(jnp.isfinite(h_final)))

    ref_logits, ref_h = gru_reference(ids, h0, params)
    err_l = float(jnp.max(jnp.abs(logits - ref_logits)))
    err_h = float(jnp.max(jnp.abs(h_final - ref_h)))
    assert err_l < 2e-2 and err_h < 2e-2, (err_l, err_h)

    print("KERNEL_OK")
</pallas_src>

<mosaic_0001>
module attributes {stable_mosaic.version = 11 : i64} {
  func.func @kernel(%arg0: i32, %arg1: i32, %arg2: memref<4x16x128xbf16, #tpu.memory_space<vmem>>, %arg3: memref<2x16x128xf32, #tpu.memory_space<vmem>>, %arg4: memref<128x384xbf16, #tpu.memory_space<vmem>>, %arg5: memref<128x256xbf16, #tpu.memory_space<vmem>>, %arg6: memref<1x256xf32, #tpu.memory_space<vmem>>, %arg7: memref<128x128xbf16, #tpu.memory_space<vmem>>, %arg8: memref<1x128xf32, #tpu.memory_space<vmem>>, %arg9: memref<128x384xbf16, #tpu.memory_space<vmem>>, %arg10: memref<128x256xbf16, #tpu.memory_space<vmem>>, %arg11: memref<1x256xf32, #tpu.memory_space<vmem>>, %arg12: memref<128x128xbf16, #tpu.memory_space<vmem>>, %arg13: memref<1x128xf32, #tpu.memory_space<vmem>>, %arg14: memref<128x256xbf16, #tpu.memory_space<vmem>>, %arg15: memref<1x256xf32, #tpu.memory_space<vmem>>, %arg16: memref<4x16x256xf32, #tpu.memory_space<vmem>>, %arg17: memref<2x16x128xf32, #tpu.memory_space<vmem>>, %arg18: memref<2x16x128xf32, #tpu.memory_space<vmem>>, %arg19: memref<64x384xf32, #tpu.memory_space<vmem>>, %arg20: memref<64x128xbf16, #tpu.memory_space<vmem>>) attributes {dimension_semantics = [#tpu.dimension_semantics<parallel>, #tpu.dimension_semantics<arbitrary>], iteration_bounds = array<i64: 1, 2>, scalar_prefetch = 0 : i64, scratch_operands = 3 : i64, tpu.core_type = #tpu.core_type<tc>, window_params = [{transform_indices = @transform_0, window_bounds = array<i64: 4, 16, 128>}, {transform_indices = @transform_1, window_bounds = array<i64: 2, 16, 128>}, {pipeline_mode = #tpu.pipeline_mode<synchronous>, transform_indices = @transform_2, window_bounds = array<i64: 128, 384>}, {pipeline_mode = #tpu.pipeline_mode<synchronous>, transform_indices = @transform_3, window_bounds = array<i64: 128, 256>}, {pipeline_mode = #tpu.pipeline_mode<synchronous>, transform_indices = @transform_4, window_bounds = array<i64: 1, 256>}, {pipeline_mode = #tpu.pipeline_mode<synchronous>, transform_indices = @transform_5, window_bounds = array<i64: 128, 128>}, {pipeline_mode = #tpu.pipeline_mode<synchronous>, transform_indices = @transform_6, window_bounds = array<i64: 1, 128>}, {pipeline_mode = #tpu.pipeline_mode<synchronous>, transform_indices = @transform_7, window_bounds = array<i64: 128, 384>}, {pipeline_mode = #tpu.pipeline_mode<synchronous>, transform_indices = @transform_8, window_bounds = array<i64: 128, 256>}, {pipeline_mode = #tpu.pipeline_mode<synchronous>, transform_indices = @transform_9, window_bounds = array<i64: 1, 256>}, {pipeline_mode = #tpu.pipeline_mode<synchronous>, transform_indices = @transform_10, window_bounds = array<i64: 128, 128>}, {pipeline_mode = #tpu.pipeline_mode<synchronous>, transform_indices = @transform_11, window_bounds = array<i64: 1, 128>}, {pipeline_mode = #tpu.pipeline_mode<synchronous>, transform_indices = @transform_12, window_bounds = array<i64: 128, 256>}, {pipeline_mode = #tpu.pipeline_mode<synchronous>, transform_indices = @transform_13, window_bounds = array<i64: 1, 256>}, {transform_indices = @transform_14, window_bounds = array<i64: 4, 16, 256>}, {transform_indices = @transform_15, window_bounds = array<i64: 2, 16, 128>}]} {
    %c0_i32 = arith.constant 0 : i32
    %0 = arith.cmpi eq, %arg1, %c0_i32 : i32
    %1 = arith.extui %0 : i1 to i32
    %c0_i32_0 = arith.constant 0 : i32
    %2 = arith.cmpi ne, %1, %c0_i32_0 : i32
    scf.if %2 {
      %c0_218 = arith.constant 0 : index
      %c0_219 = arith.constant 0 : index
      %c0_220 = arith.constant 0 : index
      %395 = vector.load %arg3[%c0_218, %c0_219, %c0_220] : memref<2x16x128xf32, #tpu.memory_space<vmem>>, vector<2x16x128xf32>
      %c0_221 = arith.constant 0 : index
      %c0_222 = arith.constant 0 : index
      %c0_223 = arith.constant 0 : index
      %396 = vector.load %arg18[%c0_221, %c0_222, %c0_223] : memref<2x16x128xf32, #tpu.memory_space<vmem>>, vector<2x16x128xf32>
      tpu.vector_store %arg18[%c0_221, %c0_222, %c0_223], %395 {strides = array<i32>} : memref<2x16x128xf32, #tpu.memory_space<vmem>>, vector<2x16x128xf32>,
    } else {
    }
    %c0 = arith.constant 0 : index
    %c0_1 = arith.constant 0 : index
    %c0_2 = arith.constant 0 : index
    %3 = vector.load %arg2[%c0, %c0_1, %c0_2] : memref<4x16x128xbf16, #tpu.memory_space<vmem>>, vector<4x16x128xbf16>
    %4 = vector.shape_cast %3 : vector<4x16x128xbf16> to vector<64x128xbf16>
    %c0_3 = arith.constant 0 : index
    %c0_4 = arith.constant 0 : index
    %5 = vector.load %arg4[%c0_3, %c0_4] : memref<128x384xbf16, #tpu.memory_space<vmem>>, vector<128x384xbf16>
    %cst = arith.constant dense<0.000000e+00> : vector<64x384xf32>
    %6 = tpu.matmul %4, %5, %cst {dimension_numbers = #tpu.dot_dimension_numbers<[1], [0], [0], [1], [0, 0, 1, 1], [], []>} : vector<64x128xbf16>, vector<128x384xbf16>, vector<64x384xf32> -> vector<64x384xf32>
    %c0_5 = arith.constant 0 : index
    %c0_6 = arith.constant 0 : index
    %7 = vector.load %arg19[%c0_5, %c0_6] : memref<64x384xf32, #tpu.memory_space<vmem>>, vector<64x384xf32>
    tpu.vector_store %arg19[%c0_5, %c0_6], %6 {strides = array<i32>} : memref<64x384xf32, #tpu.memory_space<vmem>>, vector<64x384xf32>,
    %c0_7 = arith.constant 0 : index
    %c0_8 = arith.constant 0 : index
    %c0_9 = arith.constant 0 : index
    %8 = vector.load %arg18[%c0_7, %c0_8, %c0_9] : memref<2x16x128xf32, #tpu.memory_space<vmem>>, vector<1x16x128xf32>
    %9 = vector.shape_cast %8 : vector<1x16x128xf32> to vector<16x128xf32>
    %10 = arith.truncf %9 : vector<16x128xf32> to vector<16x128xbf16>
    %c0_10 = arith.constant 0 : index
    %c0_11 = arith.constant 0 : index
    %11 = vector.load %arg19[%c0_10, %c0_11] : memref<64x384xf32, #tpu.memory_space<vmem>>, vector<16x384xf32>
    %c0_12 = arith.constant 0 : index
    %c0_13 = arith.constant 0 : index
    %12 = vector.load %arg5[%c0_12, %c0_13] : memref<128x256xbf16, #tpu.memory_space<vmem>>, vector<128x256xbf16>
    %cst_14 = arith.constant dense<0.000000e+00> : vector<16x256xf32>
    %13 = tpu.matmul %10, %12, %cst_14 {dimension_numbers = #tpu.dot_dimension_numbers<[1], [0], [0], [1], [0, 0, 1, 1], [], []>} : vector<16x128xbf16>, vector<128x256xbf16>, vector<16x256xf32> -> vector<16x256xf32>
    %c0_15 = arith.constant 0 : index
    %c0_16 = arith.constant 0 : index
    %14 = vector.load %arg6[%c0_15, %c0_16] : memref<1x256xf32, #tpu.memory_space<vmem>>, vector<1x256xf32>
    %15 = vector.broadcast %14 : vector<1x256xf32> to vector<16x256xf32>
    %16 = arith.addf %13, %15 : vector<16x256xf32>
    %17 = vector.extract_strided_slice %11 {offsets = [0, 0], sizes = [16, 128], strides = [1, 1]} : vector<16x384xf32> to vector<16x128xf32>
    %18 = vector.extract_strided_slice %16 {offsets = [0, 0], sizes = [16, 128], strides = [1, 1]} : vector<16x256xf32> to vector<16x128xf32>
    %19 = arith.addf %17, %18 : vector<16x128xf32>
    %cst_17 = arith.constant 0.000000e+00 : f32
    %20 = vector.broadcast %cst_17 : f32 to vector<16x128xf32>
    %21 = arith.subf %20, %19 : vector<16x128xf32>
    %22 = math.exp %21 : vector<16x128xf32>
    %cst_18 = arith.constant 1.000000e+00 : f32
    %23 = vector.broadcast %cst_18 : f32 to vector<16x128xf32>
    %24 = arith.addf %23, %22 : vector<16x128xf32>
    %cst_19 = arith.constant 1.000000e+00 : f32
    %25 = vector.broadcast %cst_19 : f32 to vector<16x128xf32>
    %26 = arith.divf %25, %24 : vector<16x128xf32>
    %27 = vector.extract_strided_slice %11 {offsets = [0, 128], sizes = [16, 128], strides = [1, 1]} : vector<16x384xf32> to vector<16x128xf32>
    %28 = vector.extract_strided_slice %16 {offsets = [0, 128], sizes = [16, 128], strides = [1, 1]} : vector<16x256xf32> to vector<16x128xf32>
    %29 = arith.addf %27, %28 : vector<16x128xf32>
    %cst_20 = arith.constant 0.000000e+00 : f32
    %30 = vector.broadcast %cst_20 : f32 to vector<16x128xf32>
    %31 = arith.subf %30, %29 : vector<16x128xf32>
    %32 = math.exp %31 : vector<16x128xf32>
    %cst_21 = arith.constant 1.000000e+00 : f32
    %33 = vector.broadcast %cst_21 : f32 to vector<16x128xf32>
    %34 = arith.addf %33, %32 : vector<16x128xf32>
    %cst_22 = arith.constant 1.000000e+00 : f32
    %35 = vector.broadcast %cst_22 : f32 to vector<16x128xf32>
    %36 = arith.divf %35, %34 : vector<16x128xf32>
    %37 = arith.mulf %26, %9 : vector<16x128xf32>
    %38 = arith.truncf %37 : vector<16x128xf32> to vector<16x128xbf16>
    %39 = vector.extract_strided_slice %11 {offsets = [0, 256], sizes = [16, 128], strides = [1, 1]} : vector<16x384xf32> to vector<16x128xf32>
    %c0_23 = arith.constant 0 : index
    %c0_24 = arith.constant 0 : index
    %40 = vector.load %arg7[%c0_23, %c0_24] : memref<128x128xbf16, #tpu.memory_space<vmem>>, vector<128x128xbf16>
    %cst_25 = arith.constant dense<0.000000e+00> : vector<16x128xf32>
    %41 = tpu.matmul %38, %40, %cst_25 {dimension_numbers = #tpu.dot_dimension_numbers<[1], [0], [0], [1], [0, 0, 1, 1], [], []>} : vector<16x128xbf16>, vector<128x128xbf16>, vector<16x128xf32> -> vector<16x128xf32>
    %42 = arith.addf %39, %41 : vector<16x128xf32>
    %c0_26 = arith.constant 0 : index
    %c0_27 = arith.constant 0 : index
    %43 = vector.load %arg8[%c0_26, %c0_27] : memref<1x128xf32, #tpu.memory_space<vmem>>, vector<1x128xf32>
    %44 = vector.broadcast %43 : vector<1x128xf32> to vector<16x128xf32>
    %45 = arith.addf %42, %44 : vector<16x128xf32>
    %46 = math.tanh %45 : vector<16x128xf32>
    %47 = arith.subf %46, %9 : vector<16x128xf32>
    %48 = arith.mulf %36, %47 : vector<16x128xf32>
    %49 = arith.addf %9, %48 : vector<16x128xf32>
    %c0_28 = arith.constant 0 : index
    %c0_29 = arith.constant 0 : index
    %c0_30 = arith.constant 0 : index
    %50 = vector.load %arg18[%c0_28, %c0_29, %c0_30] : memref<2x16x128xf32, #tpu.memory_space<vmem>>, vector<1x16x128xf32>
    %51 = vector.shape_cast %50 : vector<1x16x128xf32> to vector<16x128xf32>
    %52 = vector.shape_cast %49 : vector<16x128xf32> to vector<1x16x128xf32>
    tpu.vector_store %arg18[%c0_28, %c0_29, %c0_30], %52 {strides = array<i32>} : memref<2x16x128xf32, #tpu.memory_space<vmem>>, vector<1x16x128xf32>,
    %53 = arith.truncf %49 : vector<16x128xf32> to vector<16x128xbf16>
    %c1 = arith.constant 1 : index
    %c0_31 = arith.constant 0 : index
    %c0_32 = arith.constant 0 : index
    %54 = vector.load %arg18[%c1, %c0_31, %c0_32] : memref<2x16x128xf32, #tpu.memory_space<vmem>>, vector<1x16x128xf32>
    %55 = vector.shape_cast %54 : vector<1x16x128xf32> to vector<16x128xf32>
    %56 = arith.truncf %55 : vector<16x128xf32> to vector<16x128xbf16>
    %c0_33 = arith.constant 0 : index
    %c0_34 = arith.constant 0 : index
    %57 = vector.load %arg9[%c0_33, %c0_34] : memref<128x384xbf16, #tpu.memory_space<vmem>>, vector<128x384xbf16>
    %cst_35 = arith.constant dense<0.000000e+00> : vector<16x384xf32>
    %58 = tpu.matmul %53, %57, %cst_35 {dimension_numbers = #tpu.dot_dimension_numbers<[1], [0], [0], [1], [0, 0, 1, 1], [], []>} : vector<16x128xbf16>, vector<128x384xbf16>, vector<16x384xf32> -> vector<16x384xf32>
    %c0_36 = arith.constant 0 : index
    %c0_37 = arith.constant 0 : index
    %59 = vector.load %arg10[%c0_36, %c0_37] : memref<128x256xbf16, #tpu.memory_space<vmem>>, vector<128x256xbf16>
    %cst_38 = arith.constant dense<0.000000e+00> : vector<16x256xf32>
    %60 = tpu.matmul %56, %59, %cst_38 {dimension_numbers = #tpu.dot_dimension_numbers<[1], [0], [0], [1], [0, 0, 1, 1], [], []>} : vector<16x128xbf16>, vector<128x256xbf16>, vector<16x256xf32> -> vector<16x256xf32>
    %c0_39 = arith.constant 0 : index
    %c0_40 = arith.constant 0 : index
    %61 = vector.load %arg11[%c0_39, %c0_40] : memref<1x256xf32, #tpu.memory_space<vmem>>, vector<1x256xf32>
    %62 = vector.broadcast %61 : vector<1x256xf32> to vector<16x256xf32>
    %63 = arith.addf %60, %62 : vector<16x256xf32>
    %64 = vector.extract_strided_slice %58 {offsets = [0, 0], sizes = [16, 128], strides = [1, 1]} : vector<16x384xf32> to vector<16x128xf32>
    %65 = vector.extract_strided_slice %63 {offsets = [0, 0], sizes = [16, 128], strides = [1, 1]} : vector<16x256xf32> to vector<16x128xf32>
    %66 = arith.addf %64, %65 : vector<16x128xf32>
    %cst_41 = arith.constant 0.000000e+00 : f32
    %67 = vector.broadcast %cst_41 : f32 to vector<16x128xf32>
    %68 = arith.subf %67, %66 : vector<16x128xf32>
    %69 = math.exp %68 : vector<16x128xf32>
    %cst_42 = arith.constant 1.000000e+00 : f32
    %70 = vector.broadcast %cst_42 : f32 to vector<16x128xf32>
    %71 = arith.addf %70, %69 : vector<16x128xf32>
    %cst_43 = arith.constant 1.000000e+00 : f32
    %72 = vector.broadcast %cst_43 : f32 to vector<16x128xf32>
    %73 = arith.divf %72, %71 : vector<16x128xf32>
    %74 = vector.extract_strided_slice %58 {offsets = [0, 128], sizes = [16, 128], strides = [1, 1]} : vector<16x384xf32> to vector<16x128xf32>
    %75 = vector.extract_strided_slice %63 {offsets = [0, 128], sizes = [16, 128], strides = [1, 1]} : vector<16x256xf32> to vector<16x128xf32>
    %76 = arith.addf %74, %75 : vector<16x128xf32>
    %cst_44 = arith.constant 0.000000e+00 : f32
    %77 = vector.broadcast %cst_44 : f32 to vector<16x128xf32>
    %78 = arith.subf %77, %76 : vector<16x128xf32>
    %79 = math.exp %78 : vector<16x128xf32>
    %cst_45 = arith.constant 1.000000e+00 : f32
    %80 = vector.broadcast %cst_45 : f32 to vector<16x128xf32>
    %81 = arith.addf %80, %79 : vector<16x128xf32>
    %cst_46 = arith.constant 1.000000e+00 : f32
    %82 = vector.broadcast %cst_46 : f32 to vector<16x128xf32>
    %83 = arith.divf %82, %81 : vector<16x128xf32>
    %84 = arith.mulf %73, %55 : vector<16x128xf32>
    %85 = arith.truncf %84 : vector<16x128xf32> to vector<16x128xbf16>
    %86 = vector.extract_strided_slice %58 {offsets = [0, 256], sizes = [16, 128], strides = [1, 1]} : vector<16x384xf32> to vector<16x128xf32>
    %c0_47 = arith.constant 0 : index
    %c0_48 = arith.constant 0 : index
    %87 = vector.load %arg12[%c0_47, %c0_48] : memref<128x128xbf16, #tpu.memory_space<vmem>>, vector<128x128xbf16>
    %cst_49 = arith.constant dense<0.000000e+00> : vector<16x128xf32>
    %88 = tpu.matmul %85, %87, %cst_49 {dimension_numbers = #tpu.dot_dimension_numbers<[1], [0], [0], [1], [0, 0, 1, 1], [], []>} : vector<16x128xbf16>, vector<128x128xbf16>, vector<16x128xf32> -> vector<16x128xf32>
    %89 = arith.addf %86, %88 : vector<16x128xf32>
    %c0_50 = arith.constant 0 : index
    %c0_51 = arith.constant 0 : index
    %90 = vector.load %arg13[%c0_50, %c0_51] : memref<1x128xf32, #tpu.memory_space<vmem>>, vector<1x128xf32>
    %91 = vector.broadcast %90 : vector<1x128xf32> to vector<16x128xf32>
    %92 = arith.addf %89, %91 : vector<16x128xf32>
    %93 = math.tanh %92 : vector<16x128xf32>
    %94 = arith.subf %93, %55 : vector<16x128xf32>
    %95 = arith.mulf %83, %94 : vector<16x128xf32>
    %96 = arith.addf %55, %95 : vector<16x128xf32>
    %c1_52 = arith.constant 1 : index
    %c0_53 = arith.constant 0 : index
    %c0_54 = arith.constant 0 : index
    %97 = vector.load %arg18[%c1_52, %c0_53, %c0_54] : memref<2x16x128xf32, #tpu.memory_space<vmem>>, vector<1x16x128xf32>
    %98 = vector.shape_cast %97 : vector<1x16x128xf32> to vector<16x128xf32>
    %99 = vector.shape_cast %96 : vector<16x128xf32> to vector<1x16x128xf32>
    tpu.vector_store %arg18[%c1_52, %c0_53, %c0_54], %99 {strides = array<i32>} : memref<2x16x128xf32, #tpu.memory_space<vmem>>, vector<1x16x128xf32>,
    %100 = arith.truncf %96 : vector<16x128xf32> to vector<16x128xbf16>
    %c0_55 = arith.constant 0 : index
    %c0_56 = arith.constant 0 : index
    %101 = vector.load %arg20[%c0_55, %c0_56] : memref<64x128xbf16, #tpu.memory_space<vmem>>, vector<16x128xbf16>
    tpu.vector_store %arg20[%c0_55, %c0_56], %100 {strides = array<i32>} : memref<64x128xbf16, #tpu.memory_space<vmem>>, vector<16x128xbf16>,
    %c0_57 = arith.constant 0 : index
    %c0_58 = arith.constant 0 : index
    %c0_59 = arith.constant 0 : index
    %102 = vector.load %arg18[%c0_57, %c0_58, %c0_59] : memref<2x16x128xf32, #tpu.memory_space<vmem>>, vector<1x16x128xf32>
    %103 = vector.shape_cast %102 : vector<1x16x128xf32> to vector<16x128xf32>
    %104 = arith.truncf %103 : vector<16x128xf32> to vector<16x128xbf16>
    %c16 = arith.constant 16 : index
    %c0_60 = arith.constant 0 : index
    %105 = vector.load %arg19[%c16, %c0_60] : memref<64x384xf32, #tpu.memory_space<vmem>>, vector<16x384xf32>
    %c0_61 = arith.constant 0 : index
    %c0_62 = arith.constant 0 : index
    %106 = vector.load %arg5[%c0_61, %c0_62] : memref<128x256xbf16, #tpu.memory_space<vmem>>, vector<128x256xbf16>
    %cst_63 = arith.constant dense<0.000000e+00> : vector<16x256xf32>
    %107 = tpu.matmul %104, %106, %cst_63 {dimension_numbers = #tpu.dot_dimension_numbers<[1], [0], [0], [1], [0, 0, 1, 1], [], []>} : vector<16x128xbf16>, vector<128x256xbf16>, vector<16x256xf32> -> vector<16x256xf32>
    %c0_64 = arith.constant 0 : index
    %c0_65 = arith.constant 0 : index
    %108 = vector.load %arg6[%c0_64, %c0_65] : memref<1x256xf32, #tpu.memory_space<vmem>>, vector<1x256xf32>
    %109 = vector.broadcast %108 : vector<1x256xf32> to vector<16x256xf32>
    %110 = arith.addf %107, %109 : vector<16x256xf32>
    %111 = vector.extract_strided_slice %105 {offsets = [0, 0], sizes = [16, 128], strides = [1, 1]} : vector<16x384xf32> to vector<16x128xf32>
    %112 = vector.extract_strided_slice %110 {offsets = [0, 0], sizes = [16, 128], strides = [1, 1]} : vector<16x256xf32> to vector<16x128xf32>
    %113 = arith.addf %111, %112 : vector<16x128xf32>
    %cst_66 = arith.constant 0.000000e+00 : f32
    %114 = vector.broadcast %cst_66 : f32 to vector<16x128xf32>
    %115 = arith.subf %114, %113 : vector<16x128xf32>
    %116 = math.exp %115 : vector<16x128xf32>
    %cst_67 = arith.constant 1.000000e+00 : f32
    %117 = vector.broadcast %cst_67 : f32 to vector<16x128xf32>
    %118 = arith.addf %117, %116 : vector<16x128xf32>
    %cst_68 = arith.constant 1.000000e+00 : f32
    %119 = vector.broadcast %cst_68 : f32 to vector<16x128xf32>
    %120 = arith.divf %119, %118 : vector<16x128xf32>
    %121 = vector.extract_strided_slice %105 {offsets = [0, 128], sizes = [16, 128], strides = [1, 1]} : vector<16x384xf32> to vector<16x128xf32>
    %122 = vector.extract_strided_slice %110 {offsets = [0, 128], sizes = [16, 128], strides = [1, 1]} : vector<16x256xf32> to vector<16x128xf32>
    %123 = arith.addf %121, %122 : vector<16x128xf32>
    %cst_69 = arith.constant 0.000000e+00 : f32
    %124 = vector.broadcast %cst_69 : f32 to vector<16x128xf32>
    %125 = arith.subf %124, %123 : vector<16x128xf32>
    %126 = math.exp %125 : vector<16x128xf32>
    %cst_70 = arith.constant 1.000000e+00 : f32
    %127 = vector.broadcast %cst_70 : f32 to vector<16x128xf32>
    %128 = arith.addf %127, %126 : vector<16x128xf32>
    %cst_71 = arith.constant 1.000000e+00 : f32
    %129 = vector.broadcast %cst_71 : f32 to vector<16x128xf32>
    %130 = arith.divf %129, %128 : vector<16x128xf32>
    %131 = arith.mulf %120, %103 : vector<16x128xf32>
    %132 = arith.truncf %131 : vector<16x128xf32> to vector<16x128xbf16>
    %133 = vector.extract_strided_slice %105 {offsets = [0, 256], sizes = [16, 128], strides = [1, 1]} : vector<16x384xf32> to vector<16x128xf32>
    %c0_72 = arith.constant 0 : index
    %c0_73 = arith.constant 0 : index
    %134 = vector.load %arg7[%c0_72, %c0_73] : memref<128x128xbf16, #tpu.memory_space<vmem>>, vector<128x128xbf16>
    %cst_74 = arith.constant dense<0.000000e+00> : vector<16x128xf32>
    %135 = tpu.matmul %132, %134, %cst_74 {dimension_numbers = #tpu.dot_dimension_numbers<[1], [0], [0], [1], [0, 0, 1, 1], [], []>} : vector<16x128xbf16>, vector<128x128xbf16>, vector<16x128xf32> -> vector<16x128xf32>
    %136 = arith.addf %133, %135 : vector<16x128xf32>
    %c0_75 = arith.constant 0 : index
    %c0_76 = arith.constant 0 : index
    %137 = vector.load %arg8[%c0_75, %c0_76] : memref<1x128xf32, #tpu.memory_space<vmem>>, vector<1x128xf32>
    %138 = vector.broadcast %137 : vector<1x128xf32> to vector<16x128xf32>
    %139 = arith.addf %136, %138 : vector<16x128xf32>
    %140 = math.tanh %139 : vector<16x128xf32>
    %141 = arith.subf %140, %103 : vector<16x128xf32>
    %142 = arith.mulf %130, %141 : vector<16x128xf32>
    %143 = arith.addf %103, %142 : vector<16x128xf32>
    %c0_77 = arith.constant 0 : index
    %c0_78 = arith.constant 0 : index
    %c0_79 = arith.constant 0 : index
    %144 = vector.load %arg18[%c0_77, %c0_78, %c0_79] : memref<2x16x128xf32, #tpu.memory_space<vmem>>, vector<1x16x128xf32>
    %145 = vector.shape_cast %144 : vector<1x16x128xf32> to vector<16x128xf32>
    %146 = vector.shape_cast %143 : vector<16x128xf32> to vector<1x16x128xf32>
    tpu.vector_store %arg18[%c0_77, %c0_78, %c0_79], %146 {strides = array<i32>} : memref<2x16x128xf32, #tpu.memory_space<vmem>>, vector<1x16x128xf32>,
    %147 = arith.truncf %143 : vector<16x128xf32> to vector<16x128xbf16>
    %c1_80 = arith.constant 1 : index
    %c0_81 = arith.constant 0 : index
    %c0_82 = arith.constant 0 : index
    %148 = vector.load %arg18[%c1_80, %c0_81, %c0_82] : memref<2x16x128xf32, #tpu.memory_space<vmem>>, vector<1x16x128xf32>
    %149 = vector.shape_cast %148 : vector<1x16x128xf32> to vector<16x128xf32>
    %150 = arith.truncf %149 : vector<16x128xf32> to vector<16x128xbf16>
    %c0_83 = arith.constant 0 : index
    %c0_84 = arith.constant 0 : index
    %151 = vector.load %arg9[%c0_83, %c0_84] : memref<128x384xbf16, #tpu.memory_space<vmem>>, vector<128x384xbf16>
    %cst_85 = arith.constant dense<0.000000e+00> : vector<16x384xf32>
    %152 = tpu.matmul %147, %151, %cst_85 {dimension_numbers = #tpu.dot_dimension_numbers<[1], [0], [0], [1], [0, 0, 1, 1], [], []>} : vector<16x128xbf16>, vector<128x384xbf16>, vector<16x384xf32> -> vector<16x384xf32>
    %c0_86 = arith.constant 0 : index
    %c0_87 = arith.constant 0 : index
    %153 = vector.load %arg10[%c0_86, %c0_87] : memref<128x256xbf16, #tpu.memory_space<vmem>>, vector<128x256xbf16>
    %cst_88 = arith.constant dense<0.000000e+00> : vector<16x256xf32>
    %154 = tpu.matmul %150, %153, %cst_88 {dimension_numbers = #tpu.dot_dimension_numbers<[1], [0], [0], [1], [0, 0, 1, 1], [], []>} : vector<16x128xbf16>, vector<128x256xbf16>, vector<16x256xf32> -> vector<16x256xf32>
    %c0_89 = arith.constant 0 : index
    %c0_90 = arith.constant 0 : index
    %155 = vector.load %arg11[%c0_89, %c0_90] : memref<1x256xf32, #tpu.memory_space<vmem>>, vector<1x256xf32>
    %156 = vector.broadcast %155 : vector<1x256xf32> to vector<16x256xf32>
    %157 = arith.addf %154, %156 : vector<16x256xf32>
    %158 = vector.extract_strided_slice %152 {offsets = [0, 0], sizes = [16, 128], strides = [1, 1]} : vector<16x384xf32> to vector<16x128xf32>
    %159 = vector.extract_strided_slice %157 {offsets = [0, 0], sizes = [16, 128], strides = [1, 1]} : vector<16x256xf32> to vector<16x128xf32>
    %160 = arith.addf %158, %159 : vector<16x128xf32>
    %cst_91 = arith.constant 0.000000e+00 : f32
    %161 = vector.broadcast %cst_91 : f32 to vector<16x128xf32>
    %162 = arith.subf %161, %160 : vector<16x128xf32>
    %163 = math.exp %162 : vector<16x128xf32>
    %cst_92 = arith.constant 1.000000e+00 : f32
    %164 = vector.broadcast %cst_92 : f32 to vector<16x128xf32>
    %165 = arith.addf %164, %163 : vector<16x128xf32>
    %cst_93 = arith.constant 1.000000e+00 : f32
    %166 = vector.broadcast %cst_93 : f32 to vector<16x128xf32>
    %167 = arith.divf %166, %165 : vector<16x128xf32>
    %168 = vector.extract_strided_slice %152 {offsets = [0, 128], sizes = [16, 128], strides = [1, 1]} : vector<16x384xf32> to vector<16x128xf32>
    %169 = vector.extract_strided_slice %157 {offsets = [0, 128], sizes = [16, 128], strides = [1, 1]} : vector<16x256xf32> to vector<16x128xf32>
    %170 = arith.addf %168, %169 : vector<16x128xf32>
    %cst_94 = arith.constant 0.000000e+00 : f32
    %171 = vector.broadcast %cst_94 : f32 to vector<16x128xf32>
    %172 = arith.subf %171, %170 : vector<16x128xf32>
    %173 = math.exp %172 : vector<16x128xf32>
    %cst_95 = arith.constant 1.000000e+00 : f32
    %174 = vector.broadcast %cst_95 : f32 to vector<16x128xf32>
    %175 = arith.addf %174, %173 : vector<16x128xf32>
    %cst_96 = arith.constant 1.000000e+00 : f32
    %176 = vector.broadcast %cst_96 : f32 to vector<16x128xf32>
    %177 = arith.divf %176, %175 : vector<16x128xf32>
    %178 = arith.mulf %167, %149 : vector<16x128xf32>
    %179 = arith.truncf %178 : vector<16x128xf32> to vector<16x128xbf16>
    %180 = vector.extract_strided_slice %152 {offsets = [0, 256], sizes = [16, 128], strides = [1, 1]} : vector<16x384xf32> to vector<16x128xf32>
    %c0_97 = arith.constant 0 : index
    %c0_98 = arith.constant 0 : index
    %181 = vector.load %arg12[%c0_97, %c0_98] : memref<128x128xbf16, #tpu.memory_space<vmem>>, vector<128x128xbf16>
    %cst_99 = arith.constant dense<0.000000e+00> : vector<16x128xf32>
    %182 = tpu.matmul %179, %181, %cst_99 {dimension_numbers = #tpu.dot_dimension_numbers<[1], [0], [0], [1], [0, 0, 1, 1], [], []>} : vector<16x128xbf16>, vector<128x128xbf16>, vector<16x128xf32> -> vector<16x128xf32>
    %183 = arith.addf %180, %182 : vector<16x128xf32>
    %c0_100 = arith.constant 0 : index
    %c0_101 = arith.constant 0 : index
    %184 = vector.load %arg13[%c0_100, %c0_101] : memref<1x128xf32, #tpu.memory_space<vmem>>, vector<1x128xf32>
    %185 = vector.broadcast %184 : vector<1x128xf32> to vector<16x128xf32>
    %186 = arith.addf %183, %185 : vector<16x128xf32>
    %187 = math.tanh %186 : vector<16x128xf32>
    %188 = arith.subf %187, %149 : vector<16x128xf32>
    %189 = arith.mulf %177, %188 : vector<16x128xf32>
    %190 = arith.addf %149, %189 : vector<16x128xf32>
    %c1_102 = arith.constant 1 : index
    %c0_103 = arith.constant 0 : index
    %c0_104 = arith.constant 0 : index
    %191 = vector.load %arg18[%c1_102, %c0_103, %c0_104] : memref<2x16x128xf32, #tpu.memory_space<vmem>>, vector<1x16x128xf32>
    %192 = vector.shape_cast %191 : vector<1x16x128xf32> to vector<16x128xf32>
    %193 = vector.shape_cast %190 : vector<16x128xf32> to vector<1x16x128xf32>
    tpu.vector_store %arg18[%c1_102, %c0_103, %c0_104], %193 {strides = array<i32>} : memref<2x16x128xf32, #tpu.memory_space<vmem>>, vector<1x16x128xf32>,
    %194 = arith.truncf %190 : vector<16x128xf32> to vector<16x128xbf16>
    %c16_105 = arith.constant 16 : index
    %c0_106 = arith.constant 0 : index
    %195 = vector.load %arg20[%c16_105, %c0_106] : memref<64x128xbf16, #tpu.memory_space<vmem>>, vector<16x128xbf16>
    tpu.vector_store %arg20[%c16_105, %c0_106], %194 {strides = array<i32>} : memref<64x128xbf16, #tpu.memory_space<vmem>>, vector<16x128xbf16>,
    %c0_107 = arith.constant 0 : index
    %c0_108 = arith.constant 0 : index
    %c0_109 = arith.constant 0 : index
    %196 = vector.load %arg18[%c0_107, %c0_108, %c0_109] : memref<2x16x128xf32, #tpu.memory_space<vmem>>, vector<1x16x128xf32>
    %197 = vector.shape_cast %196 : vector<1x16x128xf32> to vector<16x128xf32>
    %198 = arith.truncf %197 : vector<16x128xf32> to vector<16x128xbf16>
    %c32 = arith.constant 32 : index
    %c0_110 = arith.constant 0 : index
    %199 = vector.load %arg19[%c32, %c0_110] : memref<64x384xf32, #tpu.memory_space<vmem>>, vector<16x384xf32>
    %c0_111 = arith.constant 0 : index
    %c0_112 = arith.constant 0 : index
    %200 = vector.load %arg5[%c0_111, %c0_112] : memref<128x256xbf16, #tpu.memory_space<vmem>>, vector<128x256xbf16>
    %cst_113 = arith.constant dense<0.000000e+00> : vector<16x256xf32>
    %201 = tpu.matmul %198, %200, %cst_113 {dimension_numbers = #tpu.dot_dimension_numbers<[1], [0], [0], [1], [0, 0, 1, 1], [], []>} : vector<16x128xbf16>, vector<128x256xbf16>, vector<16x256xf32> -> vector<16x256xf32>
    %c0_114 = arith.constant 0 : index
    %c0_115 = arith.constant 0 : index
    %202 = vector.load %arg6[%c0_114, %c0_115] : memref<1x256xf32, #tpu.memory_space<vmem>>, vector<1x256xf32>
    %203 = vector.broadcast %202 : vector<1x256xf32> to vector<16x256xf32>
    %204 = arith.addf %201, %203 : vector<16x256xf32>
    %205 = vector.extract_strided_slice %199 {offsets = [0, 0], sizes = [16, 128], strides = [1, 1]} : vector<16x384xf32> to vector<16x128xf32>
    %206 = vector.extract_strided_slice %204 {offsets = [0, 0], sizes = [16, 128], strides = [1, 1]} : vector<16x256xf32> to vector<16x128xf32>
    %207 = arith.addf %205, %206 : vector<16x128xf32>
    %cst_116 = arith.constant 0.000000e+00 : f32
    %208 = vector.broadcast %cst_116 : f32 to vector<16x128xf32>
    %209 = arith.subf %208, %207 : vector<16x128xf32>
    %210 = math.exp %209 : vector<16x128xf32>
    %cst_117 = arith.constant 1.000000e+00 : f32
    %211 = vector.broadcast %cst_117 : f32 to vector<16x128xf32>
    %212 = arith.addf %211, %210 : vector<16x128xf32>
    %cst_118 = arith.constant 1.000000e+00 : f32
    %213 = vector.broadcast %cst_118 : f32 to vector<16x128xf32>
    %214 = arith.divf %213, %212 : vector<16x128xf32>
    %215 = vector.extract_strided_slice %199 {offsets = [0, 128], sizes = [16, 128], strides = [1, 1]} : vector<16x384xf32> to vector<16x128xf32>
    %216 = vector.extract_strided_slice %204 {offsets = [0, 128], sizes = [16, 128], strides = [1, 1]} : vector<16x256xf32> to vector<16x128xf32>
    %217 = arith.addf %215, %216 : vector<16x128xf32>
    %cst_119 = arith.constant 0.000000e+00 : f32
    %218 = vector.broadcast %cst_119 : f32 to vector<16x128xf32>
    %219 = arith.subf %218, %217 : vector<16x128xf32>
    %220 = math.exp %219 : vector<16x128xf32>
    %cst_120 = arith.constant 1.000000e+00 : f32
    %221 = vector.broadcast %cst_120 : f32 to vector<16x128xf32>
    %222 = arith.addf %221, %220 : vector<16x128xf32>
    %cst_121 = arith.constant 1.000000e+00 : f32
    %223 = vector.broadcast %cst_121 : f32 to vector<16x128xf32>
    %224 = arith.divf %223, %222 : vector<16x128xf32>
    %225 = arith.mulf %214, %197 : vector<16x128xf32>
    %226 = arith.truncf %225 : vector<16x128xf32> to vector<16x128xbf16>
    %227 = vector.extract_strided_slice %199 {offsets = [0, 256], sizes = [16, 128], strides = [1, 1]} : vector<16x384xf32> to vector<16x128xf32>
    %c0_122 = arith.constant 0 : index
    %c0_123 = arith.constant 0 : index
    %228 = vector.load %arg7[%c0_122, %c0_123] : memref<128x128xbf16, #tpu.memory_space<vmem>>, vector<128x128xbf16>
    %cst_124 = arith.constant dense<0.000000e+00> : vector<16x128xf32>
    %229 = tpu.matmul %226, %228, %cst_124 {dimension_numbers = #tpu.dot_dimension_numbers<[1], [0], [0], [1], [0, 0, 1, 1], [], []>} : vector<16x128xbf16>, vector<128x128xbf16>, vector<16x128xf32> -> vector<16x128xf32>
    %230 = arith.addf %227, %229 : vector<16x128xf32>
    %c0_125 = arith.constant 0 : index
    %c0_126 = arith.constant 0 : index
    %231 = vector.load %arg8[%c0_125, %c0_126] : memref<1x128xf32, #tpu.memory_space<vmem>>, vector<1x128xf32>
    %232 = vector.broadcast %231 : vector<1x128xf32> to vector<16x128xf32>
    %233 = arith.addf %230, %232 : vector<16x128xf32>
    %234 = math.tanh %233 : vector<16x128xf32>
    %235 = arith.subf %234, %197 : vector<16x128xf32>
    %236 = arith.mulf %224, %235 : vector<16x128xf32>
    %237 = arith.addf %197, %236 : vector<16x128xf32>
    %c0_127 = arith.constant 0 : index
    %c0_128 = arith.constant 0 : index
    %c0_129 = arith.constant 0 : index
    %238 = vector.load %arg18[%c0_127, %c0_128, %c0_129] : memref<2x16x128xf32, #tpu.memory_space<vmem>>, vector<1x16x128xf32>
    %239 = vector.shape_cast %238 : vector<1x16x128xf32> to vector<16x128xf32>
    %240 = vector.shape_cast %237 : vector<16x128xf32> to vector<1x16x128xf32>
    tpu.vector_store %arg18[%c0_127, %c0_128, %c0_129], %240 {strides = array<i32>} : memref<2x16x128xf32, #tpu.memory_space<vmem>>, vector<1x16x128xf32>,
    %241 = arith.truncf %237 : vector<16x128xf32> to vector<16x128xbf16>
    %c1_130 = arith.constant 1 : index
    %c0_131 = arith.constant 0 : index
    %c0_132 = arith.constant 0 : index
    %242 = vector.load %arg18[%c1_130, %c0_131, %c0_132] : memref<2x16x128xf32, #tpu.memory_space<vmem>>, vector<1x16x128xf32>
    %243 = vector.shape_cast %242 : vector<1x16x128xf32> to vector<16x128xf32>
    %244 = arith.truncf %243 : vector<16x128xf32> to vector<16x128xbf16>
    %c0_133 = arith.constant 0 : index
    %c0_134 = arith.constant 0 : index
    %245 = vector.load %arg9[%c0_133, %c0_134] : memref<128x384xbf16, #tpu.memory_space<vmem>>, vector<128x384xbf16>
    %cst_135 = arith.constant dense<0.000000e+00> : vector<16x384xf32>
    %246 = tpu.matmul %241, %245, %cst_135 {dimension_numbers = #tpu.dot_dimension_numbers<[1], [0], [0], [1], [0, 0, 1, 1], [], []>} : vector<16x128xbf16>, vector<128x384xbf16>, vector<16x384xf32> -> vector<16x384xf32>
    %c0_136 = arith.constant 0 : index
    %c0_137 = arith.constant 0 : index
    %247 = vector.load %arg10[%c0_136, %c0_137] : memref<128x256xbf16, #tpu.memory_space<vmem>>, vector<128x256xbf16>
    %cst_138 = arith.constant dense<0.000000e+00> : vector<16x256xf32>
    %248 = tpu.matmul %244, %247, %cst_138 {dimension_numbers = #tpu.dot_dimension_numbers<[1], [0], [0], [1], [0, 0, 1, 1], [], []>} : vector<16x128xbf16>, vector<128x256xbf16>, vector<16x256xf32> -> vector<16x256xf32>
    %c0_139 = arith.constant 0 : index
    %c0_140 = arith.constant 0 : index
    %249 = vector.load %arg11[%c0_139, %c0_140] : memref<1x256xf32, #tpu.memory_space<vmem>>, vector<1x256xf32>
    %250 = vector.broadcast %249 : vector<1x256xf32> to vector<16x256xf32>
    %251 = arith.addf %248, %250 : vector<16x256xf32>
    %252 = vector.extract_strided_slice %246 {offsets = [0, 0], sizes = [16, 128], strides = [1, 1]} : vector<16x384xf32> to vector<16x128xf32>
    %253 = vector.extract_strided_slice %251 {offsets = [0, 0], sizes = [16, 128], strides = [1, 1]} : vector<16x256xf32> to vector<16x128xf32>
    %254 = arith.addf %252, %253 : vector<16x128xf32>
    %cst_141 = arith.constant 0.000000e+00 : f32
    %255 = vector.broadcast %cst_141 : f32 to vector<16x128xf32>
    %256 = arith.subf %255, %254 : vector<16x128xf32>
    %257 = math.exp %256 : vector<16x128xf32>
    %cst_142 = arith.constant 1.000000e+00 : f32
    %258 = vector.broadcast %cst_142 : f32 to vector<16x128xf32>
    %259 = arith.addf %258, %257 : vector<16x128xf32>
    %cst_143 = arith.constant 1.000000e+00 : f32
    %260 = vector.broadcast %cst_143 : f32 to vector<16x128xf32>
    %261 = arith.divf %260, %259 : vector<16x128xf32>
    %262 = vector.extract_strided_slice %246 {offsets = [0, 128], sizes = [16, 128], strides = [1, 1]} : vector<16x384xf32> to vector<16x128xf32>
    %263 = vector.extract_strided_slice %251 {offsets = [0, 128], sizes = [16, 128], strides = [1, 1]} : vector<16x256xf32> to vector<16x128xf32>
    %264 = arith.addf %262, %263 : vector<16x128xf32>
    %cst_144 = arith.constant 0.000000e+00 : f32
    %265 = vector.broadcast %cst_144 : f32 to vector<16x128xf32>
    %266 = arith.subf %265, %264 : vector<16x128xf32>
    %267 = math.exp %266 : vector<16x128xf32>
    %cst_145 = arith.constant 1.000000e+00 : f32
    %268 = vector.broadcast %cst_145 : f32 to vector<16x128xf32>
    %269 = arith.addf %268, %267 : vector<16x128xf32>
    %cst_146 = arith.constant 1.000000e+00 : f32
    %270 = vector.broadcast %cst_146 : f32 to vector<16x128xf32>
    %271 = arith.divf %270, %269 : vector<16x128xf32>
    %272 = arith.mulf %261, %243 : vector<16x128xf32>
    %273 = arith.truncf %272 : vector<16x128xf32> to vector<16x128xbf16>
    %274 = vector.extract_strided_slice %246 {offsets = [0, 256], sizes = [16, 128], strides = [1, 1]} : vector<16x384xf32> to vector<16x128xf32>
    %c0_147 = arith.constant 0 : index
    %c0_148 = arith.constant 0 : index
    %275 = vector.load %arg12[%c0_147, %c0_148] : memref<128x128xbf16, #tpu.memory_space<vmem>>, vector<128x128xbf16>
    %cst_149 = arith.constant dense<0.000000e+00> : vector<16x128xf32>
    %276 = tpu.matmul %273, %275, %cst_149 {dimension_numbers = #tpu.dot_dimension_numbers<[1], [0], [0], [1], [0, 0, 1, 1], [], []>} : vector<16x128xbf16>, vector<128x128xbf16>, vector<16x128xf32> -> vector<16x128xf32>
    %277 = arith.addf %274, %276 : vector<16x128xf32>
    %c0_150 = arith.constant 0 : index
    %c0_151 = arith.constant 0 : index
    %278 = vector.load %arg13[%c0_150, %c0_151] : memref<1x128xf32, #tpu.memory_space<vmem>>, vector<1x128xf32>
    %279 = vector.broadcast %278 : vector<1x128xf32> to vector<16x128xf32>
    %280 = arith.addf %277, %279 : vector<16x128xf32>
    %281 = math.tanh %280 : vector<16x128xf32>
    %282 = arith.subf %281, %243 : vector<16x128xf32>
    %283 = arith.mulf %271, %282 : vector<16x128xf32>
    %284 = arith.addf %243, %283 : vector<16x128xf32>
    %c1_152 = arith.constant 1 : index
    %c0_153 = arith.constant 0 : index
    %c0_154 = arith.constant 0 : index
    %285 = vector.load %arg18[%c1_152, %c0_153, %c0_154] : memref<2x16x128xf32, #tpu.memory_space<vmem>>, vector<1x16x128xf32>
    %286 = vector.shape_cast %285 : vector<1x16x128xf32> to vector<16x128xf32>
    %287 = vector.shape_cast %284 : vector<16x128xf32> to vector<1x16x128xf32>
    tpu.vector_store %arg18[%c1_152, %c0_153, %c0_154], %287 {strides = array<i32>} : memref<2x16x128xf32, #tpu.memory_space<vmem>>, vector<1x16x128xf32>,
    %288 = arith.truncf %284 : vector<16x128xf32> to vector<16x128xbf16>
    %c32_155 = arith.constant 32 : index
    %c0_156 = arith.constant 0 : index
    %289 = vector.load %arg20[%c32_155, %c0_156] : memref<64x128xbf16, #tpu.memory_space<vmem>>, vector<16x128xbf16>
    tpu.vector_store %arg20[%c32_155, %c0_156], %288 {strides = array<i32>} : memref<64x128xbf16, #tpu.memory_space<vmem>>, vector<16x128xbf16>,
    %c0_157 = arith.constant 0 : index
    %c0_158 = arith.constant 0 : index
    %c0_159 = arith.constant 0 : index
    %290 = vector.load %arg18[%c0_157, %c0_158, %c0_159] : memref<2x16x128xf32, #tpu.memory_space<vmem>>, vector<1x16x128xf32>
    %291 = vector.shape_cast %290 : vector<1x16x128xf32> to vector<16x128xf32>
    %292 = arith.truncf %291 : vector<16x128xf32> to vector<16x128xbf16>
    %c48 = arith.constant 48 : index
    %c0_160 = arith.constant 0 : index
    %293 = vector.load %arg19[%c48, %c0_160] : memref<64x384xf32, #tpu.memory_space<vmem>>, vector<16x384xf32>
    %c0_161 = arith.constant 0 : index
    %c0_162 = arith.constant 0 : index
    %294 = vector.load %arg5[%c0_161, %c0_162] : memref<128x256xbf16, #tpu.memory_space<vmem>>, vector<128x256xbf16>
    %cst_163 = arith.constant dense<0.000000e+00> : vector<16x256xf32>
    %295 = tpu.matmul %292, %294, %cst_163 {dimension_numbers = #tpu.dot_dimension_numbers<[1], [0], [0], [1], [0, 0, 1, 1], [], []>} : vector<16x128xbf16>, vector<128x256xbf16>, vector<16x256xf32> -> vector<16x256xf32>
    %c0_164 = arith.constant 0 : index
    %c0_165 = arith.constant 0 : index
    %296 = vector.load %arg6[%c0_164, %c0_165] : memref<1x256xf32, #tpu.memory_space<vmem>>, vector<1x256xf32>
    %297 = vector.broadcast %296 : vector<1x256xf32> to vector<16x256xf32>
    %298 = arith.addf %295, %297 : vector<16x256xf32>
    %299 = vector.extract_strided_slice %293 {offsets = [0, 0], sizes = [16, 128], strides = [1, 1]} : vector<16x384xf32> to vector<16x128xf32>
    %300 = vector.extract_strided_slice %298 {offsets = [0, 0], sizes = [16, 128], strides = [1, 1]} : vector<16x256xf32> to vector<16x128xf32>
    %301 = arith.addf %299, %300 : vector<16x128xf32>
    %cst_166 = arith.constant 0.000000e+00 : f32
    %302 = vector.broadcast %cst_166 : f32 to vector<16x128xf32>
    %303 = arith.subf %302, %301 : vector<16x128xf32>
    %304 = math.exp %303 : vector<16x128xf32>
    %cst_167 = arith.constant 1.000000e+00 : f32
    %305 = vector.broadcast %cst_167 : f32 to vector<16x128xf32>
    %306 = arith.addf %305, %304 : vector<16x128xf32>
    %cst_168 = arith.constant 1.000000e+00 : f32
    %307 = vector.broadcast %cst_168 : f32 to vector<16x128xf32>
    %308 = arith.divf %307, %306 : vector<16x128xf32>
    %309 = vector.extract_strided_slice %293 {offsets = [0, 128], sizes = [16, 128], strides = [1, 1]} : vector<16x384xf32> to vector<16x128xf32>
    %310 = vector.extract_strided_slice %298 {offsets = [0, 128], sizes = [16, 128], strides = [1, 1]} : vector<16x256xf32> to vector<16x128xf32>
    %311 = arith.addf %309, %310 : vector<16x128xf32>
    %cst_169 = arith.constant 0.000000e+00 : f32
    %312 = vector.broadcast %cst_169 : f32 to vector<16x128xf32>
    %313 = arith.subf %312, %311 : vector<16x128xf32>
    %314 = math.exp %313 : vector<16x128xf32>
    %cst_170 = arith.constant 1.000000e+00 : f32
    %315 = vector.broadcast %cst_170 : f32 to vector<16x128xf32>
    %316 = arith.addf %315, %314 : vector<16x128xf32>
    %cst_171 = arith.constant 1.000000e+00 : f32
    %317 = vector.broadcast %cst_171 : f32 to vector<16x128xf32>
    %318 = arith.divf %317, %316 : vector<16x128xf32>
    %319 = arith.mulf %308, %291 : vector<16x128xf32>
    %320 = arith.truncf %319 : vector<16x128xf32> to vector<16x128xbf16>
    %321 = vector.extract_strided_slice %293 {offsets = [0, 256], sizes = [16, 128], strides = [1, 1]} : vector<16x384xf32> to vector<16x128xf32>
    %c0_172 = arith.constant 0 : index
    %c0_173 = arith.constant 0 : index
    %322 = vector.load %arg7[%c0_172, %c0_173] : memref<128x128xbf16, #tpu.memory_space<vmem>>, vector<128x128xbf16>
    %cst_174 = arith.constant dense<0.000000e+00> : vector<16x128xf32>
    %323 = tpu.matmul %320, %322, %cst_174 {dimension_numbers = #tpu.dot_dimension_numbers<[1], [0], [0], [1], [0, 0, 1, 1], [], []>} : vector<16x128xbf16>, vector<128x128xbf16>, vector<16x128xf32> -> vector<16x128xf32>
    %324 = arith.addf %321, %323 : vector<16x128xf32>
    %c0_175 = arith.constant 0 : index
    %c0_176 = arith.constant 0 : index
    %325 = vector.load %arg8[%c0_175, %c0_176] : memref<1x128xf32, #tpu.memory_space<vmem>>, vector<1x128xf32>
    %326 = vector.broadcast %325 : vector<1x128xf32> to vector<16x128xf32>
    %327 = arith.addf %324, %326 : vector<16x128xf32>
    %328 = math.tanh %327 : vector<16x128xf32>
    %329 = arith.subf %328, %291 : vector<16x128xf32>
    %330 = arith.mulf %318, %329 : vector<16x128xf32>
    %331 = arith.addf %291, %330 : vector<16x128xf32>
    %c0_177 = arith.constant 0 : index
    %c0_178 = arith.constant 0 : index
    %c0_179 = arith.constant 0 : index
    %332 = vector.load %arg18[%c0_177, %c0_178, %c0_179] : memref<2x16x128xf32, #tpu.memory_space<vmem>>, vector<1x16x128xf32>
    %333 = vector.shape_cast %332 : vector<1x16x128xf32> to vector<16x128xf32>
    %334 = vector.shape_cast %331 : vector<16x128xf32> to vector<1x16x128xf32>
    tpu.vector_store %arg18[%c0_177, %c0_178, %c0_179], %334 {strides = array<i32>} : memref<2x16x128xf32, #tpu.memory_space<vmem>>, vector<1x16x128xf32>,
    %335 = arith.truncf %331 : vector<16x128xf32> to vector<16x128xbf16>
    %c1_180 = arith.constant 1 : index
    %c0_181 = arith.constant 0 : index
    %c0_182 = arith.constant 0 : index
    %336 = vector.load %arg18[%c1_180, %c0_181, %c0_182] : memref<2x16x128xf32, #tpu.memory_space<vmem>>, vector<1x16x128xf32>
    %337 = vector.shape_cast %336 : vector<1x16x128xf32> to vector<16x128xf32>
    %338 = arith.truncf %337 : vector<16x128xf32> to vector<16x128xbf16>
    %c0_183 = arith.constant 0 : index
    %c0_184 = arith.constant 0 : index
    %339 = vector.load %arg9[%c0_183, %c0_184] : memref<128x384xbf16, #tpu.memory_space<vmem>>, vector<128x384xbf16>
    %cst_185 = arith.constant dense<0.000000e+00> : vector<16x384xf32>
    %340 = tpu.matmul %335, %339, %cst_185 {dimension_numbers = #tpu.dot_dimension_numbers<[1], [0], [0], [1], [0, 0, 1, 1], [], []>} : vector<16x128xbf16>, vector<128x384xbf16>, vector<16x384xf32> -> vector<16x384xf32>
    %c0_186 = arith.constant 0 : index
    %c0_187 = arith.constant 0 : index
    %341 = vector.load %arg10[%c0_186, %c0_187] : memref<128x256xbf16, #tpu.memory_space<vmem>>, vector<128x256xbf16>
    %cst_188 = arith.constant dense<0.000000e+00> : vector<16x256xf32>
    %342 = tpu.matmul %338, %341, %cst_188 {dimension_numbers = #tpu.dot_dimension_numbers<[1], [0], [0], [1], [0, 0, 1, 1], [], []>} : vector<16x128xbf16>, vector<128x256xbf16>, vector<16x256xf32> -> vector<16x256xf32>
    %c0_189 = arith.constant 0 : index
    %c0_190 = arith.constant 0 : index
    %343 = vector.load %arg11[%c0_189, %c0_190] : memref<1x256xf32, #tpu.memory_space<vmem>>, vector<1x256xf32>
    %344 = vector.broadcast %343 : vector<1x256xf32> to vector<16x256xf32>
    %345 = arith.addf %342, %344 : vector<16x256xf32>
    %346 = vector.extract_strided_slice %340 {offsets = [0, 0], sizes = [16, 128], strides = [1, 1]} : vector<16x384xf32> to vector<16x128xf32>
    %347 = vector.extract_strided_slice %345 {offsets = [0, 0], sizes = [16, 128], strides = [1, 1]} : vector<16x256xf32> to vector<16x128xf32>
    %348 = arith.addf %346, %347 : vector<16x128xf32>
    %cst_191 = arith.constant 0.000000e+00 : f32
    %349 = vector.broadcast %cst_191 : f32 to vector<16x128xf32>
    %350 = arith.subf %349, %348 : vector<16x128xf32>
    %351 = math.exp %350 : vector<16x128xf32>
    %cst_192 = arith.constant 1.000000e+00 : f32
    %352 = vector.broadcast %cst_192 : f32 to vector<16x128xf32>
    %353 = arith.addf %352, %351 : vector<16x128xf32>
    %cst_193 = arith.constant 1.000000e+00 : f32
    %354 = vector.broadcast %cst_193 : f32 to vector<16x128xf32>
    %355 = arith.divf %354, %353 : vector<16x128xf32>
    %356 = vector.extract_strided_slice %340 {offsets = [0, 128], sizes = [16, 128], strides = [1, 1]} : vector<16x384xf32> to vector<16x128xf32>
    %357 = vector.extract_strided_slice %345 {offsets = [0, 128], sizes = [16, 128], strides = [1, 1]} : vector<16x256xf32> to vector<16x128xf32>
    %358 = arith.addf %356, %357 : vector<16x128xf32>
    %cst_194 = arith.constant 0.000000e+00 : f32
    %359 = vector.broadcast %cst_194 : f32 to vector<16x128xf32>
    %360 = arith.subf %359, %358 : vector<16x128xf32>
    %361 = math.exp %360 : vector<16x128xf32>
    %cst_195 = arith.constant 1.000000e+00 : f32
    %362 = vector.broadcast %cst_195 : f32 to vector<16x128xf32>
    %363 = arith.addf %362, %361 : vector<16x128xf32>
    %cst_196 = arith.constant 1.000000e+00 : f32
    %364 = vector.broadcast %cst_196 : f32 to vector<16x128xf32>
    %365 = arith.divf %364, %363 : vector<16x128xf32>
    %366 = arith.mulf %355, %337 : vector<16x128xf32>
    %367 = arith.truncf %366 : vector<16x128xf32> to vector<16x128xbf16>
    %368 = vector.extract_strided_slice %340 {offsets = [0, 256], sizes = [16, 128], strides = [1, 1]} : vector<16x384xf32> to vector<16x128xf32>
    %c0_197 = arith.constant 0 : index
    %c0_198 = arith.constant 0 : index
    %369 = vector.load %arg12[%c0_197, %c0_198] : memref<128x128xbf16, #tpu.memory_space<vmem>>, vector<128x128xbf16>
    %cst_199 = arith.constant dense<0.000000e+00> : vector<16x128xf32>
    %370 = tpu.matmul %367, %369, %cst_199 {dimension_numbers = #tpu.dot_dimension_numbers<[1], [0], [0], [1], [0, 0, 1, 1], [], []>} : vector<16x128xbf16>, vector<128x128xbf16>, vector<16x128xf32> -> vector<16x128xf32>
    %371 = arith.addf %368, %370 : vector<16x128xf32>
    %c0_200 = arith.constant 0 : index
    %c0_201 = arith.constant 0 : index
    %372 = vector.load %arg13[%c0_200, %c0_201] : memref<1x128xf32, #tpu.memory_space<vmem>>, vector<1x128xf32>
    %373 = vector.broadcast %372 : vector<1x128xf32> to vector<16x128xf32>
    %374 = arith.addf %371, %373 : vector<16x128xf32>
    %375 = math.tanh %374 : vector<16x128xf32>
    %376 = arith.subf %375, %337 : vector<16x128xf32>
    %377 = arith.mulf %365, %376 : vector<16x128xf32>
    %378 = arith.addf %337, %377 : vector<16x128xf32>
    %c1_202 = arith.constant 1 : index
    %c0_203 = arith.constant 0 : index
    %c0_204 = arith.constant 0 : index
    %379 = vector.load %arg18[%c1_202, %c0_203, %c0_204] : memref<2x16x128xf32, #tpu.memory_space<vmem>>, vector<1x16x128xf32>
    %380 = vector.shape_cast %379 : vector<1x16x128xf32> to vector<16x128xf32>
    %381 = vector.shape_cast %378 : vector<16x128xf32> to vector<1x16x128xf32>
    tpu.vector_store %arg18[%c1_202, %c0_203, %c0_204], %381 {strides = array<i32>} : memref<2x16x128xf32, #tpu.memory_space<vmem>>, vector<1x16x128xf32>,
    %382 = arith.truncf %378 : vector<16x128xf32> to vector<16x128xbf16>
    %c48_205 = arith.constant 48 : index
    %c0_206 = arith.constant 0 : index
    %383 = vector.load %arg20[%c48_205, %c0_206] : memref<64x128xbf16, #tpu.memory_space<vmem>>, vector<16x128xbf16>
    tpu.vector_store %arg20[%c48_205, %c0_206], %382 {strides = array<i32>} : memref<64x128xbf16, #tpu.memory_space<vmem>>, vector<16x128xbf16>,
    %c0_207 = arith.constant 0 : index
    %c0_208 = arith.constant 0 : index
    %384 = vector.load %arg20[%c0_207, %c0_208] : memref<64x128xbf16, #tpu.memory_space<vmem>>, vector<64x128xbf16>
    %c0_209 = arith.constant 0 : index
    %c0_210 = arith.constant 0 : index
    %385 = vector.load %arg14[%c0_209, %c0_210] : memref<128x256xbf16, #tpu.memory_space<vmem>>, vector<128x256xbf16>
    %cst_211 = arith.constant dense<0.000000e+00> : vector<64x256xf32>
    %386 = tpu.matmul %384, %385, %cst_211 {dimension_numbers = #tpu.dot_dimension_numbers<[1], [0], [0], [1], [0, 0, 1, 1], [], []>} : vector<64x128xbf16>, vector<128x256xbf16>, vector<64x256xf32> -> vector<64x256xf32>
    %c0_212 = arith.constant 0 : index
    %c0_213 = arith.constant 0 : index
    %387 = vector.load %arg15[%c0_212, %c0_213] : memref<1x256xf32, #tpu.memory_space<vmem>>, vector<1x256xf32>
    %388 = vector.broadcast %387 : vector<1x256xf32> to vector<64x256xf32>
    %389 = arith.addf %386, %388 : vector<64x256xf32>
    %390 = vector.shape_cast %389 : vector<64x256xf32> to vector<4x16x256xf32>
    %c0_214 = arith.constant 0 : index
    %c0_215 = arith.constant 0 : index
    %c0_216 = arith.constant 0 : index
    %391 = vector.load %arg16[%c0_214, %c0_215, %c0_216] : memref<4x16x256xf32, #tpu.memory_space<vmem>>, vector<4x16x256xf32>
    tpu.vector_store %arg16[%c0_214, %c0_215, %c0_216], %390 {strides = array<i32>} : memref<4x16x256xf32, #tpu.memory_space<vmem>>, vector<4x16x256xf32>,
    %c1_i32 = arith.constant 1 : i32
    %392 = arith.cmpi eq, %arg1, %c1_i32 : i32
    %393 = arith.extui %392 : i1 to i32
    %c0_i32_217 = arith.constant 0 : i32
    %394 = arith.cmpi ne, %393, %c0_i32_217 : i32
    scf.if %394 {
      %c0_218 = arith.constant 0 : index
      %c0_219 = arith.constant 0 : index
      %c0_220 = arith.constant 0 : index
      %395 = vector.load %arg18[%c0_218, %c0_219, %c0_220] : memref<2x16x128xf32, #tpu.memory_space<vmem>>, vector<2x16x128xf32>
      %c0_221 = arith.constant 0 : index
      %c0_222 = arith.constant 0 : index
      %c0_223 = arith.constant 0 : index
      %396 = vector.load %arg17[%c0_221, %c0_222, %c0_223] : memref<2x16x128xf32, #tpu.memory_space<vmem>>, vector<2x16x128xf32>
      tpu.vector_store %arg17[%c0_221, %c0_222, %c0_223], %395 {strides = array<i32>} : memref<2x16x128xf32, #tpu.memory_space<vmem>>, vector<2x16x128xf32>,
    } else {
    }
    return
  }
  func.func @transform_0(%arg0: i32, %arg1: i32) -> (i32, i32, i32) {
    %c0_i32 = arith.constant 0 : i32
    %c0_i32_0 = arith.constant 0 : i32
    return %arg1, %arg0, %c0_i32 : i32, i32, i32
  }
  func.func @transform_1(%arg0: i32, %arg1: i32) -> (i32, i32, i32) {
    %c0_i32 = arith.constant 0 : i32
    %c0_i32_0 = arith.constant 0 : i32
    %c0_i32_1 = arith.constant 0 : i32
    return %c0_i32, %arg0, %c0_i32_0 : i32, i32, i32
  }
  func.func @transform_2(%arg0: i32, %arg1: i32) -> (i32, i32) {
    %c0_i32 = arith.constant 0 : i32
    %c0_i32_0 = arith.constant 0 : i32
    %c0_i32_1 = arith.constant 0 : i32
    return %c0_i32, %c0_i32_0 : i32, i32
  }
  func.func @transform_3(%arg0: i32, %arg1: i32) -> (i32, i32) {
    %c0_i32 = arith.constant 0 : i32
    %c0_i32_0 = arith.constant 0 : i32
    %c0_i32_1 = arith.constant 0 : i32
    return %c0_i32, %c0_i32_0 : i32, i32
  }
  func.func @transform_4(%arg0: i32, %arg1: i32) -> (i32, i32) {
    %c0_i32 = arith.constant 0 : i32
    %c0_i32_0 = arith.constant 0 : i32
    %c0_i32_1 = arith.constant 0 : i32
    return %c0_i32, %c0_i32_0 : i32, i32
  }
  func.func @transform_5(%arg0: i32, %arg1: i32) -> (i32, i32) {
    %c0_i32 = arith.constant 0 : i32
    %c0_i32_0 = arith.constant 0 : i32
    %c0_i32_1 = arith.constant 0 : i32
    return %c0_i32, %c0_i32_0 : i32, i32
  }
  func.func @transform_6(%arg0: i32, %arg1: i32) -> (i32, i32) {
    %c0_i32 = arith.constant 0 : i32
    %c0_i32_0 = arith.constant 0 : i32
    %c0_i32_1 = arith.constant 0 : i32
    return %c0_i32, %c0_i32_0 : i32, i32
  }
  func.func @transform_7(%arg0: i32, %arg1: i32) -> (i32, i32) {
    %c0_i32 = arith.constant 0 : i32
    %c0_i32_0 = arith.constant 0 : i32
    %c0_i32_1 = arith.constant 0 : i32
    return %c0_i32, %c0_i32_0 : i32, i32
  }
  func.func @transform_8(%arg0: i32, %arg1: i32) -> (i32, i32) {
    %c0_i32 = arith.constant 0 : i32
    %c0_i32_0 = arith.constant 0 : i32
    %c0_i32_1 = arith.constant 0 : i32
    return %c0_i32, %c0_i32_0 : i32, i32
  }
  func.func @transform_9(%arg0: i32, %arg1: i32) -> (i32, i32) {
    %c0_i32 = arith.constant 0 : i32
    %c0_i32_0 = arith.constant 0 : i32
    %c0_i32_1 = arith.constant 0 : i32
    return %c0_i32, %c0_i32_0 : i32, i32
  }
  func.func @transform_10(%arg0: i32, %arg1: i32) -> (i32, i32) {
    %c0_i32 = arith.constant 0 : i32
    %c0_i32_0 = arith.constant 0 : i32
    %c0_i32_1 = arith.constant 0 : i32
    return %c0_i32, %c0_i32_0 : i32, i32
  }
  func.func @transform_11(%arg0: i32, %arg1: i32) -> (i32, i32) {
    %c0_i32 = arith.constant 0 : i32
    %c0_i32_0 = arith.constant 0 : i32
    %c0_i32_1 = arith.constant 0 : i32
    return %c0_i32, %c0_i32_0 : i32, i32
  }
  func.func @transform_12(%arg0: i32, %arg1: i32) -> (i32, i32) {
    %c0_i32 = arith.constant 0 : i32
    %c0_i32_0 = arith.constant 0 : i32
    %c0_i32_1 = arith.constant 0 : i32
    return %c0_i32, %c0_i32_0 : i32, i32
  }
  func.func @transform_13(%arg0: i32, %arg1: i32) -> (i32, i32) {
    %c0_i32 = arith.constant 0 : i32
    %c0_i32_0 = arith.constant 0 : i32
    %c0_i32_1 = arith.constant 0 : i32
    return %c0_i32, %c0_i32_0 : i32, i32
  }
  func.func @transform_14(%arg0: i32, %arg1: i32) -> (i32, i32, i32) {
    %c0_i32 = arith.constant 0 : i32
    %c0_i32_0 = arith.constant 0 : i32
    return %arg1, %arg0, %c0_i32 : i32, i32, i32
  }
  func.func @transform_15(%arg0: i32, %arg1: i32) -> (i32, i32, i32) {
    %c0_i32 = arith.constant 0 : i32
    %c0_i32_0 = arith.constant 0 : i32
    %c0_i32_1 = arith.constant 0 : i32
    return %c0_i32, %arg0, %c0_i32_0 : i32, i32, i32
  }
}

</mosaic_0001>

<bundles_post_ra>
// kernel: tpu_custom_call.1
= control target key start
LH: loop header
LB: loop body
LE: loop exit
PB: predicated region body
PF: predicated region fallthrough
CT: control target
= control target key end

     0   :  { %s8191_s0 = inlined_call_operand.hbm [shape: bf16[8,16,128], index: 0, kind: input, shape index: {}]   ;;  %s8192_s1 = inlined_call_operand.hbm [shape: f32[2,16,128], index: 1, kind: input, shape index: {}]   ;;  %s8193_s2 = inlined_call_operand.hbm [shape: bf16[128,384], index: 2, kind: input, shape index: {}]   ;;  %s8194_s3 = inlined_call_operand.hbm [shape: bf16[128,256], index: 3, kind: input, shape index: {}]   ;;  %s8195_s4 = inlined_call_operand.vmem [shape: f32[1,256], index: 4, kind: input, shape index: {}]   ;;  %s8196_s5 = inlined_call_operand.hbm [shape: bf16[128,128], index: 5, kind: input, shape index: {}]   ;;  %s8197_s6 = inlined_call_operand.vmem [shape: f32[1,128], index: 6, kind: input, shape index: {}]   ;;  %s8198_s7 = inlined_call_operand.hbm [shape: bf16[128,384], index: 7, kind: input, shape index: {}]   ;;  %s8199_s8 = inlined_call_operand.hbm [shape: bf16[128,256], index: 8, kind: input, shape index: {}]   ;;  %s8200_s9 = inlined_call_operand.vmem [shape: f32[1,256], index: 9, kind: input, shape index: {}]   ;;  %s8201_s10 = inlined_call_operand.hbm [shape: bf16[128,128], index: 10, kind: input, shape index: {}]   ;;  %s8202_s11 = inlined_call_operand.vmem [shape: f32[1,128], index: 11, kind: input, shape index: {}]   ;;  %s8203_s12 = inlined_call_operand.hbm [shape: bf16[128,256], index: 12, kind: input, shape index: {}]   ;;  %s8204_s13 = inlined_call_operand.vmem [shape: f32[1,256], index: 13, kind: input, shape index: {}]   ;;  %s8205_s14 = inlined_call_operand.hbm [shape: f32[8,16,256], index: 14, kind: output, shape index: {0}]   ;;  %s8206_s15 = inlined_call_operand.hbm [shape: f32[2,16,128], index: 15, kind: output, shape index: {1}]  }
   0x1   :  { %8232 = sst [smem:[#allocation39_spill]] %s8191_s0 }
   0x2   :  { %8233 = sst [smem:[#allocation40_spill]] %s8192_s1 }
   0x3   :  { %8234 = sst [smem:[#allocation41_spill]] %s8193_s2 }
   0x4   :  { %8235 = sst [smem:[#allocation42_spill]] %s8194_s3 }
   0x5   :  { %8236 = sst [smem:[#allocation43_spill]] %s8195_s4 }
   0x6   :  { %8237 = sst [smem:[#allocation44_spill]] %s8196_s5 }
   0x7   :  { %8238 = sst [smem:[#allocation45_spill]] %s8197_s6 }
   0x8   :  { %8239 = sst [smem:[#allocation46_spill]] %s8200_s9 }
   0x9   :  { %8240 = sst [smem:[#allocation47_spill]] %s8202_s11 }
   0xa   :  { %8241 = sst [smem:[#allocation48_spill]] %s8204_s13 }
   0xb   :  { %8242 = sst [smem:[#allocation49_spill]] %s8205_s14 }
   0xc   :  { %8243 = sst [smem:[#allocation50_spill]] %s8206_s15 }
   0xd   :  { %21 = vsyncpa [#allocation6], 0 }
   0xe   :  { %23 = vsyncpa [#allocation6 + $0x1], 0 }
   0xf   :  { %24 = vsyncpa [#allocation9], 0 }
  0x10   :  { %25 = vsyncpa [#allocation12], 0 }
  0x11   :  { %26 = vsyncpa [#allocation15], 0 }
  0x12   :  { %27 = vsyncpa [#allocation18], 0 }
  0x13   :  { %28 = vsyncpa [#allocation7], 0 }
  0x14   :  { %30 = vsyncpa [#allocation7 + $0x1], 0 }
  0x15   :  { %31 = vsyncpa [#allocation22], 0  ;;  %s6918_s18 = smov 0   ;;  %s6920_s19 = smov 0  }
  0x16   :  { %s6922_s20 = smov 0   ;;  %s6924_s21 = smov 0  }
  0x17   :  { %s6926_s22 = smov 0   ;;  %s6928_s23 = smov 0  }
  0x18 LB: > { %8244 = sst [smem:[#allocation30_spill]] %s6804_s21  ;;  %s8207_s24 = sadd.s32 4294967295, %s6812_s23   ;;  %s6812_s23 = sphi %s6928_s23, %s37_s23   ;;  %s6808_s22 = sphi %s6926_s22, %s8304_s22   ;;  %s6804_s21 = sphi %s6924_s21, %s8303_s21   ;;  %s6800_s20 = sphi %s6922_s20, %s8302_s20   ;;  %s6796_s19 = sphi %s6920_s19, %s8301_s19   ;;  %s6792_s18 = sphi %s6918_s18, %s8300_s18  }
  0x19   : > { %p4961_p0 = scmp.ge.s32.totalorder %s6812_s23, 1  ;;  %p6952_p1 = scmp.eq.s32.totalorder %s8207_s24, 0 }
  0x1a   : > { %p414_p2 = scmp.lt.s32.totalorder %s6812_s23, 3  ;;  %s6814_s27 = smov [#allocation8]  }
  0x1b   : > { %s8245_s25 = scalar_select %p6952_p1, 1, 0 }
  0x1c   : > { %p6957_p3 = pnand %p4961_p0, %p414_p2  ;;  %s429_s28 = sshll.u32 %s6814_s27, 4  ;;  %s6961_s28 = int_to_ptr.vmem [resolvable:$true] %s429_s28 }
  0x1d   : > { %s6815_s30 = smov [#allocation11]   ;;  %s8249_s1 = sld [smem:[#allocation40_spill]] }
  0x1e   : > { %s8246_s26 = scalar_select %p6957_p3, 1, 0 }
  0x1f   : > { %p5828_p4 = pneg %p6957_p3  ;;  %s455_s16 = sshll.u32 %s6815_s30, 4  ;;  %s6972_s16 = int_to_ptr.vmem [resolvable:$true] %s455_s16 }
  0x20   : > { %8247 = sst [smem:[#allocation31_spill]] %s8246_s26 }
  0x21   : > { %p6968_p6 = pnand %p5828_p4, %p6952_p1 }
  0x23   : > { %s6430_s15 = scalar_lea.hbm %s8249_s1, 512  ;;  %p6982_p8 = pneg %p6968_p6 }
  0x24   : > { %p6431_p7 = scmp.ne.s32.totalorder %s8249_s1, %s6430_s15  ;;  %p6437_p11 = scmp.lt.u32.totalorder %s6430_s15, %s8249_s1 }
  0x26   : > { %p6433_p9 = pnand %p6982_p8, %p6431_p7 }
  0x28   : > { %p6434_p10 = pneg %p6433_p9 }
  0x2a   : > { %p6439_p12 = pnand %p6437_p11, %p6434_p10 }
  0x2c   : > { %6442 = shalt.err (!%p6439_p12)
}
  0x2d   : > { %s6443_s14 = scalar_lea.vmem %s6961_s28, 512  ;;  %p6451_p4 = scmp.lt.s32.totalorder %s6961_s28, %s6961_s28 }
  0x2e   : > { %p6444_p13 = scmp.ne.s32.totalorder %s6961_s28, %s6443_s14  ;;  %p6452_p5 = scmp.lt.s32.totalorder %s6443_s14, %s6443_s14 }
  0x30   : > { %p6446_p0 = pnand %p6444_p13, %p6982_p8  ;;  %p6453_p7 = por %p6452_p5, %p6451_p4 }
  0x32   : > { %p6447_p2 = pneg %p6446_p0 }
  0x34   : > { %p6454_p9 = pnand %p6453_p7, %p6447_p2 }
  0x36   : > { %6457 = shalt.err (!%p6454_p9)
}
  0x37   : > { %s8217_s24 = smov 128   ;;  %s8219_s11 = smov 8  }
  0x38   : > { %5831 = dma.hbm_to_vmem [thread:$0]  (!%p6968_p6), %s8249_s1, 512, %s6961_s28, [#allocation9], %s8217_s24, %s8217_s24, %s8219_s11  }
  0x39   : > { %s8251_s3 = sld [smem:[#allocation42_spill]] }
  0x3f   : > { %s6458_s14 = scalar_lea.hbm %s8251_s3, 2048 }
  0x40   : > { %p6459_p5 = scmp.ne.s32.totalorder %s8251_s3, %s6458_s14  ;;  %p6465_p12 = scmp.lt.u32.totalorder %s6458_s14, %s8251_s3 }
  0x42   : > { %p6461_p10 = pnand %p6459_p5, %p6982_p8 }
  0x44   : > { %p6462_p11 = pneg %p6461_p10 }
  0x46   : > { %p6467_p13 = pnand %p6465_p12, %p6462_p11 }
  0x48   : > { %6470 = shalt.err (!%p6467_p13)
}
  0x49   : > { %s6471_s28 = scalar_lea.vmem %s6972_s16, 2048  ;;  %p6479_p7 = scmp.lt.s32.totalorder %s6972_s16, %s6972_s16 }
  0x4a   : > { %p6472_p0 = scmp.ne.s32.totalorder %s6972_s16, %s6471_s28  ;;  %p6480_p9 = scmp.lt.s32.totalorder %s6471_s28, %s6471_s28 }
  0x4c   : > { %p6474_p2 = pnand %p6472_p0, %p6982_p8  ;;  %p6481_p5 = por %p6480_p9, %p6479_p7 }
  0x4e   : > { %p6475_p4 = pneg %p6474_p2 }
  0x50   : > { %p6482_p10 = pnand %p6481_p5, %p6475_p4 }
  0x52   : > { %6485 = shalt.err (!%p6482_p10)
}
  0x53   : > { %5837 = dma.hbm_to_vmem [thread:$0]  (!%p6968_p6), %s8251_s3, 2048, %s6972_s16, [#allocation12], %s8217_s24, %s8217_s24, %s8219_s11  }
  0x54   : > { %s6818_s9 = smov [#allocation14]   ;;  %s6486_s27 = scalar_lea.hbm %s8198_s7, 3072 }
  0x55   : > { %s487_s21 = sshll.u32 %s6818_s9, 4  ;;  %p6487_p11 = scmp.ne.s32.totalorder %s8198_s7, %s6486_s27  ;;  %s488_s21 = int_to_ptr.vmem [resolvable:$true] %s487_s21 }
  0x56   : > { %p6493_p0 = scmp.lt.u32.totalorder %s6486_s27, %s8198_s7 }
  0x57   : > { %p6489_p12 = pnand %p6487_p11, %p6982_p8 }
  0x59   : > { %p6490_p13 = pneg %p6489_p12 }
  0x5b   : > { %p6495_p2 = pnand %p6493_p0, %p6490_p13 }
  0x5d   : > { %6498 = shalt.err (!%p6495_p2)
}
  0x5e   : > { %s6499_s16 = scalar_lea.vmem %s488_s21, 3072  ;;  %p6507_p5 = scmp.lt.s32.totalorder %s488_s21, %s488_s21 }
  0x5f   : > { %p6500_p4 = scmp.ne.s32.totalorder %s488_s21, %s6499_s16  ;;  %p6508_p10 = scmp.lt.s32.totalorder %s6499_s16, %s6499_s16 }
  0x61   : > { %p6502_p7 = pnand %p6500_p4, %p6982_p8  ;;  %p6509_p3 = por %p6508_p10, %p6507_p5 }
  0x63   : > { %p6503_p9 = pneg %p6502_p7 }
  0x65   : > { %p6510_p1 = pnand %p6509_p3, %p6503_p9 }
  0x67   : > { %6513 = shalt.err (!%p6510_p1)
}
  0x68   : > { %s6819_s4 = smov 192   ;;  %s6820_s6 = smov 12  }
  0x69   : > { %5843 = dma.hbm_to_vmem [thread:$0]  (!%p6968_p6), %s8198_s7, 3072, %s488_s21, [#allocation15], %s6819_s4, %s6819_s4, %s6820_s6  }
  0x6a   : > { %s6821_s15 = smov [#allocation17]   ;;  %s6822_s27 = smov [#allocation10]  }
  0x6b   : > { %s516_s17 = sshll.u32 %s6821_s15, 4  ;;  %s442_s30 = sshll.u32 %s6822_s27, 4  ;;  %s517_s17 = int_to_ptr.vmem [resolvable:$true] %s516_s17  ;;  %s443_s30 = int_to_ptr.vmem [resolvable:$true] %s442_s30 }
  0x6c   : > { %s6514_s16 = scalar_lea.hbm %s8201_s10, 1024 }
  0x6d   : > { %p6515_p1 = scmp.ne.s32.totalorder %s8201_s10, %s6514_s16  ;;  %p6521_p12 = scmp.lt.u32.totalorder %s6514_s16, %s8201_s10 }
  0x6f   : > { %p6517_p3 = pnand %p6515_p1, %p6982_p8 }
  0x71   : > { %p6518_p11 = pneg %p6517_p3 }
  0x73   : > { %p6523_p13 = pnand %p6521_p12, %p6518_p11 }
  0x75   : > { %6526 = shalt.err (!%p6523_p13)
}
  0x76   : > { %s6527_s21 = scalar_lea.vmem %s517_s17, 1024  ;;  %p6535_p7 = scmp.lt.s32.totalorder %s517_s17, %s517_s17 }
  0x77   : > { %p6528_p0 = scmp.ne.s32.totalorder %s517_s17, %s6527_s21  ;;  %p6536_p9 = scmp.lt.s32.totalorder %s6527_s21, %s6527_s21 }
  0x79   : > { %p6530_p2 = pnand %p6528_p0, %p6982_p8  ;;  %p6537_p5 = por %p6536_p9, %p6535_p7 }
  0x7b   : > { %p6531_p4 = pneg %p6530_p2 }
  0x7d   : > { %p6538_p10 = pnand %p6537_p5, %p6531_p4 }
  0x7f   : > { %6541 = shalt.err (!%p6538_p10)
}
  0x80   : > { %s8222_s24 = smov 64   ;;  %s8224_s11 = smov 4  }
  0x81   : > { %5849 = dma.hbm_to_vmem [thread:$0]  (!%p6968_p6), %s8201_s10, 1024, %s517_s17, [#allocation18], %s8222_s24, %s8222_s24, %s8224_s11  }
  0x82   : > { %s8252_s2 = sld [smem:[#allocation41_spill]] }
  0x88   : > { %s6542_s15 = scalar_lea.hbm %s8252_s2, 3072 }
  0x89   : > { %p6543_p1 = scmp.ne.s32.totalorder %s8252_s2, %s6542_s15  ;;  %p6549_p12 = scmp.lt.u32.totalorder %s6542_s15, %s8252_s2 }
  0x8b   : > { %p6545_p3 = pnand %p6543_p1, %p6982_p8 }
  0x8d   : > { %p6546_p11 = pneg %p6545_p3 }
  0x8f   : > { %p6551_p13 = pnand %p6549_p12, %p6546_p11 }
  0x91   : > { %6554 = shalt.err (!%p6551_p13)
}
  0x92   : > { %s6555_s21 = scalar_lea.vmem %s443_s30, 3072  ;;  %p6563_p7 = scmp.lt.s32.totalorder %s443_s30, %s443_s30 }
  0x93   : > { %p6556_p0 = scmp.ne.s32.totalorder %s443_s30, %s6555_s21  ;;  %p6564_p9 = scmp.lt.s32.totalorder %s6555_s21, %s6555_s21 }
  0x95   : > { %p6558_p2 = pnand %p6556_p0, %p6982_p8  ;;  %p6565_p5 = por %p6564_p9, %p6563_p7 }
  0x97   : > { %p6559_p4 = pneg %p6558_p2 }
  0x99   : > { %p6566_p10 = pnand %p6565_p5, %p6559_p4 }
  0x9b   : > { %6569 = shalt.err (!%p6566_p10)
}
  0x9c   : > { %5834 = dma.hbm_to_vmem [thread:$0]  (!%p6968_p6), %s8252_s2, 3072, %s443_s30, [#allocation9], %s6819_s4, %s6819_s4, %s6820_s6  }
  0x9d   : > { %s6825_s26 = smov [#allocation13]   ;;  %s6826_s9 = smov [#allocation16]  }
  0x9e   : > { %s471_s1 = sshll.u32 %s6825_s26, 4  ;;  %s500_s15 = sshll.u32 %s6826_s9, 4  ;;  %s472_s1 = int_to_ptr.vmem [resolvable:$true] %s471_s1  ;;  %s501_s15 = int_to_ptr.vmem [resolvable:$true] %s500_s15 }
  0x9f   : > { %s8253_s5 = sld [smem:[#allocation44_spill]] }
  0xa5   : > { %s6570_s28 = scalar_lea.hbm %s8253_s5, 1024 }
  0xa6   : > { %p6571_p1 = scmp.ne.s32.totalorder %s8253_s5, %s6570_s28  ;;  %p6577_p12 = scmp.lt.u32.totalorder %s6570_s28, %s8253_s5 }
  0xa8   : > { %p6573_p3 = pnand %p6571_p1, %p6982_p8 }
  0xaa   : > { %p6574_p11 = pneg %p6573_p3 }
  0xac   : > { %p6579_p13 = pnand %p6577_p12, %p6574_p11 }
  0xae   : > { %6582 = shalt.err (!%p6579_p13)
}
  0xaf   : > { %s6583_s4 = scalar_lea.vmem %s472_s1, 1024  ;;  %p6591_p7 = scmp.lt.s32.totalorder %s472_s1, %s472_s1 }
  0xb0   : > { %p6584_p0 = scmp.ne.s32.totalorder %s472_s1, %s6583_s4  ;;  %p6592_p9 = scmp.lt.s32.totalorder %s6583_s4, %s6583_s4 }
  0xb2   : > { %p6586_p2 = pnand %p6584_p0, %p6982_p8  ;;  %p6593_p5 = por %p6592_p9, %p6591_p7 }
  0xb4   : > { %p6587_p4 = pneg %p6586_p2 }
  0xb6   : > { %p6594_p10 = pnand %p6593_p5, %p6587_p4 }
  0xb8   : > { %6597 = shalt.err (!%p6594_p10)
}
  0xb9   : > { %s8254_s6 = smov 64   ;;  %s6598_s9 = scalar_lea.hbm %s8199_s8, 2048 }
  0xba   : > { %5840 = dma.hbm_to_vmem [thread:$0]  (!%p6968_p6), %s8253_s5, 1024, %s472_s1, [#allocation12], %s8254_s6, %s8254_s6, %s8224_s11  }
  0xbb   : > { %p6599_p1 = scmp.ne.s32.totalorder %s8199_s8, %s6598_s9  ;;  %p6605_p12 = scmp.lt.u32.totalorder %s6598_s9, %s8199_s8 }
  0xbd   : > { %p6601_p3 = pnand %p6599_p1, %p6982_p8 }
  0xbf   : > { %p6602_p11 = pneg %p6601_p3 }
  0xc1   : > { %p6607_p13 = pnand %p6605_p12, %p6602_p11 }
  0xc3   : > { %6610 = shalt.err (!%p6607_p13)
}
  0xc4   : > { %s6611_s21 = scalar_lea.vmem %s501_s15, 2048  ;;  %p6619_p7 = scmp.lt.s32.totalorder %s501_s15, %s501_s15 }
  0xc5   : > { %p6612_p0 = scmp.ne.s32.totalorder %s501_s15, %s6611_s21  ;;  %p6620_p9 = scmp.lt.s32.totalorder %s6611_s21, %s6611_s21 }
  0xc7   : > { %p6614_p2 = pnand %p6612_p0, %p6982_p8  ;;  %p6621_p5 = por %p6620_p9, %p6619_p7 }
  0xc9   : > { %p6615_p4 = pneg %p6614_p2 }
  0xcb   : > { %p6622_p10 = pnand %p6621_p5, %p6615_p4 }
  0xcd   : > { %6625 = shalt.err (!%p6622_p10)
}
  0xce   : > { %s8255_s1 = smov 8   ;;  %s8256_s17 = smov 128  }
  0xcf   : > { %5846 = dma.hbm_to_vmem [thread:$0]  (!%p6968_p6), %s8199_s8, 2048, %s501_s15, [#allocation15], %s8256_s17, %s8256_s17, %s8255_s1  }
  0xd0   : > { %s6827_s24 = smov [#allocation19]   ;;  %s6626_s27 = scalar_lea.hbm %s8203_s12, 2048 }
  0xd1   : > { %s532_s3 = sshll.u32 %s6827_s24, 4  ;;  %p6627_p1 = scmp.ne.s32.totalorder %s8203_s12, %s6626_s27  ;;  %s533_s3 = int_to_ptr.vmem [resolvable:$true] %s532_s3 }
  0xd2   : > { %p6633_p12 = scmp.lt.u32.totalorder %s6626_s27, %s8203_s12 }
  0xd3   : > { %p6629_p3 = pnand %p6627_p1, %p6982_p8 }
  0xd5   : > { %p6630_p11 = pneg %p6629_p3 }
  0xd7   : > { %p6635_p13 = pnand %p6633_p12, %p6630_p11 }
  0xd9   : > { %6638 = shalt.err (!%p6635_p13)
}
  0xda   : > { %s6639_s15 = scalar_lea.vmem %s533_s3, 2048  ;;  %p6647_p7 = scmp.lt.s32.totalorder %s533_s3, %s533_s3 }
  0xdb   : > { %p6640_p0 = scmp.ne.s32.totalorder %s533_s3, %s6639_s15  ;;  %p6648_p9 = scmp.lt.s32.totalorder %s6639_s15, %s6639_s15 }
  0xdd   : > { %p6642_p2 = pnand %p6640_p0, %p6982_p8  ;;  %p6649_p5 = por %p6648_p9, %p6647_p7 }
  0xdf   : > { %p6643_p4 = pneg %p6642_p2 }
  0xe1   : > { %p6650_p10 = pnand %p6649_p5, %p6643_p4 }
  0xe3   : > { %6653 = shalt.err (!%p6650_p10)
}
  0xe4   : > { %5852 = dma.hbm_to_vmem [thread:$0]  (!%p6968_p6), %s8203_s12, 2048, %s533_s3, [#allocation18], %s8256_s17, %s8256_s17, %s8255_s1  }
  0xe5   : > { %s4960_s13 = sadd.s32 4294967294, %s6812_s23   ;;  %s46_s29 = sadd.s32 1, %s6808_s22 }
  0xe6   : > { %p47_p8 = scmp.ge.s32.totalorder %s46_s29, 2  ;;  %s58_s24 = sadd.s32 1, %s6800_s20 }
  0xe7   : > { %p65_p1 = scmp.ne.s32.totalorder %s6800_s20, %s6796_s19  ;;  %p66_p3 = scmp.eq.s32.totalorder %s6812_s23, 0 }
  0xe8   : > { %s8306_s29 = smov (%p47_p8, %s46_s29), 0  ;;  %p71_p12 = scmp.ne.s32.totalorder %s6796_s19, %s6792_s18 }
  0xe9   : > { %p7166_p11 = por %p66_p3, %p65_p1  ;;  %s53_s1 = ssub.s32 %s6808_s22, %s8306_s29 }
  0xea   : > { %s8258_s17 = sadd.s32 4294967295, %s6812_s23   ;;  %p56_p13 = scmp.eq.s32.totalorder %s53_s1, 0 }
  0xeb   : > { %p7176_p6 = scmp.eq.s32.totalorder %s8258_s17, 1  ;;  %p8260_p0 = scmp.ne.s32.totalorder %s8245_s25, 0 }
  0xec   : > { %p381_p7 = scmp.eq.s32.totalorder %s4960_s13, 1  ;;  %p5869_p5 = scmp.lt.s32.totalorder %s6812_s23, 2 }
  0xed   : > { %s8259_s3 = scalar_select %p7176_p6, 1, 0 }
  0xee   : > { %p7182_p2 = por %p8260_p0, %p71_p12  ;;  %p7188_p4 = por %p7176_p6, %p65_p1 }
  0xef   : > { %s7193_s14 = scalar_select %p56_p13, %s6800_s20, %s58_s24  }
  0xf0   : > { %s8262_s27 = scalar_select %p7188_p4, 1, 0 }
  0xf1   : > { %p7195_p9 = por %p381_p7, %p71_p12  ;;  %s549_s16 = sand.u32 1, %s6800_s20  }
  0xf2   : > { %s5337_s21 = sshll.u32 %s6808_s22, 9  ;;  %s4971_s15 = sshll.u32 %s549_s16, 5 }
  0xf3   : > { %s8263_s28 = scalar_select %p7195_p9, 1, 0 }
  0xf4   : > { %s8264_s0 = sld [smem:[#allocation39_spill]]  ;;  %s553_s13 = scalar_lea.vmem [#allocation5], %s4971_s15 }
  0xf5   : > { %s563_s24 = sshll.u32 %s553_s13, 4  ;;  %p7209_p10 = pnand %p5869_p5, %p7166_p11  ;;  %s7213_s24 = int_to_ptr.vmem [resolvable:$true] %s563_s24 }
  0xf6   : > { %s7215_s11 = scalar_lea.sflag [#allocation6], %s549_s16 }
  0xf7   : > { %p6656_p1 = pneg %p7209_p10 }
  0xfa   : > { %s7205_s1 = scalar_lea.hbm %s8264_s0, %s5337_s21  ;;  %s6659_s15 = scalar_lea.hbm %s8264_s0, 1024 }
  0xfb   : > { %s6654_s4 = scalar_lea.hbm %s7205_s1, 512  ;;  %p6660_p11 = scmp.lt.u32.totalorder %s7205_s1, %s8264_s0 }
  0xfc   : > { %p6655_p8 = scmp.ne.s32.totalorder %s7205_s1, %s6654_s4  ;;  %p6661_p13 = scmp.lt.u32.totalorder %s6659_s15, %s6654_s4 }
  0xfd   : > { %p6663_p7 = scmp.lt.u32.totalorder %s6654_s4, %s7205_s1 }
  0xfe   : > { %p6657_p3 = pnand %p6656_p1, %p6655_p8  ;;  %p6662_p0 = por %p6661_p13, %p6660_p11 }
 0x100   : > { %p6658_p12 = pneg %p6657_p3  ;;  %p6664_p5 = por %p6663_p7, %p6662_p0 }
 0x102   : > { %p6665_p9 = pnand %p6664_p5, %p6658_p12 }
 0x104   : > { %6668 = shalt.err (!%p6665_p9)
}
 0x105   : > { %s6669_s16 = scalar_lea.vmem %s7213_s24, 512  ;;  %s6828_s21 = smov [#allocation5]  }
 0x106   : > { %p6670_p8 = scmp.ne.s32.totalorder %s7213_s24, %s6669_s16  ;;  %s6674_s26 = sshll.u32 %s6828_s21, 4  ;;  %s6675_s26 = int_to_ptr.vmem [resolvable:$false] %s6674_s26 }
 0x107   : > { %s6676_s30 = scalar_lea.vmem %s6675_s26, 1024  ;;  %p6677_p4 = scmp.lt.s32.totalorder %s7213_s24, %s6675_s26 }
 0x108   : > { %p6672_p3 = pnand %p6670_p8, %p6656_p1  ;;  %p6678_p11 = scmp.lt.s32.totalorder %s6676_s30, %s6669_s16 }
 0x10a   : > { %p6673_p6 = pneg %p6672_p3  ;;  %p6679_p13 = por %p6678_p11, %p6677_p4 }
 0x10c   : > { %p6680_p0 = pnand %p6679_p13, %p6673_p6 }
 0x10e   : > { %6683 = shalt.err (!%p6680_p0)
}
 0x10f   : > { %s8266_s4 = smov 4   ;;  %s8267_s15 = sld [smem:[#allocation31_spill]] }
 0x110   : > { %5856 = dma.hbm_to_vmem [thread:$0]  (!%p7209_p10), %s7205_s1, 512, %s7213_s24, %s7215_s11, %s8254_s6, %s8254_s6, %s8266_s4  }
 0x115   : > { %p8268_p9 = scmp.ne.s32.totalorder %s8267_s15, 0 }
 0x117   : > { %575 = sbr.rel (%p8268_p9) target bundleno = 3277 (0xccd), region = 76 }
 0x11e   : > { %s7249_s13 = sand.u32 1, %s6796_s19  }
 0x11f   : > { %s4976_s16 = sshll.u32 %s7249_s13, 5  ;;  %s578_s21 = scalar_lea.sflag [#allocation6], %s7249_s13 }
 0x120   : > { %s7253_s26 = scalar_lea.vmem [#allocation5], %s4976_s16 }
 0x121   : > { %6763 = dma.done.wait (%p7182_p2), %s578_s21, 512  }
 0x122   : > { %6765 = vsyncadd (%p7182_p2), %s578_s21, 4294966784  ;;  %p8269_p6 = scmp.ne.s32.totalorder %s8245_s25, 0 }
 0x124   : > { %6767 = dma.done.wait (%p8269_p6), [#allocation9], 3584  }
 0x125   : > { %6769 = vsyncadd (%p8269_p6), [#allocation9], 4294963712 }
 0x126   : > { %6771 = dma.done.wait (%p8269_p6), [#allocation12], 3072  }
 0x127   : > { %6773 = vsyncadd (%p8269_p6), [#allocation12], 4294964224 }
 0x128   : > { %6775 = dma.done.wait (%p8269_p6), [#allocation15], 5120  }
 0x129   : > { %6777 = vsyncadd (%p8269_p6), [#allocation15], 4294962176 }
 0x12a   : > { %6779 = dma.done.wait (%p8269_p6), [#allocation18], 3072  }
 0x12b   : > { %6781 = vsyncadd (%p8269_p6), [#allocation18], 4294964224  ;;  %s4985_s11 = sshll.u32 %s7249_s13, 7  ;;  %s8270_s9 = sld [smem:[#allocation30_spill]] }
 0x12c   : > { %s7276_s6 = scalar_lea.vmem [#allocation20], %s4985_s11 }
 0x131   : > { %p4986_p2 = scmp.ne.s32.totalorder %s8270_s9, 0 }
 0x132   : > { %v671_v0 = vld [vmem:[#allocation8] sm:$0xff] (!%p4986_p2)  ;;  %v672_v1 = vld [vmem:[#allocation8 + $0x8] sm:$0xff] (!%p4986_p2)  ;;  %v673_v2 = vld [vmem:[#allocation8 + $0x10] sm:$0xff] (!%p4986_p2) }
 0x133   : > { %670 = sbr.rel (%p4986_p2) target bundleno = 314 (0x13a), region = 116  ;;  %675 = vst [vmem:[#allocation2] sm:$0xff] (!%p4986_p2), %v671_v0  ;;  %676 = vst [vmem:[#allocation2 + $0x8] sm:$0xff] (!%p4986_p2), %v672_v1  ;;  %v674_v3 = vld [vmem:[#allocation8 + $0x18] sm:$0xff] (!%p4986_p2) }
 0x134   : > { %677 = vst [vmem:[#allocation2 + $0x10] sm:$0xff] (!%p4986_p2), %v673_v2  ;;  %678 = vst [vmem:[#allocation2 + $0x18] sm:$0xff] (!%p4986_p2), %v674_v3 }
 0x13a PF: > { %v5951_v4 = vld [vmem:[#allocation10 + $0x4] ss:$12 sps:$4 sm:$0xff]   ;;  %v8230_v6 = vmov 0   ;;  %v5955_v7 = vld [vmem:[#allocation10] ss:$12 sps:$4 sm:$0xff]   ;;  %v6008_v50 = vld [vmem:[%s7253_s26 + $0x18] sm:$0xff]   ;;  %v1060_v1 = vlaneseq }
 0x13b   : > { %v5953_v5 = vld [vmem:[#allocation11 + $0x4] ss:$8 sps:$4 sm:$0xff]   ;;  %903 = vmatprep.mubr.bf16.mxu1 %v8230_v6  ;;  %1182 = vmatprep.mubr.bf16.mxu0 %v8230_v6  ;;  %v5956_v8 = vld [vmem:[#allocation11] ss:$8 sps:$4 sm:$0xff]   ;;  %v5959_v10 = vld [vmem:[#allocation11 + $0x14] ss:$8 sps:$4 sm:$0xff]  }
 0x13c   : > { %871 = vmatprep.subr.bf16.mxu1 %v5951_v4  ;;  %1150 = vmatprep.subr.bf16.mxu0 %v5953_v5  ;;  %v5957_v9 = vld [vmem:[#allocation10 + $0x1c] ss:$12 sps:$4 sm:$0xff]   ;;  %v5961_v11 = vld [vmem:[#allocation10 + $0x18] ss:$12 sps:$4 sm:$0xff]   ;;  %v5963_v13 = vld [vmem:[#allocation10 + $0x34] ss:$12 sps:$4 sm:$0xff]  }
 0x13d   : > { %872 = vmatpush1.bf16.msra.mxu1 %v5955_v7  ;;  %1151 = vmatpush1.bf16.msra.mxu0 %v5956_v8  ;;  %v5962_v12 = vld [vmem:[#allocation11 + $0x10] ss:$8 sps:$4 sm:$0xff]   ;;  %v5965_v14 = vld [vmem:[#allocation11 + $0x24] ss:$8 sps:$4 sm:$0xff]   ;;  %v5968_v16 = vld [vmem:[#allocation11 + $0x20] ss:$8 sps:$4 sm:$0xff]  }
 0x13e   : > { %873 = vmatprep.subr.bf16.mxu1 %v5957_v9  ;;  %1152 = vmatprep.subr.bf16.mxu0 %v5959_v10  ;;  %v5967_v15 = vld [vmem:[#allocation10 + $0x30] ss:$12 sps:$4 sm:$0xff]   ;;  %v5969_v17 = vld [vmem:[#allocation10 + $0x4c] ss:$12 sps:$4 sm:$0xff]   ;;  %v5973_v19 = vld [vmem:[#allocation10 + $0x48] ss:$12 sps:$4 sm:$0xff]  }
 0x13f   : > { %v5971_v18 = vld [vmem:[#allocation11 + $0x34] ss:$8 sps:$4 sm:$0xff]   ;;  %v5974_v20 = vld [vmem:[#allocation11 + $0x30] ss:$8 sps:$4 sm:$0xff]   ;;  %v5977_v22 = vld [vmem:[#allocation11 + $0x44] ss:$8 sps:$4 sm:$0xff]  }
 0x140   : > { %v5975_v21 = vld [vmem:[#allocation10 + $0x64] ss:$12 sps:$4 sm:$0xff]   ;;  %v5979_v23 = vld [vmem:[#allocation10 + $0x60] ss:$12 sps:$4 sm:$0xff]   ;;  %v5981_v25 = vld [vmem:[#allocation10 + $0x7c] ss:$12 sps:$4 sm:$0xff]  }
 0x141   : > { %874 = vmatpush1.bf16.msra.mxu1 %v5961_v11  ;;  %1153 = vmatpush1.bf16.msra.mxu0 %v5962_v12  ;;  %v5980_v24 = vld [vmem:[#allocation11 + $0x40] ss:$8 sps:$4 sm:$0xff]   ;;  %v5983_v26 = vld [vmem:[#allocation11 + $0x54] ss:$8 sps:$4 sm:$0xff]   ;;  %v5985_v27 = vld [vmem:[#allocation10 + $0x78] ss:$12 sps:$4 sm:$0xff]  }
 0x142   : > { %875 = vmatprep.subr.bf16.mxu1 %v5963_v13  ;;  %1154 = vmatprep.subr.bf16.mxu0 %v5965_v14  ;;  %v5986_v28 = vld [vmem:[#allocation11 + $0x50] ss:$8 sps:$4 sm:$0xff]   ;;  %v5987_v29 = vld [vmem:[#allocation10 + $0x94] ss:$12 sps:$4 sm:$0xff]   ;;  %v5989_v30 = vld [vmem:[#allocation11 + $0x64] ss:$8 sps:$4 sm:$0xff]  }
 0x143   : > { %v5991_v31 = vld [vmem:[#allocation10 + $0x90] ss:$12 sps:$4 sm:$0xff]   ;;  %v5992_v32 = vld [vmem:[#allocation11 + $0x60] ss:$8 sps:$4 sm:$0xff]   ;;  %v5993_v33 = vld [vmem:[#allocation10 + $0xac] ss:$12 sps:$4 sm:$0xff]  }
 0x144   : > { %v5995_v34 = vld [vmem:[#allocation11 + $0x74] ss:$8 sps:$4 sm:$0xff]   ;;  %v5998_v36 = vld [vmem:[#allocation11 + $0x70] ss:$8 sps:$4 sm:$0xff]   ;;  %v7281_v37 = vld [vmem:[#allocation2] sm:$0xff]  ;;  %v8228_v53 = vmov 0.0  }
 0x145   : > { %876 = vmatpush1.bf16.msra.mxu1 %v5967_v15  ;;  %1155 = vmatpush1.bf16.msra.mxu0 %v5968_v16  ;;  %v5997_v35 = vld [vmem:[#allocation10 + $0xa8] ss:$12 sps:$4 sm:$0xff]   ;;  %v5999_v40 = vld [vmem:[%s7253_s26] sm:$0xff]   ;;  %v6004_v45 = vld [vmem:[#allocation10 + $0x50] ss:$12 sps:$4 sm:$0xff]   ;;  %vm6831_vm0 = vmmov 0  }
 0x146   : > { %877 = vmatprep.subr.bf16.mxu1 %v5969_v17  ;;  %1156 = vmatprep.subr.bf16.mxu0 %v5971_v18  ;;  %v7283_v38 = vld [vmem:[#allocation2 + $0x8] sm:$0xff]  ;;  %v6003_v43 = vld [vmem:[#allocation10 + $0x38] ss:$12 sps:$4 sm:$0xff]   ;;  %v6005_v47 = vld [vmem:[%s7253_s26 + $0x10] sm:$0xff]   ;;  %v1061_v2 = vshrl.u32 %v1060_v1, 7  ;;  %s8271_s24 = sld [smem:[#allocation43_spill]] }
 0x147   : > { %v6000_v39 = vld [vmem:[#allocation10 + $0x8] ss:$12 sps:$4 sm:$0xff]   ;;  %v1035_v41 = vpack.c.bf16 %v7283_v38, %v7281_v37  ;;  %v6001_v42 = vld [vmem:[#allocation10 + $0x20] ss:$12 sps:$4 sm:$0xff]   ;;  %v6009_v49 = vld [vmem:[#allocation10 + $0x98] ss:$12 sps:$4 sm:$0xff]  }
 0x148   : > { %v6002_v44 = vld [vmem:[%s7253_s26 + $0x8] sm:$0xff]   ;;  %v6010_v51 = vld [vmem:[#allocation10 + $0xb0] ss:$12 sps:$4 sm:$0xff]   ;;  %v6011_v52 = vld [vmem:[#allocation13] sm:$0xff]   ;;  %v7318_v3 = vsub.s32 0, %v1061_v2  ;;  %v7323_v5 = vsub.s32 1, %v1061_v2 }
 0x149   : > { %878 = vmatpush1.bf16.msra.mxu1 %v5973_v19  ;;  %1157 = vmatpush1.bf16.msra.mxu0 %v5974_v20  ;;  %v6006_v46 = vld [vmem:[#allocation10 + $0x68] ss:$12 sps:$4 sm:$0xff]   ;;  %v6007_v48 = vld [vmem:[#allocation10 + $0x80] ss:$12 sps:$4 sm:$0xff]   ;;  %v6014_v56 = vld [vmem:[#allocation13 + $0x18] sm:$0xff]   ;;  %s8279_s9 = sld [smem:[#allocation45_spill]] }
 0x14a   : > { %879 = vmatprep.subr.bf16.mxu1 %v5975_v21  ;;  %1158 = vmatprep.subr.bf16.mxu0 %v5977_v22  ;;  %v6012_v54 = vld [vmem:[#allocation13 + $0x8] sm:$0xff]   ;;  %v6013_v55 = vld [vmem:[#allocation13 + $0x10] sm:$0xff]   ;;  %v6015_v57 = vld [vmem:[#allocation13 + $0x20] sm:$0xff]   ;;  %s8282_s17 = sld [smem:[#allocation46_spill]]  ;;  %s8283_s15 = sld [smem:[#allocation47_spill]] }
 0x14b   : > { %v6016_v58 = vld [vmem:[#allocation13 + $0x28] sm:$0xff]   ;;  %v6017_v59 = vld [vmem:[#allocation13 + $0x30] sm:$0xff]   ;;  %v6018_v60 = vld [vmem:[#allocation13 + $0x38] sm:$0xff]   ;;  %s8291_s30 = sld [smem:[#allocation48_spill]]  ;;  %s8292_s4 = sld [smem:[#allocation30_spill]] }
 0x14c   : > { %v7306_v61 = vld [vmem:[#allocation14] ss:$12 sps:$4 sm:$0xff]   ;;  %v7308_v62 = vld [vmem:[#allocation14 + $0x4] ss:$12 sps:$4 sm:$0xff]   ;;  %v7310_v63 = vld [vmem:[#allocation14 + $0x1c] ss:$12 sps:$4 sm:$0xff]  }
 0x14d   : > { %880 = vmatpush1.bf16.msra.mxu1 %v5979_v23  ;;  %1159 = vmatpush1.bf16.msra.mxu0 %v5980_v24  ;;  %v7314_v0 = vld [vmem:[#allocation14 + $0x18] ss:$12 sps:$4 sm:$0xff]   ;;  %v1058_v4 = vld [vmem:[%s8271_s24] sm:$0x3] }
 0x14e   : > { %881 = vmatprep.subr.bf16.mxu1 %v5981_v25  ;;  %1160 = vmatprep.subr.bf16.mxu0 %v5983_v26  ;;  %v1063_v7 = vrot.slane %v1058_v4, %v7318_v3  ;;  %v1067_v8 = vrot.slane %v1058_v4, %v7323_v5  ;;  %v7330_v21 = vld [vmem:[%s8271_s24] sm:$0x3] }
 0x151   : > { %882 = vmatpush1.bf16.msra.mxu1 %v5985_v27  ;;  %1161 = vmatpush1.bf16.msra.mxu0 %v5986_v28  ;;  %v1943_v27 = vrot.slane %v7330_v21, %v7323_v5  ;;  %p5327_p4 = scmp.ne.s32.totalorder %s8292_s4, 1 }
 0x152   : > { %883 = vmatprep.subr.bf16.mxu1 %v5987_v29  ;;  %1162 = vmatprep.subr.bf16.mxu0 %v5989_v30 }
 0x155   : > { %884 = vmatpush1.bf16.msra.mxu1 %v5991_v31  ;;  %1163 = vmatpush1.bf16.msra.mxu0 %v5992_v32 }
 0x156   : > { %885 = vmatprep.subr.bf16.mxu1 %v5993_v33  ;;  %1164 = vmatprep.subr.bf16.mxu0 %v5995_v34 }
 0x159   : > { %886 = vmatpush1.bf16.msra.mxu1 %v5997_v35  ;;  %1165 = vmatpush1.bf16.msra.mxu0 %v5998_v36  ;;  %v7347_v36 = vld [vmem:[%s8271_s24] sm:$0x3] }
 0x15a   : > { %5460 = vmatprep.subr.bf16.mxu1 %v6000_v39  ;;  %1515 = vmatprep.subr.bf16.mxu0 %v7308_v62 }
 0x15c   : > { %904 = vmatmul.mubr.bf16.vlgmr.msra.gmra.mrb[0].mxu1 %v5999_v40  ;;  %1183 = vmatmul.mubr.bf16.vlgmr.msra.gmra.mrb[0].mxu0 %v1035_v41 }
 0x15d   : > { %5461 = vmatpush3.bf16.msra.mxu1 %v6000_v39  ;;  %913 = vmatprep.mubr.bf16.mxu1 %v8230_v6 }
 0x15e   : > { %5462 = vmatprep.subr.bf16.mxu1 %v6001_v42  ;;  %1547 = vmatprep.mubr.bf16.mxu0 %v8230_v6 }
 0x15f   : > { %1516 = vmatpush1.bf16.msra.mxu0 %v7306_v61 }
 0x160   : > { %1517 = vmatprep.subr.bf16.mxu0 %v7310_v63 }
 0x161   : > { %5463 = vmatpush3.bf16.msra.mxu1 %v6001_v42 }
 0x162   : > { %5464 = vmatprep.subr.bf16.mxu1 %v6003_v43 }
 0x163   : > { %1518 = vmatpush1.bf16.msra.mxu0 %v7314_v0 }
 0x164   : > { %914 = vmatmul.mubr.bf16.gmra.mrb[4].mxu1 %v6002_v44 }
 0x165   : > { %5465 = vmatpush3.bf16.msra.mxu1 %v6003_v43  ;;  %923 = vmatprep.mubr.bf16.mxu1 %v8230_v6 }
 0x166   : > { %5466 = vmatprep.subr.bf16.mxu1 %v6004_v45 }
 0x169   : > { %5467 = vmatpush3.bf16.msra.mxu1 %v6004_v45 }
 0x16a   : > { %5468 = vmatprep.subr.bf16.mxu1 %v6006_v46 }
 0x16c   : > { %924 = vmatmul.mubr.bf16.gmra.mrb[8].mxu1 %v6005_v47 }
 0x16d   : > { %5469 = vmatpush3.bf16.msra.mxu1 %v6006_v46  ;;  %933 = vmatprep.mubr.bf16.mxu1 %v8230_v6 }
 0x16e   : > { %5470 = vmatprep.subr.bf16.mxu1 %v6007_v48 }
 0x171   : > { %5471 = vmatpush3.bf16.msra.mxu1 %v6007_v48 }
 0x172   : > { %5472 = vmatprep.subr.bf16.mxu1 %v6009_v49 }
 0x174   : > { %934 = vmatmul.mubr.bf16.gmra.mrb[12].mxu1 %v6008_v50 }
 0x175   : > { %5473 = vmatpush3.bf16.msra.mxu1 %v6009_v49  ;;  %5476 = vmatprep.mubr.bf16.mxu1 %v5999_v40  ;;  %v2818_v40 = vrot.slane %v7347_v36, %v7323_v5 }
 0x176   : > { %5474 = vmatprep.subr.bf16.mxu1 %v6010_v51 }
 0x179   : > { %5475 = vmatpush3.bf16.msra.mxu1 %v6010_v51 }
 0x17a   : > { %5484 = vmatprep.subr.bf16.mxu1 %v8228_v53 }
 0x17c   : > { %5477 = vmatmul.mubr.bf16.vlgmr.msra.gmra.mrb[16].mxu1 %v6002_v44 }
 0x17d   : > { %5480 = vmatprep.mubr.bf16.mxu1 %v6005_v47  ;;  %5485 = vmatpush3.bf16.msra.mxu1 %v6011_v52  ;;  %v3684_v47 = vld [vmem:[%s8271_s24] sm:$0x3] }
 0x17e   : > { %5486 = vmatprep.subr.bf16.mxu1 %v8228_v53  ;;  %v3693_v52 = vrot.slane %v3684_v47, %v7323_v5  ;;  %v7432_v47 = vld [vmem:[#allocation16 + $0x4] ss:$8 sps:$4 sm:$0xff]  }
 0x181   : > { %5487 = vmatpush3.bf16.msra.mxu1 %v6012_v54 }
 0x182   : > { %5488 = vmatprep.subr.bf16.mxu1 %v8228_v53 }
 0x184   : > { %5481 = vmatmul.mubr.bf16.gmra.mrb[20].mxu1 %v6008_v50 }
 0x185   : > { %5489 = vmatpush3.bf16.msra.mxu1 %v6013_v55  ;;  %5500 = vmatprep.mubr.msk.bf16.mxu1 %vm6831_vm0, %v8228_v53 }
 0x186   : > { %5490 = vmatprep.subr.bf16.mxu1 %v8228_v53 }
 0x189   : > { %5491 = vmatpush3.bf16.msra.mxu1 %v6014_v56 }
 0x18a   : > { %5492 = vmatprep.subr.bf16.mxu1 %v8228_v53 }
 0x18d   : > { %5493 = vmatpush3.bf16.msra.mxu1 %v6015_v57 }
 0x18e   : > { %5494 = vmatprep.subr.bf16.mxu1 %v8228_v53 }
 0x191   : > { %5495 = vmatpush3.bf16.msra.mxu1 %v6016_v58 }
 0x192   : > { %5496 = vmatprep.subr.bf16.mxu1 %v8228_v53 }
 0x195   : > { %5497 = vmatpush3.bf16.msra.mxu1 %v6017_v59 }
 0x196   : > { %5498 = vmatprep.subr.bf16.mxu1 %v8228_v53 }
 0x199   : > { %5499 = vmatpush3.bf16.msra.mxu1 %v6018_v60 }
 0x19a   : > { %5504 = vmatprep.subr.bf16.mxu1 %v8228_v53 }
 0x22f   : > { %v905_v9 = vpop.f32.mrb[0].mxu1  ;;  %v1184_v10 = vpop.f32.mrb[0].mxu0 }
 0x230   : > { %v5724_v11 = vadd.f32 %v1063_v7, %v905_v9  ;;  %v907_v12 = vpop.f32.mrb[1].mxu1  ;;  %v1186_v13 = vpop.f32.mrb[1].mxu0  ;;  %v6026_v9 = vld [vmem:[#allocation14 + $0x20] ss:$12 sps:$4 sm:$0xff]  }
 0x231   : > { %v5726_v14 = vadd.f32 %v1067_v8, %v907_v12  ;;  %v909_v15 = vpop.f32.mrb[2].mxu1  ;;  %v1188_v16 = vpop.f32.mrb[2].mxu0 }
 0x232   : > { %v5725_v17 = vadd.f32 %v5724_v11, %v1184_v10  ;;  %v5728_v18 = vadd.f32 %v1063_v7, %v909_v15  ;;  %v911_v19 = vpop.f32.mrb[3].mxu1  ;;  %v1190_v20 = vpop.f32.mrb[3].mxu0  ;;  %v6022_v7 = vld [vmem:[#allocation14 + $0x8] ss:$12 sps:$4 sm:$0xff]  }
 0x233   : > { %v7332_v22 = vadd.f32 %v5726_v14, %v1186_v13  ;;  %v5730_v23 = vadd.f32 %v1067_v8, %v911_v19  ;;  %v7399_v19 = vld [vmem:[#allocation14 + $0x4c] ss:$12 sps:$4 sm:$0xff]  }
 0x234   : > { %v1195_v24 = vsub.f32 0.0, %v5725_v17  ;;  %v5729_v25 = vadd.f32 %v5728_v18, %v1188_v16  ;;  %v7393_v16 = vld [vmem:[#allocation14 + $0x34] ss:$12 sps:$4 sm:$0xff]   ;;  %v7395_v17 = vld [vmem:[#allocation14 + $0x30] ss:$12 sps:$4 sm:$0xff]  }
 0x235   : > { %v7334_v26 = vadd.f32 %v5730_v23, %v1190_v20  ;;  %1519 = vmatprep.subr.bf16.mxu0 %v7393_v16  ;;  %v6030_v18 = vld [vmem:[#allocation14 + $0x38] ss:$12 sps:$4 sm:$0xff]   ;;  %v7401_v20 = vld [vmem:[#allocation14 + $0x48] ss:$12 sps:$4 sm:$0xff]   ;;  %v6034_v23 = vld [vmem:[#allocation14 + $0x50] ss:$12 sps:$4 sm:$0xff]  }
 0x236   : > { %v1197_v28 = vmul.f32 1.442695, %v1195_v24  ;;  %v1196_v29 = vsub.f32 0.0, %v5729_v25  ;;  %1520 = vmatpush1.bf16.msra.mxu0 %v7395_v17  ;;  %v7406_v24 = vld [vmem:[#allocation14 + $0x60] ss:$12 sps:$4 sm:$0xff]  }
 0x237   : > { %v7338_v30 = vpop.f32.mrb[4].mxu1  ;;  %1521 = vmatprep.subr.bf16.mxu0 %v7399_v19  ;;  %v7408_v25 = vld [vmem:[#allocation14 + $0x64] ss:$12 sps:$4 sm:$0xff]  }
 0x238   : > { %6251 = vpow2.f32 %v1197_v28  ;;  %v1199_v31 = vmul.f32 1.442695, %v1196_v29  ;;  %v917_v32 = vpop.f32.mrb[5].mxu1  ;;  %v7411_v28 = vld [vmem:[#allocation14 + $0x7c] ss:$12 sps:$4 sm:$0xff]  }
 0x239   : > { %v7340_v33 = vadd.f32 %v1943_v27, %v917_v32  ;;  %v7342_v34 = vpop.f32.mrb[6].mxu1  ;;  %v7415_v29 = vld [vmem:[#allocation14 + $0x78] ss:$12 sps:$4 sm:$0xff]   ;;  %v7418_v32 = vld [vmem:[#allocation14 + $0x94] ss:$12 sps:$4 sm:$0xff]  }
 0x23a   : > { %6253 = vpow2.f32 %v1199_v31  ;;  %v921_v35 = vpop.f32.mrb[7].mxu1  ;;  %1522 = vmatpush1.bf16.msra.mxu0 %v7401_v20  ;;  %v6042_v31 = vld [vmem:[#allocation14 + $0x80] ss:$12 sps:$4 sm:$0xff]  }
 0x23b   : > { %v7349_v39 = vadd.f32 %v1943_v27, %v921_v35  ;;  %v6038_v27 = vld [vmem:[#allocation14 + $0x68] ss:$12 sps:$4 sm:$0xff]   ;;  %1523 = vmatprep.subr.bf16.mxu0 %v7408_v25  ;;  %v7422_v35 = vld [vmem:[#allocation14 + $0x90] ss:$12 sps:$4 sm:$0xff]  }
 0x23e   : > { %1524 = vmatpush1.bf16.msra.mxu0 %v7406_v24 }
 0x23f   : > { %v7353_v41 = vpop.f32.mrb[8].mxu1  ;;  %1525 = vmatprep.subr.bf16.mxu0 %v7411_v28 }
 0x240   : > { %v927_v42 = vpop.f32.mrb[9].mxu1 }
 0x241   : > { %v7355_v43 = vadd.f32 %v2818_v40, %v927_v42  ;;  %v7357_v44 = vpop.f32.mrb[10].mxu1  ;;  %v7425_v42 = vld [vmem:[#allocation14 + $0xac] ss:$12 sps:$4 sm:$0xff]  }
 0x242   : > { %v6252_v45 = vpop.eup %6251  ;;  %v931_v46 = vpop.f32.mrb[11].mxu1  ;;  %1526 = vmatpush1.bf16.msra.mxu0 %v7415_v29 }
 0x243   : > { %v1201_v48 = vadd.f32 1.0, %v6252_v45  ;;  %v7362_v49 = vadd.f32 %v2818_v40, %v931_v46  ;;  %1527 = vmatprep.subr.bf16.mxu0 %v7418_v32  ;;  %v6046_v40 = vld [vmem:[#allocation14 + $0x98] ss:$12 sps:$4 sm:$0xff]   ;;  %v7429_v45 = vld [vmem:[#allocation14 + $0xa8] ss:$12 sps:$4 sm:$0xff]  }
 0x244   : > { %v6254_v50 = vpop.eup %6253  ;;  %v6050_v46 = vld [vmem:[#allocation14 + $0xb0] ss:$12 sps:$4 sm:$0xff]  }
 0x245   : > { %6255 = vrcp.f32 %v1201_v48  ;;  %v1202_v51 = vadd.f32 1.0, %v6254_v50  ;;  %v1209_v48 = vsub.f32 0.0, %v7332_v22  ;;  %v1210_v50 = vsub.f32 0.0, %v7334_v26 }
 0x246   : > { %1528 = vmatpush1.bf16.msra.mxu0 %v7422_v35 }
 0x247   : > { %6257 = vrcp.f32 %v1202_v51  ;;  %v7365_v54 = vpop.f32.mrb[12].mxu1  ;;  %1529 = vmatprep.subr.bf16.mxu0 %v7425_v42  ;;  %v1211_v51 = vmul.f32 1.442695, %v1209_v48  ;;  %v6412_v48 = vld [vmem:[#allocation2 + $0x8] sm:$0xff] }
 0x248   : > { %8272 = vst [vmem:[#allocation32_spill] sm:$0xff] %v7365_v54  ;;  %v937_v55 = vpop.f32.mrb[13].mxu1  ;;  %v6420_v54 = vld [vmem:[#allocation11 + $0x30] ss:$8 sps:$4 sm:$0xff]  }
 0x249   : > { %v7367_v56 = vadd.f32 %v3693_v52, %v937_v55  ;;  %v7369_v57 = vpop.f32.mrb[14].mxu1  ;;  %6259 = vpow2.f32 %v1211_v51 }
 0x24a   : > { %8274 = vst [vmem:[#allocation34_spill] sm:$0xff] %v7369_v57  ;;  %v941_v58 = vpop.f32.mrb[15].mxu1  ;;  %1530 = vmatpush1.bf16.msra.mxu0 %v7429_v45  ;;  %v6419_v57 = vld [vmem:[#allocation11 + $0x34] ss:$8 sps:$4 sm:$0xff]  }
 0x24b   : > { %8273 = vst [vmem:[#allocation33_spill] sm:$0xff] %v7367_v56  ;;  %v7371_v59 = vadd.f32 %v3693_v52, %v941_v58  ;;  %1707 = vmatprep.subr.bf16.mxu0 %v7432_v47  ;;  %v1213_v52 = vmul.f32 1.442695, %v1210_v50  ;;  %v6418_v56 = vld [vmem:[#allocation11 + $0x20] ss:$8 sps:$4 sm:$0xff]  }
 0x24d   : > { %8275 = vst [vmem:[#allocation35_spill] sm:$0xff] %v7371_v59  ;;  %6261 = vpow2.f32 %v1213_v52  ;;  %v6417_v59 = vld [vmem:[#allocation11 + $0x24] ss:$8 sps:$4 sm:$0xff]  }
 0x24f   : > { %v6256_v60 = vpop.eup %6255  ;;  %v7379_v10 = vpop.f32.mrb[16].mxu1 }
 0x250   : > { %v1221_v2 = vmul.f32 %v6256_v60, %v7281_v37  ;;  %v978_v11 = vpop.f32.mrb[17].mxu1  ;;  %v7443_v60 = vld [vmem:[%s8279_s9] ss:$0 sm:$0xff] }
 0x251   : > { %v6258_v1 = vpop.eup %6257  ;;  %v7381_v12 = vpop.f32.mrb[18].mxu1 }
 0x252   : > { %v1222_v4 = vmul.f32 %v6258_v1, %v7283_v38  ;;  %v7383_v37 = vpop.f32.mrb[19].mxu1 }
 0x253   : > { %v6260_v55 = vpop.eup %6259 }
 0x254   : > { %v1223_v8 = vpack.c.bf16 %v1222_v4, %v1221_v2 }
 0x256   : > { %5501 = vmatmul.mubr.bf16.vlgmr.msra.gmra.mrb[24].mxu1 %v1223_v8 }
 0x257   : > { %5505 = vmatpush3.bf16.msra.mxu1 %v6022_v7  ;;  %5520 = vmatprep.mubr.msk.bf16.mxu1 %vm6831_vm0, %v8228_v53  ;;  %v7385_v38 = vpop.f32.mrb[20].mxu1  ;;  %v6262_v4 = vpop.eup %6261  ;;  %v1215_v7 = vadd.f32 1.0, %v6260_v55 }
 0x258   : > { %5506 = vmatprep.subr.bf16.mxu1 %v8228_v53  ;;  %8276 = vst [vmem:[#allocation36_spill] sm:$0xff] %v7385_v38  ;;  %v7387_v13 = vpop.f32.mrb[21].mxu1  ;;  %v6416_v38 = vld [vmem:[#allocation11 + $0x10] ss:$8 sps:$4 sm:$0xff]  }
 0x259   : > { %v7389_v14 = vpop.f32.mrb[22].mxu1 }
 0x25a   : > { %8277 = vst [vmem:[#allocation37_spill] sm:$0xff] %v7389_v14  ;;  %v7391_v15 = vpop.f32.mrb[23].mxu1  ;;  %v6415_v14 = vld [vmem:[#allocation11 + $0x14] ss:$8 sps:$4 sm:$0xff]  }
 0x25b   : > { %5507 = vmatpush3.bf16.msra.mxu1 %v6026_v9  ;;  %8278 = vst [vmem:[#allocation38_spill] sm:$0xff] %v7391_v15  ;;  %v6421_v15 = vld [vmem:[#allocation11 + $0x44] ss:$8 sps:$4 sm:$0xff]  }
 0x25c   : > { %5508 = vmatprep.subr.bf16.mxu1 %v8228_v53 }
 0x25f   : > { %5509 = vmatpush3.bf16.msra.mxu1 %v6030_v18  ;;  %v1216_v18 = vadd.f32 1.0, %v6262_v4  ;;  %v7458_v4 = vld [vmem:[#allocation16 + $0x14] ss:$8 sps:$4 sm:$0xff]  }
 0x260   : > { %5510 = vmatprep.subr.bf16.mxu1 %v8228_v53 }
 0x263   : > { %5511 = vmatpush3.bf16.msra.mxu1 %v6034_v23 }
 0x264   : > { %5512 = vmatprep.subr.bf16.mxu1 %v8228_v53 }
 0x267   : > { %5513 = vmatpush3.bf16.msra.mxu1 %v6038_v27 }
 0x268   : > { %5514 = vmatprep.subr.bf16.mxu1 %v8228_v53 }
 0x26b   : > { %5515 = vmatpush3.bf16.msra.mxu1 %v6042_v31 }
 0x26c   : > { %5516 = vmatprep.subr.bf16.mxu1 %v8228_v53 }
 0x26f   : > { %5517 = vmatpush3.bf16.msra.mxu1 %v6046_v40  ;;  %v6411_v40 = vld [vmem:[#allocation2] sm:$0xff] }
 0x270   : > { %5518 = vmatprep.subr.bf16.mxu1 %v8228_v53 }
 0x273   : > { %5519 = vmatpush3.bf16.msra.mxu1 %v6050_v46 }
 0x274   : > { %5524 = vmatprep.subr.bf16.mxu1 %v8228_v53 }
 0x329   : > { %v1322_v58 = vpop.f32.mrb[24].mxu1 }
 0x32a   : > { %v1329_v1 = vadd.f32 %v1322_v58, %v978_v11  ;;  %v5502_v2 = vpop.f32.mrb[25].mxu1 }
 0x32b   : > { %v1325_v8 = vpop.f32.mrb[26].mxu1 }
 0x32c   : > { %v1338_v22 = vadd.f32 %v7443_v60, %v1329_v1  ;;  %v1330_v26 = vadd.f32 %v1325_v8, %v7383_v37  ;;  %v5503_v9 = vpop.f32.mrb[27].mxu1  ;;  %v7452_v1 = vld [vmem:[#allocation16] ss:$8 sps:$4 sm:$0xff]   ;;  %v7467_v8 = vld [vmem:[#allocation16 + $0x24] ss:$8 sps:$4 sm:$0xff]  }
 0x32d   : > { %v7478_v9 = vld [vmem:[#allocation16 + $0x30] ss:$8 sps:$4 sm:$0xff]  }
 0x32e   : > { %6263 = vtanh.f32 %v1338_v22  ;;  %v1339_v23 = vadd.f32 %v7443_v60, %v1330_v26  ;;  %v7472_v22 = vld [vmem:[#allocation16 + $0x20] ss:$8 sps:$4 sm:$0xff]   ;;  %v7475_v26 = vld [vmem:[#allocation16 + $0x34] ss:$8 sps:$4 sm:$0xff]  }
 0x32f   : > { %6265 = vrcp.f32 %v1215_v7  ;;  %v7463_v7 = vld [vmem:[#allocation16 + $0x10] ss:$8 sps:$4 sm:$0xff]  }
 0x330   : > { %6267 = vtanh.f32 %v1339_v23  ;;  %v7484_v23 = vld [vmem:[#allocation16 + $0x40] ss:$8 sps:$4 sm:$0xff]  }
 0x331   : > { %6269 = vrcp.f32 %v1216_v18  ;;  %v7481_v18 = vld [vmem:[#allocation16 + $0x44] ss:$8 sps:$4 sm:$0xff]  }
 0x338   : > { %v6264_v27 = vpop.eup %6263 }
 0x339   : > { %v6266_v31 = vpop.eup %6265  ;;  %v1342_v11 = vsub.f32 %v6264_v27, %v6411_v40  ;;  %v7487_v27 = vld [vmem:[#allocation16 + $0x54] ss:$8 sps:$4 sm:$0xff]  }
 0x33a   : > { %v6268_v46 = vpop.eup %6267 }
 0x33b   : > { %v1343_v50 = vsub.f32 %v6268_v46, %v6412_v48  ;;  %v1344_v51 = vmul.f32 %v6266_v31, %v1342_v11  ;;  %v6270_v52 = vpop.eup %6269  ;;  %v7490_v31 = vld [vmem:[#allocation16 + $0x50] ss:$8 sps:$4 sm:$0xff]   ;;  %v7496_v11 = vld [vmem:[#allocation16 + $0x60] ss:$8 sps:$4 sm:$0xff]   ;;  %v7499_v46 = vld [vmem:[#allocation16 + $0x74] ss:$8 sps:$4 sm:$0xff]  }
 0x33d   : > { %v1345_v55 = vmul.f32 %v6270_v52, %v1343_v50  ;;  %v7448_v58 = vadd.f32 %v6411_v40, %v1344_v51  ;;  %v7493_v40 = vld [vmem:[#allocation16 + $0x64] ss:$8 sps:$4 sm:$0xff]   ;;  %v7504_v50 = vld [vmem:[#allocation2 + $0x10] sm:$0xff]  ;;  %v7506_v51 = vld [vmem:[#allocation2 + $0x18] sm:$0xff] }
 0x33e   : > { %v1354_v52 = vpack.c.bf16 %v7506_v51, %v7504_v50 }
 0x33f   : > { %v7450_v37 = vadd.f32 %v6412_v48, %v1345_v55  ;;  %v7502_v48 = vld [vmem:[#allocation16 + $0x70] ss:$8 sps:$4 sm:$0xff]   ;;  %v6413_v55 = vld [vmem:[#allocation11 + $0x4] ss:$8 sps:$4 sm:$0xff]  }
 0x341   : > { %v7456_v2 = vpack.c.bf16 %v7450_v37, %v7448_v58 }
 0x343   : > { %1548 = vmatmul.mubr.bf16.vlgmr.msra.gmra.mrb[4].mxu0 %v7456_v2  ;;  %5521 = vmatmul.mubr.bf16.vlgmr.msra.gmra.mrb[28].mxu1 %v7456_v2 }
 0x344   : > { %1708 = vmatpush1.bf16.msra.mxu0 %v7452_v1  ;;  %1739 = vmatprep.mubr.bf16.mxu0 %v8230_v6 }
 0x345   : > { %1709 = vmatprep.subr.bf16.mxu0 %v7458_v4  ;;  %5540 = vmatprep.mubr.msk.bf16.mxu1 %vm6831_vm0, %v8228_v53  ;;  %v6414_v53 = vld [vmem:[#allocation11] ss:$8 sps:$4 sm:$0xff]  }
 0x348   : > { %1710 = vmatpush1.bf16.msra.mxu0 %v7463_v7 }
 0x349   : > { %1711 = vmatprep.subr.bf16.mxu0 %v7467_v8 }
 0x34c   : > { %1712 = vmatpush1.bf16.msra.mxu0 %v7472_v22 }
 0x34d   : > { %1713 = vmatprep.subr.bf16.mxu0 %v7475_v26 }
 0x350   : > { %1714 = vmatpush1.bf16.msra.mxu0 %v7478_v9 }
 0x351   : > { %1715 = vmatprep.subr.bf16.mxu0 %v7481_v18 }
 0x354   : > { %1716 = vmatpush1.bf16.msra.mxu0 %v7484_v23 }
 0x355   : > { %1717 = vmatprep.subr.bf16.mxu0 %v7487_v27 }
 0x358   : > { %1718 = vmatpush1.bf16.msra.mxu0 %v7490_v31 }
 0x359   : > { %1719 = vmatprep.subr.bf16.mxu0 %v7493_v40 }
 0x35c   : > { %1720 = vmatpush1.bf16.msra.mxu0 %v7496_v11 }
 0x35d   : > { %1721 = vmatprep.subr.bf16.mxu0 %v7499_v46 }
 0x360   : > { %1722 = vmatpush1.bf16.msra.mxu0 %v7502_v48 }
 0x361   : > { %2026 = vmatprep.subr.bf16.mxu0 %v6413_v55  ;;  %v6422_v55 = vld [vmem:[#allocation11 + $0x40] ss:$8 sps:$4 sm:$0xff]  }
 0x363   : > { %1740 = vmatmul.mubr.bf16.vlgmr.msra.gmra.mrb[4].mxu0 %v1354_v52  ;;  %v6423_v52 = vld [vmem:[#allocation11 + $0x54] ss:$8 sps:$4 sm:$0xff]  }
 0x364   : > { %2027 = vmatpush1.bf16.msra.mxu0 %v6414_v53  ;;  %2058 = vmatprep.mubr.bf16.mxu0 %v8230_v6  ;;  %v6424_v53 = vld [vmem:[#allocation11 + $0x50] ss:$8 sps:$4 sm:$0xff]   ;;  %v6425_v6 = vld [vmem:[#allocation11 + $0x64] ss:$8 sps:$4 sm:$0xff]  }
 0x365   : > { %2028 = vmatprep.subr.bf16.mxu0 %v6415_v14  ;;  %v6426_v14 = vld [vmem:[#allocation11 + $0x60] ss:$8 sps:$4 sm:$0xff]  }
 0x368   : > { %2029 = vmatpush1.bf16.msra.mxu0 %v6416_v38  ;;  %v6427_v38 = vld [vmem:[#allocation11 + $0x74] ss:$8 sps:$4 sm:$0xff]  }
 0x369   : > { %2030 = vmatprep.subr.bf16.mxu0 %v6417_v59  ;;  %v6428_v59 = vld [vmem:[#allocation11 + $0x70] ss:$8 sps:$4 sm:$0xff]  }
 0x36c   : > { %2031 = vmatpush1.bf16.msra.mxu0 %v6418_v56  ;;  %v6079_v56 = vld [vmem:[#allocation17 + $0x20] sm:$0xff]  }
 0x36d   : > { %2032 = vmatprep.subr.bf16.mxu0 %v6419_v57  ;;  %v6080_v57 = vld [vmem:[#allocation17 + $0x28] sm:$0xff]  }
 0x370   : > { %2033 = vmatpush1.bf16.msra.mxu0 %v6420_v54  ;;  %v8280_v54 = vmov 0  }
 0x371   : > { %2034 = vmatprep.subr.bf16.mxu0 %v6421_v15  ;;  %v6081_v15 = vld [vmem:[#allocation17 + $0x30] sm:$0xff]  }
 0x374   : > { %2035 = vmatpush1.bf16.msra.mxu0 %v6422_v55 }
 0x375   : > { %2036 = vmatprep.subr.bf16.mxu0 %v6423_v52 }
 0x378   : > { %2037 = vmatpush1.bf16.msra.mxu0 %v6424_v53 }
 0x379   : > { %2038 = vmatprep.subr.bf16.mxu0 %v6425_v6  ;;  %v6075_v6 = vld [vmem:[#allocation17] sm:$0xff]  }
 0x37a   : > { %5525 = vmatpush3.bf16.msra.mxu1 %v6075_v6 }
 0x37c   : > { %2039 = vmatpush1.bf16.msra.mxu0 %v6426_v14 }
 0x37d   : > { %2040 = vmatprep.subr.bf16.mxu0 %v6427_v38 }
 0x380   : > { %2041 = vmatpush1.bf16.msra.mxu0 %v6428_v59 }
 0x381   : > { %2390 = vmatprep.subr.bf16.mxu0 %v7308_v62  ;;  %v6076_v62 = vld [vmem:[#allocation17 + $0x8] sm:$0xff]  }
 0x383   : > { %2059 = vmatmul.mubr.bf16.vlgmr.msra.gmra.mrb[8].mxu0 %v7456_v2 }
 0x384   : > { %2391 = vmatpush1.bf16.msra.mxu0 %v7306_v61  ;;  %2422 = vmatprep.mubr.bf16.mxu0 %v8280_v54  ;;  %v8281_v61 = vmov 0.0  }
 0x385   : > { %2392 = vmatprep.subr.bf16.mxu0 %v7310_v63  ;;  %5526 = vmatprep.subr.bf16.mxu1 %v8281_v61  ;;  %v6077_v63 = vld [vmem:[#allocation17 + $0x10] sm:$0xff]  }
 0x386   : > { %5527 = vmatpush3.bf16.msra.mxu1 %v6076_v62 }
 0x387   : > { %5528 = vmatprep.subr.bf16.mxu1 %v8281_v61 }
 0x388   : > { %2393 = vmatpush1.bf16.msra.mxu0 %v7314_v0  ;;  %v6078_v0 = vld [vmem:[#allocation17 + $0x18] sm:$0xff]  }
 0x389   : > { %2394 = vmatprep.subr.bf16.mxu0 %v7393_v16  ;;  %v6082_v16 = vld [vmem:[#allocation17 + $0x38] sm:$0xff]  }
 0x38a   : > { %5529 = vmatpush3.bf16.msra.mxu1 %v6077_v63 }
 0x38b   : > { %5530 = vmatprep.subr.bf16.mxu1 %v8281_v61 }
 0x38c   : > { %2395 = vmatpush1.bf16.msra.mxu0 %v7395_v17 }
 0x38d   : > { %2396 = vmatprep.subr.bf16.mxu0 %v7399_v19 }
 0x38e   : > { %5531 = vmatpush3.bf16.msra.mxu1 %v6078_v0 }
 0x38f   : > { %5532 = vmatprep.subr.bf16.mxu1 %v8281_v61 }
 0x390   : > { %2397 = vmatpush1.bf16.msra.mxu0 %v7401_v20 }
 0x391   : > { %2398 = vmatprep.subr.bf16.mxu0 %v7408_v25  ;;  %v1615_v25 = vld [vmem:[%s8282_s17] sm:$0x3] }
 0x392   : > { %5533 = vmatpush3.bf16.msra.mxu1 %v6079_v56  ;;  %v1939_v56 = vrot.slane %v7330_v21, %v7318_v3 }
 0x393   : > { %5534 = vmatprep.subr.bf16.mxu1 %v8281_v61 }
 0x394   : > { %2399 = vmatpush1.bf16.msra.mxu0 %v7406_v24 }
 0x395   : > { %2400 = vmatprep.subr.bf16.mxu0 %v7411_v28  ;;  %v1620_v28 = vrot.slane %v1615_v25, %v7318_v3 }
 0x396   : > { %5535 = vmatpush3.bf16.msra.mxu1 %v6080_v57 }
 0x397   : > { %5536 = vmatprep.subr.bf16.mxu1 %v8281_v61 }
 0x398   : > { %2401 = vmatpush1.bf16.msra.mxu0 %v7415_v29  ;;  %v1624_v29 = vrot.slane %v1615_v25, %v7323_v5 }
 0x399   : > { %2402 = vmatprep.subr.bf16.mxu0 %v7418_v32 }
 0x39a   : > { %5537 = vmatpush3.bf16.msra.mxu1 %v6081_v15  ;;  %v5732_v15 = vadd.f32 %v1939_v56, %v7338_v30 }
 0x39b   : > { %5538 = vmatprep.subr.bf16.mxu1 %v8281_v61 }
 0x39c   : > { %2403 = vmatpush1.bf16.msra.mxu0 %v7422_v35 }
 0x39d   : > { %2404 = vmatprep.subr.bf16.mxu0 %v7425_v42 }
 0x39e   : > { %5539 = vmatpush3.bf16.msra.mxu1 %v6082_v16 }
 0x39f   : > { %5544 = vmatprep.subr.bf16.mxu1 %v8281_v61 }
 0x3a0   : > { %2405 = vmatpush1.bf16.msra.mxu0 %v7429_v45 }
 0x3a1   : > { %2582 = vmatprep.subr.bf16.mxu0 %v7432_v47 }
 0x416   : > { %v7540_v17 = vpop.f32.mrb[28].mxu1 }
 0x417   : > { %v5522_v19 = vpop.f32.mrb[29].mxu1 }
 0x418   : > { %v7542_v20 = vpop.f32.mrb[30].mxu1 }
 0x419   : > { %v5523_v24 = vpop.f32.mrb[31].mxu1 }
 0x41a   : > { %v5736_v24 = vadd.f32 %v1939_v56, %v7342_v34 }
 0x436   : > { %v1741_v32 = vpop.f32.mrb[4].mxu0 }
 0x437   : > { %v1742_v35 = vadd.f32 %v1741_v32, %v1620_v28  ;;  %v1743_v42 = vpop.f32.mrb[5].mxu0 }
 0x438   : > { %v7549_v45 = vadd.f32 %v1743_v42, %v1624_v29  ;;  %v1745_v47 = vpop.f32.mrb[6].mxu0 }
 0x439   : > { %v1752_v2 = vsub.f32 0.0, %v1742_v35  ;;  %v1746_v55 = vadd.f32 %v1745_v47, %v1620_v28  ;;  %v1747_v52 = vpop.f32.mrb[7].mxu0  ;;  %v6083_v47 = vld [vmem:[#allocation13] sm:$0xff]  }
 0x43a   : > { %v7551_v53 = vadd.f32 %v1747_v52, %v1624_v29 }
 0x43b   : > { %v1754_v14 = vmul.f32 1.442695, %v1752_v2  ;;  %v1753_v38 = vsub.f32 0.0, %v1746_v55 }
 0x43d   : > { %6271 = vpow2.f32 %v1754_v14  ;;  %v1756_v59 = vmul.f32 1.442695, %v1753_v38  ;;  %v6084_v38 = vld [vmem:[#allocation13 + $0x8] sm:$0xff]  }
 0x43f   : > { %6273 = vpow2.f32 %v1756_v59  ;;  %v6085_v59 = vld [vmem:[#allocation13 + $0x10] sm:$0xff]  }
 0x447   : > { %v6272_v6 = vpop.eup %6271 }
 0x448   : > { %v1758_v62 = vadd.f32 1.0, %v6272_v6 }
 0x449   : > { %v6274_v63 = vpop.eup %6273 }
 0x44a   : > { %6275 = vrcp.f32 %v1758_v62  ;;  %v1759_v0 = vadd.f32 1.0, %v6274_v63  ;;  %v6087_v63 = vld [vmem:[#allocation13 + $0x20] sm:$0xff]  }
 0x44c   : > { %6277 = vrcp.f32 %v1759_v0 }
 0x454   : > { %v6276_v57 = vpop.eup %6275 }
 0x455   : > { %v1778_v29 = vmul.f32 %v6276_v57, %v7504_v50  ;;  %v6088_v57 = vld [vmem:[#allocation13 + $0x28] sm:$0xff]  }
 0x456   : > { %v6278_v16 = vpop.eup %6277  ;;  %v2060_v19 = vpop.f32.mrb[8].mxu0 }
 0x457   : > { %v5733_v25 = vadd.f32 %v5732_v15, %v2060_v19  ;;  %v2062_v28 = vpop.f32.mrb[9].mxu0  ;;  %v1779_v32 = vmul.f32 %v6278_v16, %v7506_v51  ;;  %v6089_v15 = vld [vmem:[#allocation13 + $0x30] sm:$0xff]   ;;  %v6090_v19 = vld [vmem:[#allocation13 + $0x38] sm:$0xff]  }
 0x458   : > { %v7560_v35 = vadd.f32 %v7340_v33, %v2062_v28  ;;  %v2064_v42 = vpop.f32.mrb[10].mxu0 }
 0x459   : > { %v2071_v2 = vsub.f32 0.0, %v5733_v25  ;;  %v5737_v21 = vadd.f32 %v5736_v24, %v2064_v42  ;;  %v2066_v55 = vpop.f32.mrb[11].mxu0  ;;  %v1780_v52 = vpack.c.bf16 %v1779_v32, %v1778_v29  ;;  %v6091_v32 = vld [vmem:[#allocation14 + $0x8] ss:$12 sps:$4 sm:$0xff]   ;;  %v6092_v42 = vld [vmem:[#allocation14 + $0x20] ss:$12 sps:$4 sm:$0xff]  }
 0x45a   : > { %v7563_v30 = vadd.f32 %v7349_v39, %v2066_v55  ;;  %v6086_v39 = vld [vmem:[#allocation13 + $0x18] sm:$0xff]   ;;  %v6096_v55 = vld [vmem:[#allocation14 + $0x80] ss:$12 sps:$4 sm:$0xff]  }
 0x45b   : > { %v2073_v14 = vmul.f32 1.442695, %v2071_v2  ;;  %v2072_v34 = vsub.f32 0.0, %v5737_v21  ;;  %5541 = vmatmul.mubr.bf16.vlgmr.msra.gmra.mrb[32].mxu1 %v1780_v52  ;;  %v6094_v2 = vld [vmem:[#allocation14 + $0x50] ss:$12 sps:$4 sm:$0xff]  }
 0x45c   : > { %5545 = vmatpush3.bf16.msra.mxu1 %v6083_v47  ;;  %5560 = vmatprep.mubr.msk.bf16.mxu1 %vm6831_vm0, %v8281_v61  ;;  %v6093_v47 = vld [vmem:[#allocation14 + $0x38] ss:$12 sps:$4 sm:$0xff]   ;;  %v6095_v21 = vld [vmem:[#allocation14 + $0x68] ss:$12 sps:$4 sm:$0xff]  }
 0x45d   : > { %6279 = vpow2.f32 %v2073_v14  ;;  %v2075_v33 = vmul.f32 1.442695, %v2072_v34  ;;  %5546 = vmatprep.subr.bf16.mxu1 %v8281_v61  ;;  %v6097_v52 = vld [vmem:[#allocation14 + $0x98] ss:$12 sps:$4 sm:$0xff]   ;;  %v6098_v14 = vld [vmem:[#allocation14 + $0xb0] ss:$12 sps:$4 sm:$0xff]  }
 0x45e   : > { %v1766_v34 = vsub.f32 0.0, %v7549_v45 }
 0x45f   : > { %6281 = vpow2.f32 %v2075_v33 }
 0x460   : > { %5547 = vmatpush3.bf16.msra.mxu1 %v6084_v38  ;;  %v1767_v38 = vsub.f32 0.0, %v7551_v53  ;;  %v1768_v33 = vmul.f32 1.442695, %v1766_v34 }
 0x461   : > { %5548 = vmatprep.subr.bf16.mxu1 %v8281_v61 }
 0x464   : > { %5549 = vmatpush3.bf16.msra.mxu1 %v6085_v59  ;;  %v1770_v59 = vmul.f32 1.442695, %v1767_v38 }
 0x465   : > { %5550 = vmatprep.subr.bf16.mxu1 %v8281_v61 }
 0x467   : > { %v6280_v6 = vpop.eup %6279 }
 0x468   : > { %v2077_v62 = vadd.f32 1.0, %v6280_v6  ;;  %5551 = vmatpush3.bf16.msra.mxu1 %v6086_v39 }
 0x469   : > { %v6282_v0 = vpop.eup %6281  ;;  %5552 = vmatprep.subr.bf16.mxu1 %v8281_v61 }
 0x46a   : > { %6283 = vrcp.f32 %v2077_v62  ;;  %v2078_v56 = vadd.f32 1.0, %v6282_v0  ;;  %v7592_v62 = vld [vmem:[%s8283_s15] ss:$0 sm:$0xff] }
 0x46c   : > { %6285 = vrcp.f32 %v2078_v56  ;;  %5553 = vmatpush3.bf16.msra.mxu1 %v6087_v63 }
 0x46d   : > { %5554 = vmatprep.subr.bf16.mxu1 %v8281_v61  ;;  %6287 = vpow2.f32 %v1768_v33 }
 0x46e   : > { %6289 = vpow2.f32 %v1770_v59 }
 0x470   : > { %5555 = vmatpush3.bf16.msra.mxu1 %v6088_v57 }
 0x471   : > { %5556 = vmatprep.subr.bf16.mxu1 %v8281_v61 }
 0x474   : > { %v6284_v16 = vpop.eup %6283  ;;  %5557 = vmatpush3.bf16.msra.mxu1 %v6089_v15 }
 0x475   : > { %5558 = vmatprep.subr.bf16.mxu1 %v8281_v61  ;;  %v2097_v25 = vmul.f32 %v6284_v16, %v7448_v58 }
 0x476   : > { %v6286_v24 = vpop.eup %6285 }
 0x477   : > { %v2098_v28 = vmul.f32 %v6286_v24, %v7450_v37  ;;  %v6288_v39 = vpop.eup %6287 }
 0x478   : > { %5559 = vmatpush3.bf16.msra.mxu1 %v6090_v19  ;;  %v6290_v56 = vpop.eup %6289  ;;  %v1772_v57 = vadd.f32 1.0, %v6288_v39 }
 0x479   : > { %v2099_v29 = vpack.c.bf16 %v2098_v28, %v2097_v25  ;;  %5564 = vmatprep.subr.bf16.mxu1 %v8281_v61  ;;  %v1773_v19 = vadd.f32 1.0, %v6290_v56  ;;  %v2085_v25 = vsub.f32 0.0, %v7560_v35 }
 0x47b   : > { %5561 = vmatmul.mubr.bf16.vlgmr.msra.gmra.mrb[36].mxu1 %v2099_v29  ;;  %v2086_v29 = vsub.f32 0.0, %v7563_v30 }
 0x47c   : > { %5580 = vmatprep.mubr.msk.bf16.mxu1 %vm6831_vm0, %v8281_v61  ;;  %5565 = vmatpush3.bf16.msra.mxu1 %v6091_v32 }
 0x47d   : > { %5566 = vmatprep.subr.bf16.mxu1 %v8281_v61 }
 0x480   : > { %5567 = vmatpush3.bf16.msra.mxu1 %v6092_v42 }
 0x481   : > { %5568 = vmatprep.subr.bf16.mxu1 %v8281_v61 }
 0x484   : > { %5569 = vmatpush3.bf16.msra.mxu1 %v6093_v47  ;;  %v2087_v47 = vmul.f32 1.442695, %v2085_v25 }
 0x485   : > { %5570 = vmatprep.subr.bf16.mxu1 %v8281_v61 }
 0x488   : > { %5571 = vmatpush3.bf16.msra.mxu1 %v6094_v2 }
 0x489   : > { %5572 = vmatprep.subr.bf16.mxu1 %v8281_v61 }
 0x48c   : > { %5573 = vmatpush3.bf16.msra.mxu1 %v6095_v21 }
 0x48d   : > { %5574 = vmatprep.subr.bf16.mxu1 %v8281_v61 }
 0x490   : > { %5575 = vmatpush3.bf16.msra.mxu1 %v6096_v55  ;;  %v2089_v55 = vmul.f32 1.442695, %v2086_v29  ;;  %v6125_v29 = vld [vmem:[#allocation17 + $0x10] sm:$0xff]  }
 0x491   : > { %5576 = vmatprep.subr.bf16.mxu1 %v8281_v61 }
 0x494   : > { %5577 = vmatpush3.bf16.msra.mxu1 %v6097_v52 }
 0x495   : > { %5578 = vmatprep.subr.bf16.mxu1 %v8281_v61 }
 0x498   : > { %5579 = vmatpush3.bf16.msra.mxu1 %v6098_v14 }
 0x499   : > { %5584 = vmatprep.subr.bf16.mxu1 %v8281_v61 }
 0x52e   : > { %v1879_v6 = vpop.f32.mrb[32].mxu1 }
 0x52f   : > { %v1886_v63 = vadd.f32 %v1879_v6, %v7540_v17  ;;  %v5542_v0 = vpop.f32.mrb[33].mxu1 }
 0x530   : > { %v1882_v15 = vpop.f32.mrb[34].mxu1 }
 0x531   : > { %v1895_v45 = vadd.f32 %v7592_v62, %v1886_v63  ;;  %v1887_v53 = vadd.f32 %v1882_v15, %v7542_v20  ;;  %v5543_v16 = vpop.f32.mrb[35].mxu1 }
 0x533   : > { %6291 = vtanh.f32 %v1895_v45  ;;  %v1896_v24 = vadd.f32 %v7592_v62, %v1887_v53 }
 0x534   : > { %6293 = vrcp.f32 %v1772_v57 }
 0x535   : > { %6295 = vtanh.f32 %v1896_v24 }
 0x536   : > { %6297 = vrcp.f32 %v1773_v19 }
 0x537   : > { %6299 = vpow2.f32 %v2087_v47  ;;  %v6128_v47 = vld [vmem:[#allocation17 + $0x28] sm:$0xff]  }
 0x538   : > { %6301 = vpow2.f32 %v2089_v55 }
 0x53d   : > { %v6292_v28 = vpop.eup %6291 }
 0x53e   : > { %v6294_v17 = vpop.eup %6293  ;;  %v1899_v32 = vsub.f32 %v6292_v28, %v7504_v50  ;;  %v6123_v28 = vld [vmem:[#allocation17] sm:$0xff]  }
 0x53f   : > { %v6296_v42 = vpop.eup %6295 }
 0x540   : > { %v1901_v2 = vmul.f32 %v6294_v17, %v1899_v32  ;;  %v1900_v20 = vsub.f32 %v6296_v42, %v7506_v51  ;;  %v6298_v21 = vpop.eup %6297  ;;  %v6124_v17 = vld [vmem:[#allocation17 + $0x8] sm:$0xff]   ;;  %v6126_v32 = vld [vmem:[#allocation17 + $0x18] sm:$0xff]   ;;  %v6127_v42 = vld [vmem:[#allocation17 + $0x20] sm:$0xff]  }
 0x541   : > { %v6300_v14 = vpop.eup %6299 }
 0x542   : > { %v1902_v52 = vmul.f32 %v6298_v21, %v1900_v20  ;;  %v6302_v33 = vpop.eup %6301  ;;  %v2091_v59 = vadd.f32 1.0, %v6300_v14  ;;  %v6130_v20 = vld [vmem:[#allocation17 + $0x38] sm:$0xff]  }
 0x543   : > { %v2092_v0 = vadd.f32 1.0, %v6302_v33 }
 0x54e   : > { %v2198_v34 = vpop.f32.mrb[36].mxu1 }
 0x54f   : > { %v2205_v35 = vadd.f32 %v7379_v10, %v2198_v34  ;;  %v5562_v38 = vpop.f32.mrb[37].mxu1  ;;  %v2490_v34 = vld [vmem:[%s8282_s17] sm:$0x3] }
 0x550   : > { %v2201_v30 = vpop.f32.mrb[38].mxu1  ;;  %v2499_v38 = vrot.slane %v2490_v34, %v7323_v5 }
 0x551   : > { %v2214_v39 = vadd.f32 %v7443_v60, %v2205_v35  ;;  %v2206_v6 = vadd.f32 %v7381_v12, %v2201_v30  ;;  %v5563_v63 = vpop.f32.mrb[39].mxu1  ;;  %v2495_v35 = vrot.slane %v2490_v34, %v7318_v3 }
 0x553   : > { %6303 = vtanh.f32 %v2214_v39  ;;  %v2215_v56 = vadd.f32 %v7443_v60, %v2206_v6 }
 0x554   : > { %6305 = vrcp.f32 %v2091_v59 }
 0x555   : > { %6307 = vtanh.f32 %v2215_v56 }
 0x556   : > { %6309 = vrcp.f32 %v2092_v0 }
 0x55d   : > { %v6304_v57 = vpop.eup %6303 }
 0x55e   : > { %v6306_v15 = vpop.eup %6305  ;;  %v2218_v10 = vsub.f32 %v6304_v57, %v7448_v58 }
 0x55f   : > { %v6308_v45 = vpop.eup %6307 }
 0x560   : > { %v2219_v53 = vsub.f32 %v6308_v45, %v7450_v37  ;;  %v2220_v16 = vmul.f32 %v6306_v15, %v2218_v10  ;;  %v6310_v19 = vpop.eup %6309 }
 0x562   : > { %v2221_v24 = vmul.f32 %v6310_v19, %v2219_v53  ;;  %v7609_v12 = vadd.f32 %v2220_v16, %v7448_v58  ;;  %v7633_v58 = vadd.f32 %v1902_v52, %v7506_v51  ;;  %v7690_v51 = vld [vmem:[#allocation11 + $0x70] ss:$8 sps:$4 sm:$0xff]  }
 0x564   : > { %v7612_v25 = vadd.f32 %v2221_v24, %v7450_v37  ;;  %v7636_v37 = vld [vmem:[#allocation11 + $0x4] ss:$8 sps:$4 sm:$0xff]  }
 0x566   : > { %v2226_v60 = vpack.c.bf16 %v7612_v25, %v7609_v12 }
 0x568   : > { %2423 = vmatmul.mubr.bf16.vlgmr.msra.gmra.mrb[12].mxu0 %v2226_v60  ;;  %5581 = vmatmul.mubr.bf16.vlgmr.msra.gmra.mrb[40].mxu1 %v2226_v60 }
 0x569   : > { %2583 = vmatpush1.bf16.msra.mxu0 %v7452_v1  ;;  %2614 = vmatprep.mubr.bf16.mxu0 %v8280_v54  ;;  %v7639_v1 = vadd.f32 %v1901_v2, %v7504_v50  ;;  %v7687_v50 = vld [vmem:[#allocation11 + $0x74] ss:$8 sps:$4 sm:$0xff]  }
 0x56a   : > { %2584 = vmatprep.subr.bf16.mxu0 %v7458_v4  ;;  %5600 = vmatprep.mubr.msk.bf16.mxu1 %vm6831_vm0, %v8281_v61  ;;  %v7642_v4 = vld [vmem:[#allocation11] ss:$8 sps:$4 sm:$0xff]   ;;  %v6129_v2 = vld [vmem:[#allocation17 + $0x30] sm:$0xff]  }
 0x56b   : > { %5585 = vmatpush3.bf16.msra.mxu1 %v6123_v28 }
 0x56c   : > { %5586 = vmatprep.subr.bf16.mxu1 %v8281_v61 }
 0x56d   : > { %2585 = vmatpush1.bf16.msra.mxu0 %v7463_v7  ;;  %v7646_v7 = vpack.c.bf16 %v7633_v58, %v7639_v1 }
 0x56e   : > { %2586 = vmatprep.subr.bf16.mxu0 %v7467_v8  ;;  %v7649_v8 = vld [vmem:[#allocation11 + $0x14] ss:$8 sps:$4 sm:$0xff]  }
 0x56f   : > { %5587 = vmatpush3.bf16.msra.mxu1 %v6124_v17 }
 0x570   : > { %5588 = vmatprep.subr.bf16.mxu1 %v8281_v61 }
 0x571   : > { %2587 = vmatpush1.bf16.msra.mxu0 %v7472_v22  ;;  %v7653_v22 = vld [vmem:[#allocation11 + $0x10] ss:$8 sps:$4 sm:$0xff]  }
 0x572   : > { %2588 = vmatprep.subr.bf16.mxu0 %v7475_v26  ;;  %v7657_v26 = vld [vmem:[#allocation11 + $0x24] ss:$8 sps:$4 sm:$0xff]  }
 0x573   : > { %5589 = vmatpush3.bf16.msra.mxu1 %v6125_v29 }
 0x574   : > { %5590 = vmatprep.subr.bf16.mxu1 %v8281_v61 }
 0x575   : > { %2589 = vmatpush1.bf16.msra.mxu0 %v7478_v9  ;;  %v7660_v9 = vld [vmem:[#allocation11 + $0x20] ss:$8 sps:$4 sm:$0xff]  }
 0x576   : > { %2590 = vmatprep.subr.bf16.mxu0 %v7481_v18  ;;  %v7663_v18 = vld [vmem:[#allocation11 + $0x34] ss:$8 sps:$4 sm:$0xff]  }
 0x577   : > { %5591 = vmatpush3.bf16.msra.mxu1 %v6126_v32 }
 0x578   : > { %5592 = vmatprep.subr.bf16.mxu1 %v8281_v61 }
 0x579   : > { %2591 = vmatpush1.bf16.msra.mxu0 %v7484_v23  ;;  %v7666_v23 = vld [vmem:[#allocation11 + $0x30] ss:$8 sps:$4 sm:$0xff]  }
 0x57a   : > { %2592 = vmatprep.subr.bf16.mxu0 %v7487_v27  ;;  %v7669_v27 = vld [vmem:[#allocation11 + $0x44] ss:$8 sps:$4 sm:$0xff]  }
 0x57b   : > { %5593 = vmatpush3.bf16.msra.mxu1 %v6127_v42 }
 0x57c   : > { %5594 = vmatprep.subr.bf16.mxu1 %v8281_v61 }
 0x57d   : > { %2593 = vmatpush1.bf16.msra.mxu0 %v7490_v31  ;;  %v7672_v31 = vld [vmem:[#allocation11 + $0x40] ss:$8 sps:$4 sm:$0xff]  }
 0x57e   : > { %2594 = vmatprep.subr.bf16.mxu0 %v7493_v40  ;;  %v7675_v40 = vld [vmem:[#allocation11 + $0x54] ss:$8 sps:$4 sm:$0xff]  }
 0x57f   : > { %5595 = vmatpush3.bf16.msra.mxu1 %v6128_v47 }
 0x580   : > { %5596 = vmatprep.subr.bf16.mxu1 %v8281_v61 }
 0x581   : > { %2595 = vmatpush1.bf16.msra.mxu0 %v7496_v11  ;;  %v7678_v11 = vld [vmem:[#allocation11 + $0x50] ss:$8 sps:$4 sm:$0xff]  }
 0x582   : > { %2596 = vmatprep.subr.bf16.mxu0 %v7499_v46  ;;  %v7681_v46 = vld [vmem:[#allocation11 + $0x64] ss:$8 sps:$4 sm:$0xff]  }
 0x583   : > { %5597 = vmatpush3.bf16.msra.mxu1 %v6129_v2 }
 0x584   : > { %5598 = vmatprep.subr.bf16.mxu1 %v8281_v61 }
 0x585   : > { %2597 = vmatpush1.bf16.msra.mxu0 %v7502_v48  ;;  %v7684_v48 = vld [vmem:[#allocation11 + $0x60] ss:$8 sps:$4 sm:$0xff]  }
 0x586   : > { %2901 = vmatprep.subr.bf16.mxu0 %v7636_v37 }
 0x587   : > { %5599 = vmatpush3.bf16.msra.mxu1 %v6130_v20 }
 0x588   : > { %2615 = vmatmul.mubr.bf16.vlgmr.msra.gmra.mrb[12].mxu0 %v7646_v7  ;;  %5604 = vmatprep.subr.bf16.mxu1 %v8281_v61 }
 0x589   : > { %2902 = vmatpush1.bf16.msra.mxu0 %v7642_v4  ;;  %2933 = vmatprep.mubr.bf16.mxu0 %v8280_v54 }
 0x58a   : > { %2903 = vmatprep.subr.bf16.mxu0 %v7649_v8 }
 0x58d   : > { %2904 = vmatpush1.bf16.msra.mxu0 %v7653_v22 }
 0x58e   : > { %2905 = vmatprep.subr.bf16.mxu0 %v7657_v26 }
 0x591   : > { %2906 = vmatpush1.bf16.msra.mxu0 %v7660_v9 }
 0x592   : > { %2907 = vmatprep.subr.bf16.mxu0 %v7663_v18 }
 0x595   : > { %2908 = vmatpush1.bf16.msra.mxu0 %v7666_v23 }
 0x596   : > { %2909 = vmatprep.subr.bf16.mxu0 %v7669_v27 }
 0x599   : > { %2910 = vmatpush1.bf16.msra.mxu0 %v7672_v31 }
 0x59a   : > { %2911 = vmatprep.subr.bf16.mxu0 %v7675_v40 }
 0x59d   : > { %2912 = vmatpush1.bf16.msra.mxu0 %v7678_v11 }
 0x59e   : > { %2913 = vmatprep.subr.bf16.mxu0 %v7681_v46 }
 0x5a1   : > { %2914 = vmatpush1.bf16.msra.mxu0 %v7684_v48 }
 0x5a2   : > { %2915 = vmatprep.subr.bf16.mxu0 %v7687_v50 }
 0x5a5   : > { %2916 = vmatpush1.bf16.msra.mxu0 %v7690_v51 }
 0x5a8   : > { %2934 = vmatmul.mubr.bf16.vlgmr.msra.gmra.mrb[16].mxu0 %v2226_v60  ;;  %v2814_v60 = vrot.slane %v7347_v36, %v7318_v3 }
 0x5a9   : > { %3297 = vmatprep.mubr.bf16.mxu0 %v8280_v54 }
 0x5aa   : > { %v5740_v17 = vadd.f32 %v2814_v60, %v7353_v41  ;;  %v5744_v42 = vadd.f32 %v2814_v60, %v7357_v44 }
 0x63b   : > { %v7703_v21 = vpop.f32.mrb[40].mxu1 }
 0x63c   : > { %v5582_v55 = vpop.f32.mrb[41].mxu1 }
 0x63d   : > { %v7705_v52 = vpop.f32.mrb[42].mxu1 }
 0x63e   : > { %v5583_v14 = vpop.f32.mrb[43].mxu1 }
 0x65b   : > { %v2616_v33 = vpop.f32.mrb[12].mxu0 }
 0x65c   : > { %v2617_v59 = vadd.f32 %v2616_v33, %v2495_v35  ;;  %v2618_v30 = vpop.f32.mrb[13].mxu0 }
 0x65d   : > { %v7712_v39 = vadd.f32 %v2618_v30, %v2499_v38  ;;  %v2620_v6 = vpop.f32.mrb[14].mxu0 }
 0x65e   : > { %v2627_v63 = vsub.f32 0.0, %v2617_v59  ;;  %v2621_v0 = vadd.f32 %v2620_v6, %v2495_v35  ;;  %v2622_v56 = vpop.f32.mrb[15].mxu0  ;;  %v6131_v35 = vld [vmem:[#allocation13] sm:$0xff]   ;;  %v6132_v6 = vld [vmem:[#allocation13 + $0x8] sm:$0xff]  }
 0x65f   : > { %v7714_v57 = vadd.f32 %v2622_v56, %v2499_v38 }
 0x660   : > { %v2629_v15 = vmul.f32 1.442695, %v2627_v63  ;;  %v2628_v10 = vsub.f32 0.0, %v2621_v0  ;;  %v6133_v63 = vld [vmem:[#allocation13 + $0x10] sm:$0xff]  }
 0x662   : > { %6311 = vpow2.f32 %v2629_v15  ;;  %v2631_v45 = vmul.f32 1.442695, %v2628_v10  ;;  %v6135_v15 = vld [vmem:[#allocation13 + $0x20] sm:$0xff]  }
 0x664   : > { %6313 = vpow2.f32 %v2631_v45 }
 0x66c   : > { %v6312_v53 = vpop.eup %6311 }
 0x66d   : > { %v2633_v16 = vadd.f32 1.0, %v6312_v53  ;;  %v6136_v53 = vld [vmem:[#allocation13 + $0x28] sm:$0xff]  }
 0x66e   : > { %v6314_v19 = vpop.eup %6313 }
 0x66f   : > { %6315 = vrcp.f32 %v2633_v16  ;;  %v2634_v24 = vadd.f32 1.0, %v6314_v19  ;;  %v6137_v16 = vld [vmem:[#allocation13 + $0x30] sm:$0xff]  }
 0x671   : > { %6317 = vrcp.f32 %v2634_v24  ;;  %v6138_v24 = vld [vmem:[#allocation13 + $0x38] sm:$0xff]  }
 0x679   : > { %v6316_v28 = vpop.eup %6315 }
 0x67a   : > { %v2653_v20 = vmul.f32 %v6316_v28, %v7639_v1 }
 0x67b   : > { %v6318_v29 = vpop.eup %6317  ;;  %v2935_v32 = vpop.f32.mrb[16].mxu0 }
 0x67c   : > { %v5741_v47 = vadd.f32 %v5740_v17, %v2935_v32  ;;  %v2937_v2 = vpop.f32.mrb[17].mxu0  ;;  %v2654_v55 = vmul.f32 %v6318_v29, %v7633_v58  ;;  %v7742_v32 = vld [vmem:[#allocation14] ss:$12 sps:$4 sm:$0xff]  }
 0x67d   : > { %v7723_v14 = vadd.f32 %v7355_v43, %v2937_v2  ;;  %v2939_v34 = vpop.f32.mrb[18].mxu0  ;;  %v7746_v2 = vld [vmem:[#allocation14 + $0x1c] ss:$12 sps:$4 sm:$0xff]  }
 0x67e   : > { %v2946_v38 = vsub.f32 0.0, %v5741_v47  ;;  %v5745_v36 = vadd.f32 %v5744_v42, %v2939_v34  ;;  %v2941_v33 = vpop.f32.mrb[19].mxu0  ;;  %v2655_v59 = vpack.c.bf16 %v2654_v55, %v2653_v20  ;;  %v7744_v42 = vld [vmem:[#allocation14 + $0x4] ss:$12 sps:$4 sm:$0xff]   ;;  %v6142_v47 = vld [vmem:[#allocation14 + $0x8] ss:$12 sps:$4 sm:$0xff]  }
 0x67f   : > { %v7726_v41 = vadd.f32 %v7362_v49, %v2941_v33  ;;  %v6134_v49 = vld [vmem:[#allocation13 + $0x18] sm:$0xff]   ;;  %3265 = vmatprep.subr.bf16.mxu0 %v7744_v42  ;;  %v6146_v20 = vld [vmem:[#allocation14 + $0x20] ss:$12 sps:$4 sm:$0xff]   ;;  %v7764_v33 = vld [vmem:[#allocation14 + $0x48] ss:$12 sps:$4 sm:$0xff]  }
 0x680   : > { %v2948_v30 = vmul.f32 1.442695, %v2946_v38  ;;  %v2947_v44 = vsub.f32 0.0, %v5745_v36  ;;  %5601 = vmatmul.mubr.bf16.vlgmr.msra.gmra.mrb[44].mxu1 %v2655_v59  ;;  %3266 = vmatpush1.bf16.msra.mxu0 %v7742_v32  ;;  %v7750_v55 = vld [vmem:[#allocation14 + $0x18] ss:$12 sps:$4 sm:$0xff]  }
 0x681   : > { %5605 = vmatpush3.bf16.msra.mxu1 %v6131_v35  ;;  %5620 = vmatprep.mubr.msk.bf16.mxu1 %vm6831_vm0, %v8281_v61  ;;  %v7756_v34 = vld [vmem:[#allocation14 + $0x34] ss:$12 sps:$4 sm:$0xff]   ;;  %v7758_v35 = vld [vmem:[#allocation14 + $0x30] ss:$12 sps:$4 sm:$0xff]   ;;  %v6150_v38 = vld [vmem:[#allocation14 + $0x38] ss:$12 sps:$4 sm:$0xff]  }
 0x682   : > { %6319 = vpow2.f32 %v2948_v30  ;;  %v2950_v43 = vmul.f32 1.442695, %v2947_v44  ;;  %5606 = vmatprep.subr.bf16.mxu1 %v8281_v61  ;;  %3267 = vmatprep.subr.bf16.mxu0 %v7746_v2  ;;  %v7762_v36 = vld [vmem:[#allocation14 + $0x4c] ss:$12 sps:$4 sm:$0xff]   ;;  %v6154_v59 = vld [vmem:[#allocation14 + $0x50] ss:$12 sps:$4 sm:$0xff]  }
 0x683   : > { %v7769_v30 = vld [vmem:[#allocation14 + $0x60] ss:$12 sps:$4 sm:$0xff]   ;;  %v7771_v44 = vld [vmem:[#allocation14 + $0x64] ss:$12 sps:$4 sm:$0xff]  }
 0x684   : > { %6321 = vpow2.f32 %v2950_v43  ;;  %3268 = vmatpush1.bf16.msra.mxu0 %v7750_v55  ;;  %v7774_v43 = vld [vmem:[#allocation14 + $0x7c] ss:$12 sps:$4 sm:$0xff]  }
 0x685   : > { %5607 = vmatpush3.bf16.msra.mxu1 %v6132_v6  ;;  %3269 = vmatprep.subr.bf16.mxu0 %v7756_v34  ;;  %v6158_v6 = vld [vmem:[#allocation14 + $0x68] ss:$12 sps:$4 sm:$0xff]  }
 0x686   : > { %5608 = vmatprep.subr.bf16.mxu1 %v8281_v61 }
 0x688   : > { %3270 = vmatpush1.bf16.msra.mxu0 %v7758_v35 }
 0x689   : > { %5609 = vmatpush3.bf16.msra.mxu1 %v6133_v63  ;;  %3271 = vmatprep.subr.bf16.mxu0 %v7762_v36  ;;  %v7778_v63 = vld [vmem:[#allocation14 + $0x78] ss:$12 sps:$4 sm:$0xff]  }
 0x68a   : > { %5610 = vmatprep.subr.bf16.mxu1 %v8281_v61 }
 0x68c   : > { %v6320_v0 = vpop.eup %6319  ;;  %3272 = vmatpush1.bf16.msra.mxu0 %v7764_v33 }
 0x68d   : > { %v2952_v56 = vadd.f32 1.0, %v6320_v0  ;;  %5611 = vmatpush3.bf16.msra.mxu1 %v6134_v49  ;;  %3273 = vmatprep.subr.bf16.mxu0 %v7771_v44  ;;  %v6162_v49 = vld [vmem:[#allocation14 + $0x80] ss:$12 sps:$4 sm:$0xff]  }
 0x68e   : > { %v6322_v10 = vpop.eup %6321  ;;  %5612 = vmatprep.subr.bf16.mxu1 %v8281_v61  ;;  %v7781_v0 = vld [vmem:[#allocation14 + $0x94] ss:$12 sps:$4 sm:$0xff]  }
 0x68f   : > { %6323 = vrcp.f32 %v2952_v56  ;;  %v2953_v45 = vadd.f32 1.0, %v6322_v10  ;;  %v7785_v56 = vld [vmem:[#allocation14 + $0x90] ss:$12 sps:$4 sm:$0xff]   ;;  %v7788_v10 = vld [vmem:[#allocation14 + $0xac] ss:$12 sps:$4 sm:$0xff]  }
 0x690   : > { %3274 = vmatpush1.bf16.msra.mxu0 %v7769_v30 }
 0x691   : > { %6325 = vrcp.f32 %v2953_v45  ;;  %5613 = vmatpush3.bf16.msra.mxu1 %v6135_v15  ;;  %3275 = vmatprep.subr.bf16.mxu0 %v7774_v43  ;;  %v6166_v15 = vld [vmem:[#allocation14 + $0x98] ss:$12 sps:$4 sm:$0xff]   ;;  %v7792_v45 = vld [vmem:[#allocation14 + $0xa8] ss:$12 sps:$4 sm:$0xff]  }
 0x692   : > { %5614 = vmatprep.subr.bf16.mxu1 %v8281_v61 }
 0x694   : > { %3276 = vmatpush1.bf16.msra.mxu0 %v7778_v63 }
 0x695   : > { %5615 = vmatpush3.bf16.msra.mxu1 %v6136_v53  ;;  %3277 = vmatprep.subr.bf16.mxu0 %v7781_v0  ;;  %v6170_v53 = vld [vmem:[#allocation14 + $0xb0] ss:$12 sps:$4 sm:$0xff]  }
 0x696   : > { %5616 = vmatprep.subr.bf16.mxu1 %v8281_v61 }
 0x698   : > { %3278 = vmatpush1.bf16.msra.mxu0 %v7785_v56 }
 0x699   : > { %v6324_v19 = vpop.eup %6323  ;;  %5617 = vmatpush3.bf16.msra.mxu1 %v6137_v16  ;;  %3279 = vmatprep.subr.bf16.mxu0 %v7788_v10  ;;  %v7795_v16 = vld [vmem:[#allocation16 + $0x4] ss:$8 sps:$4 sm:$0xff]  }
 0x69a   : > { %5618 = vmatprep.subr.bf16.mxu1 %v8281_v61  ;;  %v2972_v28 = vmul.f32 %v6324_v19, %v7609_v12  ;;  %v2641_v19 = vsub.f32 0.0, %v7712_v39 }
 0x69b   : > { %v6326_v60 = vpop.eup %6325 }
 0x69c   : > { %v2973_v17 = vmul.f32 %v6326_v60, %v7612_v25  ;;  %3280 = vmatpush1.bf16.msra.mxu0 %v7792_v45  ;;  %v2643_v60 = vmul.f32 1.442695, %v2641_v19  ;;  %v2960_v19 = vsub.f32 0.0, %v7723_v14 }
 0x69d   : > { %5619 = vmatpush3.bf16.msra.mxu1 %v6138_v24  ;;  %3457 = vmatprep.subr.bf16.mxu0 %v7795_v16  ;;  %v2642_v24 = vsub.f32 0.0, %v7714_v57 }
 0x69e   : > { %v2974_v29 = vpack.c.bf16 %v2973_v17, %v2972_v28  ;;  %5624 = vmatprep.subr.bf16.mxu1 %v8281_v61  ;;  %6327 = vpow2.f32 %v2643_v60  ;;  %v2961_v60 = vsub.f32 0.0, %v7726_v41  ;;  %v7818_v41 = vld [vmem:[%s8279_s9] ss:$0 sm:$0xff] }
 0x69f   : > { %v2645_v28 = vmul.f32 1.442695, %v2642_v24 }
 0x6a0   : > { %5621 = vmatmul.mubr.bf16.vlgmr.msra.gmra.mrb[48].mxu1 %v2974_v29 }
 0x6a1   : > { %5640 = vmatprep.mubr.msk.bf16.mxu1 %vm6831_vm0, %v8281_v61  ;;  %5625 = vmatpush3.bf16.msra.mxu1 %v6142_v47  ;;  %6329 = vpow2.f32 %v2645_v28 }
 0x6a2   : > { %5626 = vmatprep.subr.bf16.mxu1 %v8281_v61 }
 0x6a5   : > { %5627 = vmatpush3.bf16.msra.mxu1 %v6146_v20 }
 0x6a6   : > { %5628 = vmatprep.subr.bf16.mxu1 %v8281_v61 }
 0x6a8   : > { %v6328_v17 = vpop.eup %6327 }
 0x6a9   : > { %5629 = vmatpush3.bf16.msra.mxu1 %v6150_v38 }
 0x6aa   : > { %5630 = vmatprep.subr.bf16.mxu1 %v8281_v61 }
 0x6ab   : > { %v6330_v38 = vpop.eup %6329 }
 0x6ac   : > { %v2648_v39 = vadd.f32 1.0, %v6330_v38  ;;  %v2964_v38 = vmul.f32 1.442695, %v2961_v60 }
 0x6ad   : > { %5631 = vmatpush3.bf16.msra.mxu1 %v6154_v59  ;;  %v2647_v59 = vadd.f32 1.0, %v6328_v17 }
 0x6ae   : > { %5632 = vmatprep.subr.bf16.mxu1 %v8281_v61 }
 0x6b1   : > { %5633 = vmatpush3.bf16.msra.mxu1 %v6158_v6 }
 0x6b2   : > { %5634 = vmatprep.subr.bf16.mxu1 %v8281_v61 }
 0x6b5   : > { %5635 = vmatpush3.bf16.msra.mxu1 %v6162_v49 }
 0x6b6   : > { %5636 = vmatprep.subr.bf16.mxu1 %v8281_v61 }
 0x6b9   : > { %5637 = vmatpush3.bf16.msra.mxu1 %v6166_v15 }
 0x6ba   : > { %5638 = vmatprep.subr.bf16.mxu1 %v8281_v61 }
 0x6bd   : > { %5639 = vmatpush3.bf16.msra.mxu1 %v6170_v53 }
 0x6be   : > { %5644 = vmatprep.subr.bf16.mxu1 %v8281_v61 }
 0x753   : > { %v2754_v29 = vpop.f32.mrb[44].mxu1 }
 0x754   : > { %v2761_v47 = vadd.f32 %v2754_v29, %v7703_v21  ;;  %v5602_v20 = vpop.f32.mrb[45].mxu1  ;;  %v2962_v29 = vmul.f32 1.442695, %v2960_v19  ;;  %v8284_v19 = vld [vmem:[#allocation38_spill] sm:$0xff] }
 0x755   : > { %v2757_v6 = vpop.f32.mrb[46].mxu1 }
 0x756   : > { %v2770_v49 = vadd.f32 %v7592_v62, %v2761_v47  ;;  %v2762_v15 = vadd.f32 %v2757_v6, %v7705_v52  ;;  %v5603_v53 = vpop.f32.mrb[47].mxu1 }
 0x758   : > { %6331 = vtanh.f32 %v2770_v49  ;;  %v2771_v57 = vadd.f32 %v7592_v62, %v2762_v15 }
 0x759   : > { %6333 = vrcp.f32 %v2647_v59 }
 0x75a   : > { %6335 = vtanh.f32 %v2771_v57 }
 0x75b   : > { %6337 = vrcp.f32 %v2648_v39 }
 0x75c   : > { %6339 = vpow2.f32 %v2962_v29 }
 0x75d   : > { %6341 = vpow2.f32 %v2964_v38 }
 0x762   : > { %v6332_v24 = vpop.eup %6331 }
 0x763   : > { %v6334_v21 = vpop.eup %6333  ;;  %v2774_v28 = vsub.f32 %v6332_v24, %v7639_v1 }
 0x764   : > { %v6336_v17 = vpop.eup %6335 }
 0x765   : > { %v7810_v47 = vmul.f32 %v6334_v21, %v2774_v28  ;;  %v2775_v52 = vsub.f32 %v6336_v17, %v7633_v58  ;;  %v6338_v20 = vpop.eup %6337 }
 0x766   : > { %v6340_v59 = vpop.eup %6339 }
 0x767   : > { %v7813_v62 = vmul.f32 %v6338_v20, %v2775_v52  ;;  %v6342_v15 = vpop.eup %6341  ;;  %v2966_v53 = vadd.f32 1.0, %v6340_v59 }
 0x768   : > { %v2967_v60 = vadd.f32 1.0, %v6342_v15  ;;  %v7832_v15 = vld [vmem:[#allocation16] ss:$8 sps:$4 sm:$0xff]  }
 0x773   : > { %v3073_v14 = vpop.f32.mrb[48].mxu1 }
 0x774   : > { %v3080_v6 = vadd.f32 %v3073_v14, %v7387_v13  ;;  %v5622_v49 = vpop.f32.mrb[49].mxu1 }
 0x775   : > { %v3076_v39 = vpop.f32.mrb[50].mxu1 }
 0x776   : > { %v3089_v57 = vadd.f32 %v7818_v41, %v3080_v6  ;;  %v3081_v24 = vadd.f32 %v3076_v39, %v8284_v19  ;;  %v5623_v21 = vpop.f32.mrb[51].mxu1  ;;  %v7836_v39 = vld [vmem:[#allocation16 + $0x14] ss:$8 sps:$4 sm:$0xff]  }
 0x777   : > { %v7851_v19 = vld [vmem:[#allocation16 + $0x34] ss:$8 sps:$4 sm:$0xff]   ;;  %v7857_v21 = vld [vmem:[#allocation16 + $0x44] ss:$8 sps:$4 sm:$0xff]  }
 0x778   : > { %6343 = vtanh.f32 %v3089_v57  ;;  %v3090_v28 = vadd.f32 %v7818_v41, %v3081_v24  ;;  %v7839_v57 = vld [vmem:[#allocation16 + $0x10] ss:$8 sps:$4 sm:$0xff]  }
 0x779   : > { %6345 = vrcp.f32 %v2966_v53  ;;  %v7854_v24 = vld [vmem:[#allocation16 + $0x30] ss:$8 sps:$4 sm:$0xff]  }
 0x77a   : > { %6347 = vtanh.f32 %v3090_v28  ;;  %v7863_v28 = vld [vmem:[#allocation16 + $0x54] ss:$8 sps:$4 sm:$0xff]  }
 0x77b   : > { %6349 = vrcp.f32 %v2967_v60  ;;  %v7860_v60 = vld [vmem:[#allocation16 + $0x40] ss:$8 sps:$4 sm:$0xff]  }
 0x782   : > { %v6344_v17 = vpop.eup %6343 }
 0x783   : > { %v6346_v29 = vpop.eup %6345  ;;  %v3093_v13 = vsub.f32 %v6344_v17, %v7609_v12  ;;  %v7866_v17 = vld [vmem:[#allocation16 + $0x50] ss:$8 sps:$4 sm:$0xff]  }
 0x784   : > { %v6348_v52 = vpop.eup %6347 }
 0x785   : > { %v3094_v20 = vsub.f32 %v6348_v52, %v7612_v25  ;;  %v3095_v38 = vmul.f32 %v6346_v29, %v3093_v13  ;;  %v6350_v59 = vpop.eup %6349  ;;  %v7869_v29 = vld [vmem:[#allocation16 + $0x64] ss:$8 sps:$4 sm:$0xff]   ;;  %v7872_v13 = vld [vmem:[#allocation16 + $0x60] ss:$8 sps:$4 sm:$0xff]   ;;  %v7875_v52 = vld [vmem:[#allocation16 + $0x74] ss:$8 sps:$4 sm:$0xff]  }
 0x787   : > { %v3096_v14 = vmul.f32 %v6350_v59, %v3094_v20  ;;  %v7827_v6 = vadd.f32 %v3095_v38, %v7609_v12  ;;  %v7843_v12 = vld [vmem:[#allocation16 + $0x24] ss:$8 sps:$4 sm:$0xff]   ;;  %v7878_v20 = vld [vmem:[#allocation16 + $0x70] ss:$8 sps:$4 sm:$0xff]   ;;  %v7882_v38 = vadd.f32 %v7813_v62, %v7633_v58  ;;  %v7887_v59 = vadd.f32 %v7810_v47, %v7639_v1 }
 0x788   : > { %v6195_v58 = vld [vmem:[#allocation17] sm:$0xff]   ;;  %v6197_v1 = vld [vmem:[#allocation17 + $0x10] sm:$0xff]  }
 0x789   : > { %v7830_v49 = vadd.f32 %v3096_v14, %v7612_v25  ;;  %v7848_v25 = vld [vmem:[#allocation16 + $0x20] ss:$8 sps:$4 sm:$0xff]   ;;  %v7892_v14 = vpack.c.bf16 %v7882_v38, %v7887_v59 }
 0x78b   : > { %v3101_v53 = vpack.c.bf16 %v7830_v49, %v7827_v6 }
 0x78d   : > { %3298 = vmatmul.mubr.bf16.vlgmr.msra.gmra.mrb[20].mxu0 %v3101_v53  ;;  %5641 = vmatmul.mubr.bf16.vlgmr.msra.gmra.mrb[52].mxu1 %v3101_v53 }
 0x78e   : > { %3458 = vmatpush1.bf16.msra.mxu0 %v7832_v15  ;;  %3489 = vmatprep.mubr.bf16.mxu0 %v8280_v54 }
 0x78f   : > { %3459 = vmatprep.subr.bf16.mxu0 %v7836_v39  ;;  %5660 = vmatprep.mubr.msk.bf16.mxu1 %vm6831_vm0, %v8281_v61 }
 0x790   : > { %5645 = vmatpush3.bf16.msra.mxu1 %v6195_v58  ;;  %v8286_v58 = vld [vmem:[#allocation34_spill] sm:$0xff] }
 0x791   : > { %5646 = vmatprep.subr.bf16.mxu1 %v8281_v61 }
 0x792   : > { %3460 = vmatpush1.bf16.msra.mxu0 %v7839_v57 }
 0x793   : > { %3461 = vmatprep.subr.bf16.mxu0 %v7843_v12 }
 0x796   : > { %3462 = vmatpush1.bf16.msra.mxu0 %v7848_v25 }
 0x797   : > { %3463 = vmatprep.subr.bf16.mxu0 %v7851_v19 }
 0x79a   : > { %3464 = vmatpush1.bf16.msra.mxu0 %v7854_v24 }
 0x79b   : > { %3465 = vmatprep.subr.bf16.mxu0 %v7857_v21 }
 0x79e   : > { %3466 = vmatpush1.bf16.msra.mxu0 %v7860_v60 }
 0x79f   : > { %3467 = vmatprep.subr.bf16.mxu0 %v7863_v28 }
 0x7a2   : > { %3468 = vmatpush1.bf16.msra.mxu0 %v7866_v17 }
 0x7a3   : > { %3469 = vmatprep.subr.bf16.mxu0 %v7869_v29 }
 0x7a6   : > { %3470 = vmatpush1.bf16.msra.mxu0 %v7872_v13 }
 0x7a7   : > { %3471 = vmatprep.subr.bf16.mxu0 %v7875_v52 }
 0x7aa   : > { %3472 = vmatpush1.bf16.msra.mxu0 %v7878_v20 }
 0x7ab   : > { %3776 = vmatprep.subr.bf16.mxu0 %v7636_v37  ;;  %v6196_v37 = vld [vmem:[#allocation17 + $0x8] sm:$0xff]  }
 0x7ac   : > { %5647 = vmatpush3.bf16.msra.mxu1 %v6196_v37 }
 0x7ad   : > { %3490 = vmatmul.mubr.bf16.vlgmr.msra.gmra.mrb[20].mxu0 %v7892_v14  ;;  %5648 = vmatprep.subr.bf16.mxu1 %v8281_v61 }
 0x7ae   : > { %3777 = vmatpush1.bf16.msra.mxu0 %v7642_v4  ;;  %3808 = vmatprep.mubr.bf16.mxu0 %v8280_v54  ;;  %v6198_v4 = vld [vmem:[#allocation17 + $0x18] sm:$0xff]  }
 0x7af   : > { %3778 = vmatprep.subr.bf16.mxu0 %v7649_v8  ;;  %v6199_v8 = vld [vmem:[#allocation17 + $0x20] sm:$0xff]  }
 0x7b0   : > { %5649 = vmatpush3.bf16.msra.mxu1 %v6197_v1 }
 0x7b1   : > { %5650 = vmatprep.subr.bf16.mxu1 %v8281_v61 }
 0x7b2   : > { %3779 = vmatpush1.bf16.msra.mxu0 %v7653_v22  ;;  %v6200_v22 = vld [vmem:[#allocation17 + $0x28] sm:$0xff]  }
 0x7b3   : > { %3780 = vmatprep.subr.bf16.mxu0 %v7657_v26  ;;  %v6201_v26 = vld [vmem:[#allocation17 + $0x30] sm:$0xff]  }
 0x7b4   : > { %5651 = vmatpush3.bf16.msra.mxu1 %v6198_v4 }
 0x7b5   : > { %5652 = vmatprep.subr.bf16.mxu1 %v8281_v61 }
 0x7b6   : > { %3781 = vmatpush1.bf16.msra.mxu0 %v7660_v9  ;;  %v6202_v9 = vld [vmem:[#allocation17 + $0x38] sm:$0xff]  }
 0x7b7   : > { %3782 = vmatprep.subr.bf16.mxu0 %v7663_v18 }
 0x7b8   : > { %5653 = vmatpush3.bf16.msra.mxu1 %v6199_v8 }
 0x7b9   : > { %5654 = vmatprep.subr.bf16.mxu1 %v8281_v61 }
 0x7ba   : > { %3783 = vmatpush1.bf16.msra.mxu0 %v7666_v23 }
 0x7bb   : > { %3784 = vmatprep.subr.bf16.mxu0 %v7669_v27 }
 0x7bc   : > { %5655 = vmatpush3.bf16.msra.mxu1 %v6200_v22 }
 0x7bd   : > { %5656 = vmatprep.subr.bf16.mxu1 %v8281_v61 }
 0x7be   : > { %3785 = vmatpush1.bf16.msra.mxu0 %v7672_v31 }
 0x7bf   : > { %3786 = vmatprep.subr.bf16.mxu0 %v7675_v40  ;;  %v3365_v40 = vld [vmem:[%s8282_s17] sm:$0x3] }
 0x7c0   : > { %5657 = vmatpush3.bf16.msra.mxu1 %v6201_v26  ;;  %v8287_v26 = vld [vmem:[#allocation33_spill] sm:$0xff] }
 0x7c1   : > { %5658 = vmatprep.subr.bf16.mxu1 %v8281_v61 }
 0x7c2   : > { %3787 = vmatpush1.bf16.msra.mxu0 %v7678_v11  ;;  %v3370_v11 = vrot.slane %v3365_v40, %v7318_v3 }
 0x7c3   : > { %3788 = vmatprep.subr.bf16.mxu0 %v7681_v46  ;;  %v3374_v46 = vrot.slane %v3365_v40, %v7323_v5 }
 0x7c4   : > { %5659 = vmatpush3.bf16.msra.mxu1 %v6202_v9 }
 0x7c5   : > { %5664 = vmatprep.subr.bf16.mxu1 %v8281_v61 }
 0x7c6   : > { %3789 = vmatpush1.bf16.msra.mxu0 %v7684_v48 }
 0x7c7   : > { %3790 = vmatprep.subr.bf16.mxu0 %v7687_v50 }
 0x7ca   : > { %3791 = vmatpush1.bf16.msra.mxu0 %v7690_v51 }
 0x7cb   : > { %4140 = vmatprep.subr.bf16.mxu0 %v7744_v42 }
 0x7cd   : > { %3809 = vmatmul.mubr.bf16.vlgmr.msra.gmra.mrb[24].mxu0 %v3101_v53 }
 0x7ce   : > { %4141 = vmatpush1.bf16.msra.mxu0 %v7742_v32  ;;  %4172 = vmatprep.mubr.bf16.mxu0 %v8280_v54 }
 0x7cf   : > { %4142 = vmatprep.subr.bf16.mxu0 %v7746_v2 }
 0x7d2   : > { %4143 = vmatpush1.bf16.msra.mxu0 %v7750_v55 }
 0x7d3   : > { %4144 = vmatprep.subr.bf16.mxu0 %v7756_v34 }
 0x7d6   : > { %4145 = vmatpush1.bf16.msra.mxu0 %v7758_v35 }
 0x7d7   : > { %4146 = vmatprep.subr.bf16.mxu0 %v7762_v36 }
 0x7da   : > { %4147 = vmatpush1.bf16.msra.mxu0 %v7764_v33 }
 0x7db   : > { %4148 = vmatprep.subr.bf16.mxu0 %v7771_v44 }
 0x7de   : > { %4149 = vmatpush1.bf16.msra.mxu0 %v7769_v30 }
 0x7df   : > { %4150 = vmatprep.subr.bf16.mxu0 %v7774_v43 }
 0x7e2   : > { %4151 = vmatpush1.bf16.msra.mxu0 %v7778_v63 }
 0x7e3   : > { %4152 = vmatprep.subr.bf16.mxu0 %v7781_v0 }
 0x7e6   : > { %4153 = vmatpush1.bf16.msra.mxu0 %v7785_v56  ;;  %v6429_v56 = vld [vmem:[%s8271_s24] sm:$0x3] }
 0x7e7   : > { %4154 = vmatprep.subr.bf16.mxu0 %v7788_v10  ;;  %v3689_v10 = vrot.slane %v6429_v56, %v7318_v3  ;;  %v6208_v56 = vld [vmem:[#allocation13 + $0x28] sm:$0xff]  }
 0x7e9   : > { %v5752_v37 = vadd.f32 %v3689_v10, %v8286_v58 }
 0x7ea   : > { %4155 = vmatpush1.bf16.msra.mxu0 %v7792_v45 }
 0x7eb   : > { %4332 = vmatprep.subr.bf16.mxu0 %v7795_v16  ;;  %v8285_v16 = vld [vmem:[#allocation32_spill] sm:$0xff] }
 0x7ec   : > { %v5748_v47 = vadd.f32 %v3689_v10, %v8285_v16  ;;  %v6209_v10 = vld [vmem:[#allocation13 + $0x30] sm:$0xff]   ;;  %v6210_v16 = vld [vmem:[#allocation13 + $0x38] sm:$0xff]  }
 0x860   : > { %v7938_v18 = vpop.f32.mrb[52].mxu1 }
 0x861   : > { %v5642_v23 = vpop.f32.mrb[53].mxu1 }
 0x862   : > { %v7940_v27 = vpop.f32.mrb[54].mxu1 }
 0x863   : > { %v5643_v31 = vpop.f32.mrb[55].mxu1 }
 0x864   : > { %v6203_v31 = vld [vmem:[#allocation13] sm:$0xff]  }
 0x880   : > { %v3491_v48 = vpop.f32.mrb[20].mxu0 }
 0x881   : > { %v3492_v50 = vadd.f32 %v3491_v48, %v3370_v11  ;;  %v3493_v51 = vpop.f32.mrb[21].mxu0 }
 0x882   : > { %v7947_v32 = vadd.f32 %v3493_v51, %v3374_v46  ;;  %v3495_v42 = vpop.f32.mrb[22].mxu0 }
 0x883   : > { %v3502_v2 = vsub.f32 0.0, %v3492_v50  ;;  %v3496_v55 = vadd.f32 %v3495_v42, %v3370_v11  ;;  %v3497_v34 = vpop.f32.mrb[23].mxu0  ;;  %v8288_v50 = vld [vmem:[#allocation35_spill] sm:$0xff] }
 0x884   : > { %v7949_v35 = vadd.f32 %v3497_v34, %v3374_v46 }
 0x885   : > { %v3504_v36 = vmul.f32 1.442695, %v3502_v2  ;;  %v3503_v33 = vsub.f32 0.0, %v3496_v55  ;;  %v6204_v55 = vld [vmem:[#allocation13 + $0x8] sm:$0xff]  }
 0x887   : > { %6351 = vpow2.f32 %v3504_v36  ;;  %v3506_v30 = vmul.f32 1.442695, %v3503_v33  ;;  %v6205_v36 = vld [vmem:[#allocation13 + $0x10] sm:$0xff]   ;;  %v6206_v33 = vld [vmem:[#allocation13 + $0x18] sm:$0xff]  }
 0x889   : > { %6353 = vpow2.f32 %v3506_v30 }
 0x891   : > { %v6352_v44 = vpop.eup %6351 }
 0x892   : > { %v3508_v43 = vadd.f32 1.0, %v6352_v44 }
 0x893   : > { %v6354_v63 = vpop.eup %6353 }
 0x894   : > { %6355 = vrcp.f32 %v3508_v43  ;;  %v3509_v0 = vadd.f32 1.0, %v6354_v63  ;;  %v6207_v43 = vld [vmem:[#allocation13 + $0x20] sm:$0xff]  }
 0x896   : > { %6357 = vrcp.f32 %v3509_v0 }
 0x89e   : > { %v6356_v45 = vpop.eup %6355 }
 0x89f   : > { %v3528_v8 = vmul.f32 %v6356_v45, %v7887_v59 }
 0x8a0   : > { %v6358_v62 = vpop.eup %6357  ;;  %v3810_v53 = vpop.f32.mrb[24].mxu0 }
 0x8a1   : > { %v5749_v1 = vadd.f32 %v5748_v47, %v3810_v53  ;;  %v3812_v4 = vpop.f32.mrb[25].mxu0  ;;  %v3529_v22 = vmul.f32 %v6358_v62, %v7882_v38 }
 0x8a2   : > { %v7960_v9 = vadd.f32 %v8287_v26, %v3812_v4  ;;  %v3814_v23 = vpop.f32.mrb[26].mxu0  ;;  %v6213_v4 = vld [vmem:[#allocation14 + $0x38] ss:$12 sps:$4 sm:$0xff]   ;;  %v6216_v26 = vld [vmem:[#allocation14 + $0x80] ss:$12 sps:$4 sm:$0xff]  }
 0x8a3   : > { %v3821_v40 = vsub.f32 0.0, %v5749_v1  ;;  %v5753_v11 = vadd.f32 %v5752_v37, %v3814_v23  ;;  %v3816_v46 = vpop.f32.mrb[27].mxu0  ;;  %v3530_v48 = vpack.c.bf16 %v3529_v22, %v3528_v8  ;;  %v6211_v37 = vld [vmem:[#allocation14 + $0x8] ss:$12 sps:$4 sm:$0xff]   ;;  %v6212_v1 = vld [vmem:[#allocation14 + $0x20] ss:$12 sps:$4 sm:$0xff]  }
 0x8a4   : > { %v7963_v51 = vadd.f32 %v8288_v50, %v3816_v46  ;;  %v6214_v8 = vld [vmem:[#allocation14 + $0x50] ss:$12 sps:$4 sm:$0xff]   ;;  %v6215_v22 = vld [vmem:[#allocation14 + $0x68] ss:$12 sps:$4 sm:$0xff]   ;;  %v6217_v23 = vld [vmem:[#allocation14 + $0x98] ss:$12 sps:$4 sm:$0xff]  }
 0x8a5   : > { %v3823_v42 = vmul.f32 1.442695, %v3821_v40  ;;  %v3822_v2 = vsub.f32 0.0, %v5753_v11  ;;  %5661 = vmatmul.mubr.bf16.vlgmr.msra.gmra.mrb[56].mxu1 %v3530_v48  ;;  %v3516_v40 = vsub.f32 0.0, %v7947_v32  ;;  %v3517_v11 = vsub.f32 0.0, %v7949_v35 }
 0x8a6   : > { %5665 = vmatpush3.bf16.msra.mxu1 %v6203_v31  ;;  %5680 = vmatprep.mubr.msk.bf16.mxu1 %vm6831_vm0, %v8281_v61  ;;  %v6218_v31 = vld [vmem:[#allocation14 + $0xb0] ss:$12 sps:$4 sm:$0xff]  }
 0x8a7   : > { %6359 = vpow2.f32 %v3823_v42  ;;  %v3825_v34 = vmul.f32 1.442695, %v3822_v2  ;;  %5666 = vmatprep.subr.bf16.mxu1 %v8281_v61  ;;  %v3518_v46 = vmul.f32 1.442695, %v3516_v40  ;;  %v3520_v48 = vmul.f32 1.442695, %v3517_v11 }
 0x8a8   : > { %v7992_v2 = vld [vmem:[%s8283_s15] ss:$0 sm:$0xff]  ;;  %v8290_v40 = vld [vmem:[#allocation37_spill] sm:$0xff] }
 0x8a9   : > { %6361 = vpow2.f32 %v3825_v34 }
 0x8aa   : > { %5667 = vmatpush3.bf16.msra.mxu1 %v6204_v55 }
 0x8ab   : > { %5668 = vmatprep.subr.bf16.mxu1 %v8281_v61 }
 0x8ae   : > { %5669 = vmatpush3.bf16.msra.mxu1 %v6205_v36 }
 0x8af   : > { %5670 = vmatprep.subr.bf16.mxu1 %v8281_v61 }
 0x8b1   : > { %v6360_v30 = vpop.eup %6359 }
 0x8b2   : > { %v3827_v44 = vadd.f32 1.0, %v6360_v30  ;;  %5671 = vmatpush3.bf16.msra.mxu1 %v6206_v33 }
 0x8b3   : > { %v6362_v63 = vpop.eup %6361  ;;  %5672 = vmatprep.subr.bf16.mxu1 %v8281_v61 }
 0x8b4   : > { %6363 = vrcp.f32 %v3827_v44  ;;  %v3828_v0 = vadd.f32 1.0, %v6362_v63 }
 0x8b6   : > { %6365 = vrcp.f32 %v3828_v0  ;;  %5673 = vmatpush3.bf16.msra.mxu1 %v6207_v43  ;;  %v3835_v0 = vsub.f32 0.0, %v7960_v9 }
 0x8b7   : > { %5674 = vmatprep.subr.bf16.mxu1 %v8281_v61  ;;  %6367 = vpow2.f32 %v3518_v46 }
 0x8b8   : > { %6369 = vpow2.f32 %v3520_v48 }
 0x8ba   : > { %5675 = vmatpush3.bf16.msra.mxu1 %v6208_v56 }
 0x8bb   : > { %5676 = vmatprep.subr.bf16.mxu1 %v8281_v61 }
 0x8be   : > { %v6364_v45 = vpop.eup %6363  ;;  %5677 = vmatpush3.bf16.msra.mxu1 %v6209_v10  ;;  %v3836_v10 = vsub.f32 0.0, %v7963_v51 }
 0x8bf   : > { %5678 = vmatprep.subr.bf16.mxu1 %v8281_v61  ;;  %v3847_v62 = vmul.f32 %v6364_v45, %v7827_v6 }
 0x8c0   : > { %v6366_v47 = vpop.eup %6365 }
 0x8c1   : > { %v3848_v53 = vmul.f32 %v6366_v47, %v7830_v49  ;;  %v6368_v50 = vpop.eup %6367  ;;  %v3837_v47 = vmul.f32 1.442695, %v3835_v0  ;;  %v6244_v0 = vld [vmem:[#allocation17 + $0x8] sm:$0xff]  }
 0x8c2   : > { %5679 = vmatpush3.bf16.msra.mxu1 %v6210_v16  ;;  %v6370_v36 = vpop.eup %6369  ;;  %v3522_v33 = vadd.f32 1.0, %v6368_v50 }
 0x8c3   : > { %v3849_v58 = vpack.c.bf16 %v3848_v53, %v3847_v62  ;;  %5684 = vmatprep.subr.bf16.mxu1 %v8281_v61  ;;  %v3523_v43 = vadd.f32 1.0, %v6370_v36 }
 0x8c5   : > { %5681 = vmatmul.mubr.bf16.vlgmr.msra.gmra.mrb[60].mxu1 %v3849_v58  ;;  %v3839_v58 = vmul.f32 1.442695, %v3836_v10  ;;  %v6250_v10 = vld [vmem:[#allocation17 + $0x38] sm:$0xff]  }
 0x8c6   : > { %5700 = vmatprep.mubr.msk.bf16.mxu1 %vm6831_vm0, %v8281_v61  ;;  %5685 = vmatpush3.bf16.msra.mxu1 %v6211_v37 }
 0x8c7   : > { %5686 = vmatprep.subr.bf16.mxu1 %v8281_v61 }
 0x8ca   : > { %5687 = vmatpush3.bf16.msra.mxu1 %v6212_v1 }
 0x8cb   : > { %5688 = vmatprep.subr.bf16.mxu1 %v8281_v61 }
 0x8ce   : > { %5689 = vmatpush3.bf16.msra.mxu1 %v6213_v4 }
 0x8cf   : > { %5690 = vmatprep.subr.bf16.mxu1 %v8281_v61 }
 0x8d2   : > { %5691 = vmatpush3.bf16.msra.mxu1 %v6214_v8  ;;  %v8289_v8 = vld [vmem:[#allocation36_spill] sm:$0xff] }
 0x8d3   : > { %5692 = vmatprep.subr.bf16.mxu1 %v8281_v61 }
 0x8d6   : > { %5693 = vmatpush3.bf16.msra.mxu1 %v6215_v22 }
 0x8d7   : > { %5694 = vmatprep.subr.bf16.mxu1 %v8281_v61 }
 0x8da   : > { %5695 = vmatpush3.bf16.msra.mxu1 %v6216_v26 }
 0x8db   : > { %5696 = vmatprep.subr.bf16.mxu1 %v8281_v61 }
 0x8de   : > { %5697 = vmatpush3.bf16.msra.mxu1 %v6217_v23 }
 0x8df   : > { %5698 = vmatprep.subr.bf16.mxu1 %v8281_v61 }
 0x8e2   : > { %5699 = vmatpush3.bf16.msra.mxu1 %v6218_v31 }
 0x8e3   : > { %5704 = vmatprep.subr.bf16.mxu1 %v8281_v61 }
 0x978   : > { %v3629_v42 = vpop.f32.mrb[56].mxu1 }
 0x979   : > { %v3636_v55 = vadd.f32 %v3629_v42, %v7938_v18  ;;  %v5662_v34 = vpop.f32.mrb[57].mxu1 }
 0x97a   : > { %v3632_v30 = vpop.f32.mrb[58].mxu1 }
 0x97b   : > { %v3645_v32 = vadd.f32 %v7992_v2, %v3636_v55  ;;  %v3637_v35 = vadd.f32 %v3632_v30, %v7940_v27  ;;  %v5663_v44 = vpop.f32.mrb[59].mxu1 }
 0x97d   : > { %6371 = vtanh.f32 %v3645_v32  ;;  %v3646_v63 = vadd.f32 %v7992_v2, %v3637_v35 }
 0x97e   : > { %6373 = vrcp.f32 %v3522_v33 }
 0x97f   : > { %6375 = vtanh.f32 %v3646_v63  ;;  %v6243_v63 = vld [vmem:[#allocation17] sm:$0xff]  }
 0x980   : > { %6377 = vrcp.f32 %v3523_v43 }
 0x981   : > { %6379 = vpow2.f32 %v3837_v47 }
 0x982   : > { %6381 = vpow2.f32 %v3839_v58 }
 0x987   : > { %v6372_v56 = vpop.eup %6371 }
 0x988   : > { %v6374_v18 = vpop.eup %6373  ;;  %v3649_v45 = vsub.f32 %v6372_v56, %v7887_v59  ;;  %v6245_v56 = vld [vmem:[#allocation17 + $0x10] sm:$0xff]  }
 0x989   : > { %v6376_v16 = vpop.eup %6375 }
 0x98a   : > { %v3651_v62 = vmul.f32 %v6374_v18, %v3649_v45  ;;  %v3650_v27 = vsub.f32 %v6376_v16, %v7882_v38  ;;  %v6378_v53 = vpop.eup %6377  ;;  %v6249_v18 = vld [vmem:[#allocation17 + $0x30] sm:$0xff]  }
 0x98b   : > { %v6380_v1 = vpop.eup %6379 }
 0x98c   : > { %v3652_v37 = vmul.f32 %v6378_v53, %v3650_v27  ;;  %v6382_v26 = vpop.eup %6381  ;;  %v3841_v23 = vadd.f32 1.0, %v6380_v1  ;;  %v4240_v27 = vld [vmem:[%s8282_s17] sm:$0x3] }
 0x98d   : > { %v3842_v48 = vadd.f32 1.0, %v6382_v26  ;;  %v4245_v53 = vrot.slane %v4240_v27, %v7318_v3  ;;  %v4249_v58 = vrot.slane %v4240_v27, %v7323_v5 }
 0x998   : > { %v3948_v4 = vpop.f32.mrb[60].mxu1 }
 0x999   : > { %v3955_v9 = vadd.f32 %v8289_v8, %v3948_v4  ;;  %v5682_v22 = vpop.f32.mrb[61].mxu1 }
 0x99a   : > { %v3951_v51 = vpop.f32.mrb[62].mxu1 }
 0x99b   : > { %v3964_v31 = vadd.f32 %v7818_v41, %v3955_v9  ;;  %v3956_v11 = vadd.f32 %v8290_v40, %v3951_v51  ;;  %v5683_v46 = vpop.f32.mrb[63].mxu1 }
 0x99d   : > { %6383 = vtanh.f32 %v3964_v31  ;;  %v3965_v50 = vadd.f32 %v7818_v41, %v3956_v11 }
 0x99e   : > { %6385 = vrcp.f32 %v3841_v23 }
 0x99f   : > { %6387 = vtanh.f32 %v3965_v50 }
 0x9a0   : > { %6389 = vrcp.f32 %v3842_v48 }
 0x9a7   : > { %v6384_v42 = vpop.eup %6383 }
 0x9a8   : > { %v6386_v55 = vpop.eup %6385  ;;  %v3968_v34 = vsub.f32 %v6384_v42, %v7827_v6  ;;  %v4554_v42 = vld [vmem:[%s8291_s30] sm:$0x3] }
 0x9a9   : > { %v6388_v36 = vpop.eup %6387 }
 0x9aa   : > { %v3969_v33 = vsub.f32 %v6388_v36, %v7830_v49  ;;  %v3970_v30 = vmul.f32 %v6386_v55, %v3968_v34  ;;  %v6390_v32 = vpop.eup %6389  ;;  %v8064_v55 = vrot.slane %v4554_v42, %v7318_v3  ;;  %v8067_v36 = vrot.slane %v4554_v42, %v7323_v5 }
 0x9ac   : > { %v3971_v35 = vmul.f32 %v6390_v32, %v3969_v33  ;;  %v3972_v44 = vadd.f32 %v3970_v30, %v7827_v6  ;;  %v8027_v6 = vadd.f32 %v3652_v37, %v7882_v38  ;;  %v6242_v38 = vld [vmem:[#allocation19 + $0x74] ss:$8 sps:$4 sm:$0xff]  }
 0x9ae   : > { %v3973_v43 = vadd.f32 %v3971_v35, %v7830_v49  ;;  %3974 = vst [vmem:[#allocation2] sm:$0xff] %v3972_v44  ;;  %v6221_v49 = vld [vmem:[#allocation19 + $0x4] ss:$8 sps:$4 sm:$0xff]  }
 0x9b0   : > { %3975 = vst [vmem:[#allocation2 + $0x8] sm:$0xff] %v3973_v43  ;;  %v3976_v41 = vpack.c.bf16 %v3973_v43, %v3972_v44 }
 0x9b2   : > { %4173 = vmatmul.mubr.bf16.vlgmr.msra.gmra.mrb[28].mxu0 %v3976_v41  ;;  %5701 = vmatmul.mubr.bf16.vlgmr.msra.gmra.mrb[64].mxu1 %v3976_v41 }
 0x9b3   : > { %4333 = vmatpush1.bf16.msra.mxu0 %v7832_v15  ;;  %4364 = vmatprep.mubr.bf16.mxu0 %v8280_v54  ;;  %v8031_v15 = vadd.f32 %v3651_v62, %v7887_v59  ;;  %v6240_v59 = vld [vmem:[#allocation19 + $0x70] ss:$8 sps:$4 sm:$0xff]  }
 0x9b4   : > { %4334 = vmatprep.subr.bf16.mxu0 %v7836_v39  ;;  %5720 = vmatprep.mubr.msk.bf16.mxu1 %vm6831_vm0, %v8281_v61  ;;  %v6219_v39 = vld [vmem:[#allocation19] ss:$8 sps:$4 sm:$0xff]  }
 0x9b5   : > { %5705 = vmatpush3.bf16.msra.mxu1 %v6243_v63 }
 0x9b6   : > { %5706 = vmatprep.subr.bf16.mxu1 %v8281_v61 }
 0x9b7   : > { %4335 = vmatpush1.bf16.msra.mxu0 %v7839_v57  ;;  %v3979_v57 = vpack.c.bf16 %v8027_v6, %v8031_v15 }
 0x9b8   : > { %4336 = vmatprep.subr.bf16.mxu0 %v7843_v12  ;;  %v6224_v12 = vld [vmem:[#allocation19 + $0x14] ss:$8 sps:$4 sm:$0xff]  }
 0x9b9   : > { %5707 = vmatpush3.bf16.msra.mxu1 %v6244_v0 }
 0x9ba   : > { %5708 = vmatprep.subr.bf16.mxu1 %v8281_v61 }
 0x9bb   : > { %4337 = vmatpush1.bf16.msra.mxu0 %v7848_v25  ;;  %v6222_v25 = vld [vmem:[#allocation19 + $0x10] ss:$8 sps:$4 sm:$0xff]  }
 0x9bc   : > { %4338 = vmatprep.subr.bf16.mxu0 %v7851_v19  ;;  %v6227_v19 = vld [vmem:[#allocation19 + $0x24] ss:$8 sps:$4 sm:$0xff]  }
 0x9bd   : > { %5709 = vmatpush3.bf16.msra.mxu1 %v6245_v56 }
 0x9be   : > { %5710 = vmatprep.subr.bf16.mxu1 %v8281_v61 }
 0x9bf   : > { %4339 = vmatpush1.bf16.msra.mxu0 %v7854_v24  ;;  %v6225_v24 = vld [vmem:[#allocation19 + $0x20] ss:$8 sps:$4 sm:$0xff]  }
 0x9c0   : > { %4340 = vmatprep.subr.bf16.mxu0 %v7857_v21  ;;  %v6230_v21 = vld [vmem:[#allocation19 + $0x34] ss:$8 sps:$4 sm:$0xff]  }
 0x9c3   : > { %4341 = vmatpush1.bf16.msra.mxu0 %v7860_v60  ;;  %v6228_v60 = vld [vmem:[#allocation19 + $0x30] ss:$8 sps:$4 sm:$0xff]  }
 0x9c4   : > { %4342 = vmatprep.subr.bf16.mxu0 %v7863_v28  ;;  %v6233_v28 = vld [vmem:[#allocation19 + $0x44] ss:$8 sps:$4 sm:$0xff]  }
 0x9c7   : > { %4343 = vmatpush1.bf16.msra.mxu0 %v7866_v17  ;;  %v6231_v17 = vld [vmem:[#allocation19 + $0x40] ss:$8 sps:$4 sm:$0xff]  }
 0x9c8   : > { %4344 = vmatprep.subr.bf16.mxu0 %v7869_v29  ;;  %v6236_v29 = vld [vmem:[#allocation19 + $0x54] ss:$8 sps:$4 sm:$0xff]  }
 0x9cb   : > { %4345 = vmatpush1.bf16.msra.mxu0 %v7872_v13  ;;  %v6234_v13 = vld [vmem:[#allocation19 + $0x50] ss:$8 sps:$4 sm:$0xff]  }
 0x9cc   : > { %4346 = vmatprep.subr.bf16.mxu0 %v7875_v52  ;;  %v6239_v52 = vld [vmem:[#allocation19 + $0x64] ss:$8 sps:$4 sm:$0xff]  }
 0x9cf   : > { %4347 = vmatpush1.bf16.msra.mxu0 %v7878_v20  ;;  %v6237_v20 = vld [vmem:[#allocation19 + $0x60] ss:$8 sps:$4 sm:$0xff]  }
 0x9d0   : > { %4646 = vmatprep.subr.bf16.mxu0 %v6221_v49 }
 0x9d2   : > { %4365 = vmatmul.mubr.bf16.vlgmr.msra.gmra.mrb[28].mxu0 %v3979_v57 }
 0x9d3   : > { %4647 = vmatpush1.bf16.msra.mxu0 %v6219_v39  ;;  %4678 = vmatprep.mubr.bf16.mxu0 %v8280_v54 }
 0x9d4   : > { %4648 = vmatprep.subr.bf16.mxu0 %v6224_v12 }
 0x9d7   : > { %4649 = vmatpush1.bf16.msra.mxu0 %v6222_v25 }
 0x9d8   : > { %4650 = vmatprep.subr.bf16.mxu0 %v6227_v19 }
 0x9db   : > { %4651 = vmatpush1.bf16.msra.mxu0 %v6225_v24 }
 0x9dc   : > { %4652 = vmatprep.subr.bf16.mxu0 %v6230_v21 }
 0x9df   : > { %4653 = vmatpush1.bf16.msra.mxu0 %v6228_v60 }
 0x9e0   : > { %4654 = vmatprep.subr.bf16.mxu0 %v6233_v28 }
 0x9e3   : > { %4655 = vmatpush1.bf16.msra.mxu0 %v6231_v17 }
 0x9e4   : > { %4656 = vmatprep.subr.bf16.mxu0 %v6236_v29 }
 0x9e7   : > { %4657 = vmatpush1.bf16.msra.mxu0 %v6234_v13 }
 0x9e8   : > { %4658 = vmatprep.subr.bf16.mxu0 %v6239_v52 }
 0x9eb   : > { %4659 = vmatpush1.bf16.msra.mxu0 %v6237_v20 }
 0x9ec   : > { %4660 = vmatprep.subr.bf16.mxu0 %v6242_v38 }
 0x9ef   : > { %4661 = vmatpush1.bf16.msra.mxu0 %v6240_v59 }
 0x9f2   : > { %4679 = vmatmul.mubr.bf16.vlgmr.msra.gmra.mrb[32].mxu0 %v7646_v7  ;;  %v6246_v7 = vld [vmem:[#allocation17 + $0x18] sm:$0xff]  }
 0x9f3   : > { %4688 = vmatprep.mubr.bf16.mxu0 %v8280_v54  ;;  %5711 = vmatpush3.bf16.msra.mxu1 %v6246_v7 }
 0x9f4   : > { %5712 = vmatprep.subr.bf16.mxu1 %v8281_v61 }
 0x9fa   : > { %4689 = vmatmul.mubr.bf16.gmra.mrb[36].mxu0 %v7892_v14  ;;  %v6247_v14 = vld [vmem:[#allocation17 + $0x20] sm:$0xff]  }
 0x9fb   : > { %4698 = vmatprep.mubr.bf16.mxu0 %v8280_v54  ;;  %5713 = vmatpush3.bf16.msra.mxu1 %v6247_v14 }
 0x9fc   : > { %5714 = vmatprep.subr.bf16.mxu1 %v8281_v61 }
 0xa02   : > { %4699 = vmatmul.mubr.bf16.gmra.mrb[40].mxu0 %v3979_v57 }
 0xa03   : > { %4708 = vmatprep.mubr.bf16.mxu0 %v8280_v54  ;;  %v6248_v54 = vld [vmem:[#allocation17 + $0x28] sm:$0xff]  }
 0xa04   : > { %5715 = vmatpush3.bf16.msra.mxu1 %v6248_v54 }
 0xa05   : > { %5716 = vmatprep.subr.bf16.mxu1 %v8281_v61 }
 0xa08   : > { %5717 = vmatpush3.bf16.msra.mxu1 %v6249_v18 }
 0xa09   : > { %5718 = vmatprep.subr.bf16.mxu1 %v8281_v61 }
 0xa0c   : > { %5719 = vmatpush3.bf16.msra.mxu1 %v6250_v10 }
 0xa85   : > { %v8049_v45 = vpop.f32.mrb[64].mxu1 }
 0xa86   : > { %v5702_v16 = vpop.f32.mrb[65].mxu1 }
 0xa87   : > { %v8051_v47 = vpop.f32.mrb[66].mxu1 }
 0xa88   : > { %v5703_v62 = vpop.f32.mrb[67].mxu1 }
 0xaa5   : > { %v4366_v37 = vpop.f32.mrb[28].mxu0 }
 0xaa6   : > { %v4367_v1 = vadd.f32 %v4366_v37, %v4245_v53  ;;  %v4368_v4 = vpop.f32.mrb[29].mxu0 }
 0xaa7   : > { %v8058_v61 = vadd.f32 %v4368_v4, %v4249_v58  ;;  %v4370_v8 = vpop.f32.mrb[30].mxu0 }
 0xaa8   : > { %v4377_v9 = vsub.f32 0.0, %v4367_v1  ;;  %v4371_v22 = vadd.f32 %v4370_v8, %v4245_v53  ;;  %v4372_v26 = vpop.f32.mrb[31].mxu0 }
 0xaa9   : > { %v4373_v23 = vadd.f32 %v4372_v26, %v4249_v58  ;;  %v4391_v56 = vsub.f32 0.0, %v8058_v61 }
 0xaaa   : > { %v4379_v51 = vmul.f32 1.442695, %v4377_v9  ;;  %v4378_v31 = vsub.f32 0.0, %v4371_v22 }
 0xaab   : > { %v4392_v7 = vsub.f32 0.0, %v4373_v23  ;;  %v4393_v14 = vmul.f32 1.442695, %v4391_v56 }
 0xaac   : > { %6391 = vpow2.f32 %v4379_v51  ;;  %v4381_v40 = vmul.f32 1.442695, %v4378_v31 }
 0xaad   : > { %v4395_v54 = vmul.f32 1.442695, %v4392_v7 }
 0xaae   : > { %6393 = vpow2.f32 %v4381_v40 }
 0xab6   : > { %v6392_v11 = vpop.eup %6391 }
 0xab7   : > { %v4383_v46 = vadd.f32 1.0, %v6392_v11 }
 0xab8   : > { %v6394_v48 = vpop.eup %6393 }
 0xab9   : > { %6395 = vrcp.f32 %v4383_v46  ;;  %v4384_v50 = vadd.f32 1.0, %v6394_v48 }
 0xabb   : > { %6397 = vrcp.f32 %v4384_v50 }
 0xabc   : > { %6399 = vpow2.f32 %v4393_v14 }
 0xabd   : > { %6401 = vpow2.f32 %v4395_v54 }
 0xac3   : > { %v6396_v34 = vpop.eup %6395 }
 0xac4   : > { %v4403_v44 = vmul.f32 %v6396_v34, %v8031_v15 }
 0xac5   : > { %v6398_v33 = vpop.eup %6397  ;;  %v4680_v30 = vpop.f32.mrb[32].mxu0 }
 0xac6   : > { %v4681_v32 = vadd.f32 %v4680_v30, %v8064_v55  ;;  %v4682_v35 = vpop.f32.mrb[33].mxu0  ;;  %v4404_v43 = vmul.f32 %v6398_v33, %v8027_v6  ;;  %v6400_v18 = vpop.eup %6399 }
 0xac7   : > { %v4683_v41 = vadd.f32 %v4682_v35, %v8067_v36  ;;  %v4684_v3 = vpop.f32.mrb[34].mxu0  ;;  %v6402_v27 = vpop.eup %6401  ;;  %v4397_v53 = vadd.f32 1.0, %v6400_v18 }
 0xac8   : > { %4719 = vst [vmem:[%s7276_s6] sm:$0xff] %v4681_v32  ;;  %v4685_v49 = vadd.f32 %v4684_v3, %v8064_v55  ;;  %v4686_v5 = vpop.f32.mrb[35].mxu0  ;;  %v4405_v39 = vpack.c.bf16 %v4404_v43, %v4403_v44  ;;  %v4398_v8 = vadd.f32 1.0, %v6402_v27  ;;  %v4740_v32 = vld [vmem:[#allocation2 + $0x8] sm:$0xff] (!%p5327_p4) }
 0xac9   : > { %4720 = vst [vmem:[%s7276_s6 + $0x8] sm:$0xff] %v4683_v41  ;;  %v4687_v57 = vadd.f32 %v4686_v5, %v8067_v36  ;;  %4744 = vst [vmem:[#allocation21 + $0x8] sm:$0xff] (!%p5327_p4), %v4740_v32 }
 0xaca   : > { %4721 = vst [vmem:[%s7276_s6 + $0x10] sm:$0xff] %v4685_v49  ;;  %5721 = vmatmul.mubr.bf16.vlgmr.msra.gmra.mrb[68].mxu1 %v4405_v39 }
 0xacb   : > { %4722 = vst [vmem:[%s7276_s6 + $0x18] sm:$0xff] %v4687_v57 }
 0xacd   : > { %v4690_v12 = vpop.f32.mrb[36].mxu0 }
 0xace   : > { %v4691_v25 = vadd.f32 %v4690_v12, %v8064_v55  ;;  %v4692_v19 = vpop.f32.mrb[37].mxu0 }
 0xacf   : > { %v4693_v24 = vadd.f32 %v4692_v19, %v8067_v36  ;;  %v4694_v21 = vpop.f32.mrb[38].mxu0 }
 0xad0   : > { %4723 = vst [vmem:[%s7276_s6 + $0x20] sm:$0xff] %v4691_v25  ;;  %v4695_v60 = vadd.f32 %v4694_v21, %v8064_v55  ;;  %v4696_v28 = vpop.f32.mrb[39].mxu0 }
 0xad1   : > { %4724 = vst [vmem:[%s7276_s6 + $0x28] sm:$0xff] %v4693_v24  ;;  %v4697_v17 = vadd.f32 %v4696_v28, %v8067_v36 }
 0xad2   : > { %4725 = vst [vmem:[%s7276_s6 + $0x30] sm:$0xff] %v4695_v60 }
 0xad3   : > { %4726 = vst [vmem:[%s7276_s6 + $0x38] sm:$0xff] %v4697_v17 }
 0xad5   : > { %v4700_v29 = vpop.f32.mrb[40].mxu0 }
 0xad6   : > { %v4701_v13 = vadd.f32 %v4700_v29, %v8064_v55  ;;  %v4702_v52 = vpop.f32.mrb[41].mxu0 }
 0xad7   : > { %v4703_v20 = vadd.f32 %v4702_v52, %v8067_v36  ;;  %v4704_v38 = vpop.f32.mrb[42].mxu0 }
 0xad8   : > { %4727 = vst [vmem:[%s7276_s6 + $0x40] sm:$0xff] %v4701_v13  ;;  %v4705_v59 = vadd.f32 %v4704_v38, %v8064_v55  ;;  %v4706_v63 = vpop.f32.mrb[43].mxu0 }
 0xad9   : > { %4728 = vst [vmem:[%s7276_s6 + $0x48] sm:$0xff] %v4703_v20  ;;  %v4707_v0 = vadd.f32 %v4706_v63, %v8067_v36 }
 0xada   : > { %4729 = vst [vmem:[%s7276_s6 + $0x50] sm:$0xff] %v4705_v59 }
 0xadb   : > { %4730 = vst [vmem:[%s7276_s6 + $0x58] sm:$0xff] %v4707_v0 }
 0xb9d   : > { %v4504_v10 = vpop.f32.mrb[68].mxu1 }
 0xb9e   : > { %v4511_v16 = vadd.f32 %v4504_v10, %v8049_v45  ;;  %v5722_v62 = vpop.f32.mrb[69].mxu1 }
 0xb9f   : > { %v4507_v58 = vpop.f32.mrb[70].mxu1 }
 0xba0   : > { %v4520_v37 = vadd.f32 %v7992_v2, %v4511_v16  ;;  %v4512_v1 = vadd.f32 %v4507_v58, %v8051_v47  ;;  %v5723_v4 = vpop.f32.mrb[71].mxu1 }
 0xba2   : > { %6403 = vtanh.f32 %v4520_v37  ;;  %v4521_v61 = vadd.f32 %v7992_v2, %v4512_v1 }
 0xba3   : > { %6405 = vrcp.f32 %v4397_v53 }
 0xba4   : > { %6407 = vtanh.f32 %v4521_v61 }
 0xba5   : > { %6409 = vrcp.f32 %v4398_v8 }
 0xbac   : > { %v6404_v9 = vpop.eup %6403 }
 0xbad   : > { %v6406_v22 = vpop.eup %6405  ;;  %v4524_v45 = vsub.f32 %v6404_v9, %v8031_v15 }
 0xbae   : > { %v6408_v26 = vpop.eup %6407 }
 0xbaf   : > { %v4525_v23 = vsub.f32 %v6408_v26, %v8027_v6  ;;  %v4526_v51 = vmul.f32 %v6406_v22, %v4524_v45  ;;  %v6410_v31 = vpop.eup %6409 }
 0xbb1   : > { %v4527_v47 = vmul.f32 %v6410_v31, %v4525_v23  ;;  %v4528_v40 = vadd.f32 %v4526_v51, %v8031_v15 }
 0xbb3   : > { %v4529_v2 = vadd.f32 %v4527_v47, %v8027_v6  ;;  %4530 = vst [vmem:[#allocation2 + $0x10] sm:$0xff] %v4528_v40  ;;  %v4739_v6 = vld [vmem:[#allocation2] sm:$0xff] (!%p5327_p4) }
 0xbb4   : > { %4743 = vst [vmem:[#allocation21] sm:$0xff] (!%p5327_p4), %v4739_v6 }
 0xbb5   : > { %4531 = vst [vmem:[#allocation2 + $0x18] sm:$0xff] %v4529_v2  ;;  %v4532_v11 = vpack.c.bf16 %v4529_v2, %v4528_v40 }
 0xbb7   : > { %4709 = vmatmul.mubr.bf16.gmra.mrb[44].mxu0 %v4532_v11 }
 0xbba   : > { %v4741_v35 = vld [vmem:[#allocation2 + $0x10] sm:$0xff] (!%p5327_p4) }
 0xbbb   : > { %4745 = vst [vmem:[#allocation21 + $0x10] sm:$0xff] (!%p5327_p4), %v4741_v35 }
 0xbbc   : > { %v4742_v44 = vld [vmem:[#allocation2 + $0x18] sm:$0xff] (!%p5327_p4) }
 0xbbd   : > { %4746 = vst [vmem:[#allocation21 + $0x18] sm:$0xff] (!%p5327_p4), %v4742_v44 }
 0xc8a   : > { %v4710_v46 = vpop.f32.mrb[44].mxu0  ;;  %4738 = sbr.rel (%p5327_p4) target bundleno = 3217 (0xc91), region = 120 }
 0xc8b   : > { %v4711_v48 = vadd.f32 %v4710_v46, %v8064_v55  ;;  %v4712_v50 = vpop.f32.mrb[45].mxu0 }
 0xc8c   : > { %v4713_v42 = vadd.f32 %v4712_v50, %v8067_v36  ;;  %v4714_v34 = vpop.f32.mrb[46].mxu0 }
 0xc8d   : > { %4731 = vst [vmem:[%s7276_s6 + $0x60] sm:$0xff] %v4711_v48  ;;  %v4715_v33 = vadd.f32 %v4714_v34, %v8064_v55  ;;  %v4716_v30 = vpop.f32.mrb[47].mxu0 }
 0xc8e   : > { %4732 = vst [vmem:[%s7276_s6 + $0x68] sm:$0xff] %v4713_v42  ;;  %v4717_v15 = vadd.f32 %v4716_v30, %v8067_v36 }
 0xc8f   : > { %4733 = vst [vmem:[%s7276_s6 + $0x70] sm:$0xff] %v4715_v33 }
 0xc90   : > { %4734 = vst [vmem:[%s7276_s6 + $0x78] sm:$0xff] %v4717_v15 }
 0xc91 PF: > { %s8293_s16 = sld [smem:[#allocation30_spill]]  ;;  %s8294_s25 = sld [smem:[#allocation49_spill]] }
 0xc92   : > { %s4765_s30 = sshll.u32 %s7276_s6, 4  ;;  %s4748_s4 = scalar_lea.sflag [#allocation7], %s7249_s13  ;;  %s8120_s30 = int_to_ptr.vmem [resolvable:$true] %s4765_s30 }
 0xc93   : > { %s6684_s0 = scalar_lea.vmem %s8120_s30, 2048  ;;  %p8295_p1 = scmp.ne.s32.totalorder %s8262_s27, 0 }
 0xc94   : > { %p6685_p10 = scmp.ne.s32.totalorder %s8120_s30, %s6684_s0  ;;  %s6832_s2 = smov [#allocation20]  }
 0xc95   : > { %s6688_s5 = sshll.u32 %s6832_s2, 4  ;;  %s6689_s5 = int_to_ptr.vmem [resolvable:$false] %s6688_s5 }
 0xc96   : > { %p6686_p12 = pnand %p6685_p10, %p8295_p1  ;;  %p6691_p5 = scmp.lt.s32.totalorder %s8120_s30, %s6689_s5 }
 0xc97   : > { %s5339_s21 = sshll.u32 %s8293_s16, 11  ;;  %s6690_s16 = scalar_lea.vmem %s6689_s5, 4096 }
 0xc98   : > { %s8117_s1 = scalar_lea.hbm %s8294_s25, %s5339_s21  ;;  %p6687_p7 = pneg %p6686_p12 }
 0xc99   : > { %p6692_p8 = scmp.lt.s32.totalorder %s6690_s16, %s6684_s0 }
 0xc9b   : > { %p6693_p3 = por %p6692_p8, %p6691_p5 }
 0xc9d   : > { %p6694_p11 = pnand %p6693_p3, %p6687_p7 }
 0xc9f   : > { %6697 = shalt.err (!%p6694_p11)
}
 0xca0   : > { %s6698_s6 = scalar_lea.hbm %s8117_s1, 2048  ;;  %s6702_s2 = scalar_lea.hbm %s8294_s25, 4096 }
 0xca1   : > { %p6699_p13 = scmp.ne.s32.totalorder %s8117_s1, %s6698_s6  ;;  %p6703_p6 = scmp.lt.u32.totalorder %s8117_s1, %s8294_s25 }
 0xca2   : > { %p6704_p2 = scmp.lt.u32.totalorder %s6702_s2, %s6698_s6  ;;  %p6706_p10 = scmp.lt.u32.totalorder %s6698_s6, %s8117_s1 }
 0xca3   : > { %p6700_p0 = pnand %p6699_p13, %p8295_p1 }
 0xca4   : > { %p6705_p4 = por %p6704_p2, %p6703_p6 }
 0xca5   : > { %p6701_p9 = pneg %p6700_p0 }
 0xca6   : > { %p6707_p12 = por %p6706_p10, %p6705_p4 }
 0xca8   : > { %p6708_p7 = pnand %p6707_p12, %p6701_p9 }
 0xcaa   : > { %6711 = shalt.err (!%p6708_p7)
}
 0xcab   : > { %s6833_s0 = smov 256   ;;  %s6834_s16 = smov 16  }
 0xcac   : > { %5822 = dma.vmem_to_hbm [thread:$0]  (%p8295_p1), %s8120_s30, 2048, %s8117_s1, %s4748_s4, %s6833_s0, %s6833_s0, %s6834_s16  }
 0xcad   : > { %s6835_s21 = smov [#allocation21]   ;;  %p8296_p8 = scmp.ne.s32.totalorder %s8259_s3, 0 }
 0xcae   : > { %s4781_s26 = sshll.u32 %s6835_s21, 4  ;;  %s4782_s26 = int_to_ptr.vmem [resolvable:$true] %s4781_s26 }
 0xcaf   : > { %s6712_s11 = scalar_lea.vmem %s4782_s26, 512  ;;  %p6719_p13 = scmp.lt.s32.totalorder %s4782_s26, %s4782_s26 }
 0xcb0   : > { %p6713_p5 = scmp.ne.s32.totalorder %s4782_s26, %s6712_s11  ;;  %p6720_p0 = scmp.lt.s32.totalorder %s6712_s11, %s6712_s11 }
 0xcb2   : > { %p6714_p3 = pnand %p6713_p5, %p8296_p8  ;;  %p6721_p9 = por %p6720_p0, %p6719_p13 }
 0xcb4   : > { %p6715_p11 = pneg %p6714_p3 }
 0xcb6   : > { %p6722_p6 = pnand %p6721_p9, %p6715_p11 }
 0xcb8   : > { %6725 = shalt.err (!%p6722_p6)
}
 0xcb9   : > { %s8297_s5 = sld [smem:[#allocation50_spill]] }
 0xcbf   : > { %s6726_s27 = scalar_lea.hbm %s8297_s5, 512 }
 0xcc0   : > { %p6727_p1 = scmp.ne.s32.totalorder %s8297_s5, %s6726_s27  ;;  %p6732_p10 = scmp.lt.u32.totalorder %s6726_s27, %s8297_s5 }
 0xcc2   : > { %p6728_p2 = pnand %p6727_p1, %p8296_p8 }
 0xcc4   : > { %p6729_p4 = pneg %p6728_p2 }
 0xcc6   : > { %p6734_p12 = pnand %p6732_p10, %p6729_p4 }
 0xcc8   : > { %6737 = shalt.err (!%p6734_p12)
}
 0xcc9   : > { %s6836_s0 = smov 128   ;;  %s6837_s16 = smov 8  }
 0xcca   : > { %5824 = dma.vmem_to_hbm [thread:$0]  (%p8296_p8), %s4782_s26, 512, %s8297_s5, [#allocation22], %s6836_s0, %s6836_s0, %s6837_s16  }
 0xccb   : > { %6783 = dma.done.wait (%p8296_p8), [#allocation22], 512  }
 0xccc   : > { %6785 = vsyncadd (%p8296_p8), [#allocation22], 4294966784 }
 0xccd PF: > { %s4800_s6 = sand.u32 1, %s6792_s18   ;;  %p8298_p7 = scmp.ne.s32.totalorder %s8263_s28, 0 }
 0xcce   : > { %p8299_p5 = scmp.ge.s32.totalorder %s6812_s23, 2  ;;  %s4801_s2 = scalar_lea.sflag [#allocation7], %s4800_s6 }
 0xcd0   : > { %p5858_p3 = pnand %p8299_p5, %p8298_p7 }
 0xcd2   : > { %6787 = dma.done.wait (!%p5858_p3), %s4801_s2, 2048  }
 0xcd3   : > { %6789 = vsyncadd (!%p5858_p3), %s4801_s2, 4294965248  ;;  %s37_s23 = sadd.s32 1, %s6812_s23   ;;  %s8300_s18 = smov %s6796_s19 }
 0xcd4   : > { %p34_p11 = scmp.ge.s32.totalorder %s37_s23, 4   ;;  %s8301_s19 = smov %s6800_s20 }
 0xcd5   : > { %s8302_s20 = smov %s7193_s14  ;;  %s8303_s21 = smov %s6808_s22 }
 0xcd6   : > { %s8304_s22 = smov %s8306_s29  ;;  %36 = sbr.rel (!%p34_p11) target bundleno = 24 (0x18), region = 172 }
 0xcdd   :  { %4806 = vsyncpa [#allocation6], 1 }
 0xcde   :  { %4808 = vsyncpa [#allocation6 + $0x1], 1 }
 0xcdf   :  { %4809 = vsyncpa [#allocation9], 1 }
 0xce0   :  { %4810 = vsyncpa [#allocation12], 1 }
 0xce1   :  { %4811 = vsyncpa [#allocation15], 1 }
 0xce2   :  { %4812 = vsyncpa [#allocation18], 1 }
 0xce3   :  { %4813 = vsyncpa [#allocation7], 1 }
 0xce4   :  { %4815 = vsyncpa [#allocation7 + $0x1], 1 }
 0xce5   :  { %4816 = vsyncpa [#allocation22], 1 }

</bundles_post_ra>
